<compile_context>
chip_gen: v7x
topology: tpu7x:2x2x1
jax: 0.10.0
libtpu: 0.0.40
codegen_flags: <defaults>
</compile_context>

<pallas_src>
import functools

import jax
import jax.numpy as jnp
from jax.experimental import pallas as pl
from jax.experimental.pallas import tpu as pltpu

EPS = 1e-5     # nn.BatchNorm2d default
LANE = 128     # TPU lane width


def _round_up(x, m):
    return (x + m - 1) // m * m


@functools.lru_cache(maxsize=None)
def _vmem_limit_bytes():
    """Generation-aware scoped-VMEM budget: ~3/4 of physical VMEM, capped at 100 MB."""
    try:
        info = pltpu.get_tpu_info()
        cap = getattr(info, "vmem_capacity_bytes", None)
        if cap:
            return int(min(int(cap) * 3 // 4, 100 * 1024 * 1024))
    except Exception:
        pass
    return 48 * 1024 * 1024   # safe on v5e/v6e (128 MiB) and v7x (64 MiB)


# ---------------------------------------------------------------------------
# Host-side prep: spatial pad (+ parity split for stride 2), weight reshape
# ---------------------------------------------------------------------------
def _prep_conv_input(x, stride):
    """(N,H,W,C) f32 -> (N, R, Ws, C) bf16 such that every 3x3 tap of the (pad=1,
    stride) conv is a contiguous slice [r0:r0+Ho, c0:c0+Wo, :] of the result.
    For stride 2 the padded image is split into its 4 (row,col)-parity sub-images
    (total bytes unchanged - no im2col inflation), stacked along the row axis."""
    n, h, w, c = x.shape
    ho = (h + 2 - 3) // stride + 1
    wo = (w + 2 - 3) // stride + 1
    xp = jnp.pad(x, ((0, 0), (1, 1), (1, 1), (0, 0)))
    if stride == 1:
        xs = xp                                       # (N, H+2, W+2, C)
    else:
        hs, ws = ho + 1, wo + 1
        groups = []
        for a in range(2):
            for b in range(2):
                g = xp[:, a::2, b::2, :]
                g = jnp.pad(g, ((0, 0), (0, hs - g.shape[1]),
                                (0, ws - g.shape[2]), (0, 0)))
                groups.append(g)
        xs = jnp.concatenate(groups, axis=1)          # (N, 4*hs, ws, C)
    return xs.astype(jnp.bfloat16), (ho, wo)


def _tap_offsets(stride, ho):
    """Static (row, col) offsets of the 9 taps inside the prepped input."""
    taps = []
    hs = ho + 1
    for kh in range(3):
        for kw in range(3):
            if stride == 1:
                taps.append((kh, kw))
            else:
                grp = (kh % 2) * 2 + (kw % 2)
                taps.append((grp * hs + kh // 2, kw // 2))
    return tuple(taps)


def _prep_weights(w, cin_pad, cout_pad):
    """HWIO (3,3,Cin,Cout) -> tap-major (9, Cin_pad, Cout_pad) bf16."""
    kh, kw, cin, cout = w.shape
    wf = w.reshape(kh * kw, cin, cout)
    wf = jnp.pad(wf, ((0, 0), (0, cin_pad - cin), (0, cout_pad - cout)))
    return wf.astype(jnp.bfloat16)


# ---------------------------------------------------------------------------
# Pass 1 kernels: in-kernel 3x3 tap expansion + per-image BN partial stats
# ---------------------------------------------------------------------------
def _conv_stats_kernel(x_ref, w_ref, y_ref, ssum_ref, ssq_ref, acc_ref, *, taps, ho, wo):
    """9 accumulated tap matmuls (bf16 MXU, f32 accumulator) + per-image channel stats."""
    cin = x_ref.shape[-1]
    m = ho * wo
    for t, (r0, c0) in enumerate(taps):
        xt = x_ref[0, r0:r0 + ho, c0:c0 + wo, :].reshape(m, cin)
        contrib = jnp.dot(xt, w_ref[t], preferred_element_type=jnp.float32)
        if t == 0:
            acc_ref[...] = contrib
        else:
            acc_ref[...] += contrib
    acc = acc_ref[...]
    y_ref[0] = acc.reshape(ho, wo, acc.shape[-1]).astype(y_ref.dtype)
    ssum_ref[0] = jnp.sum(acc, axis=0, keepdims=True)
    ssq_ref[0] = jnp.sum(acc * acc, axis=0, keepdims=True)


def _conv_fusedbn_stats_kernel(yin_ref, scale_ref, shift_ref, w_ref,
                               y_ref, ssum_ref, ssq_ref, pad_ref, acc_ref, *, ho, wo):
    """Same as above, but the input is the previous conv's *raw* output: its BN+ReLU is
    applied while staging, and the pad=1 border is materialized in a VMEM scratch."""
    cpi = yin_ref.shape[-1]
    m = ho * wo
    scale = scale_ref[...].reshape(1, 1, cpi)
    shift = shift_ref[...].reshape(1, 1, cpi)
    h = jnp.maximum(yin_ref[0].astype(jnp.float32) * scale + shift, 0.0)
    pad_ref[...] = jnp.zeros_like(pad_ref)
    pad_ref[1:ho + 1, 1:wo + 1, :] = h.astype(pad_ref.dtype)
    for t in range(9):
        kh, kw = divmod(t, 3)
        xt = pad_ref[kh:kh + ho, kw:kw + wo, :].reshape(m, cpi)
        contrib = jnp.dot(xt, w_ref[t], preferred_element_type=jnp.float32)
        if t == 0:
            acc_ref[...] = contrib
        else:
            acc_ref[...] += contrib
    acc = acc_ref[...]
    y_ref[0] = acc.reshape(ho, wo, acc.shape[-1]).astype(y_ref.dtype)
    ssum_ref[0] = jnp.sum(acc, axis=0, keepdims=True)
    ssq_ref[0] = jnp.sum(acc * acc, axis=0, keepdims=True)


# ---------------------------------------------------------------------------
# Pass 2 kernels: finalize BN + residual add + ReLU
# ---------------------------------------------------------------------------
def _finalize_identity_kernel(y_ref, scale_ref, shift_ref, skip_ref, o_ref):
    cp = y_ref.shape[-1]
    out = (y_ref[0].astype(jnp.float32) * scale_ref[...].reshape(1, 1, cp)
           + shift_ref[...].reshape(1, 1, cp))
    out = out + skip_ref[0].astype(jnp.float32)
    o_ref[0] = jnp.maximum(out, 0.0).astype(o_ref.dtype)


def _finalize_bnskip_kernel(y_ref, scale_ref, shift_ref,
                            yd_ref, scale_d_ref, shift_d_ref, o_ref):
    cp = y_ref.shape[-1]
    out = (y_ref[0].astype(jnp.float32) * scale_ref[...].reshape(1, 1, cp)
           + shift_ref[...].reshape(1, 1, cp))
    skip = (yd_ref[0].astype(jnp.float32) * scale_d_ref[...].reshape(1, 1, cp)
            + shift_d_ref[...].reshape(1, 1, cp))
    skip = jnp.maximum(skip, 0.0)
    o_ref[0] = jnp.maximum(out + skip, 0.0).astype(o_ref.dtype)


# ---------------------------------------------------------------------------
# pallas_call wrappers
# ---------------------------------------------------------------------------
def _conv_pass1(xin, wf, ho, wo, taps):
    n, rows, ws, cin = xin.shape
    cp = wf.shape[-1]
    kernel = functools.partial(_conv_stats_kernel, taps=taps, ho=ho, wo=wo)
    flops = 2 * n * ho * wo * 9 * cin * cp
    bytes_accessed = (xin.size + wf.size + n * ho * wo * cp) * 2 + 2 * n * cp * 4
    return pl.pallas_call(
        kernel,
        grid=(n,),
        in_specs=[
            pl.BlockSpec((1, rows, ws, cin), lambda i: (i, 0, 0, 0)),
            # Constant-index weights: DMA'd once, resident across the grid.
            # TODO(synk): pipeline_mode=pl.Buffered(1) (or an unblocked VMEM spec) would
            #             drop the second revolving buffer for very large Cin/Cout.
            pl.BlockSpec((9, cin, cp), lambda i: (0, 0, 0)),
        ],
        out_specs=(
            pl.BlockSpec((1, ho, wo, cp), lambda i: (i, 0, 0, 0)),
            pl.BlockSpec((1, 1, cp), lambda i: (i, 0, 0)),   # per-image partial sum
            pl.BlockSpec((1, 1, cp), lambda i: (i, 0, 0)),   # per-image partial sum-sq
        ),
        out_shape=(
            jax.ShapeDtypeStruct((n, ho, wo, cp), jnp.bfloat16),
            jax.ShapeDtypeStruct((n, 1, cp), jnp.float32),
            jax.ShapeDtypeStruct((n, 1, cp), jnp.float32),
        ),
        scratch_shapes=[pltpu.VMEM((ho * wo, cp), jnp.float32)],
        compiler_params=pltpu.CompilerParams(
            dimension_semantics=("parallel",),
            vmem_limit_bytes=_vmem_limit_bytes()),
        cost_estimate=pl.CostEstimate(flops=flops, transcendentals=0,
                                      bytes_accessed=bytes_accessed),
    )(xin, wf)


def _conv_pass1_fused_bn(yin, scale, shift, wf, ho, wo):
    n, hi, wi, cpi = yin.shape
    cp = wf.shape[-1]
    kernel = functools.partial(_conv_fusedbn_stats_kernel, ho=ho, wo=wo)
    flops = 2 * n * ho * wo * 9 * cpi * cp
    bytes_accessed = (yin.size + wf.size + n * ho * wo * cp) * 2 + 2 * n * cp * 4
    return pl.pallas_call(
        kernel,
        grid=(n,),
        in_specs=[
            pl.BlockSpec((1, hi, wi, cpi), lambda i: (i, 0, 0, 0)),
            pl.BlockSpec((1, cpi), lambda i: (0, 0)),
            pl.BlockSpec((1, cpi), lambda i: (0, 0)),
            pl.BlockSpec((9, cpi, cp), lambda i: (0, 0, 0)),
        ],
        out_specs=(
            pl.BlockSpec((1, ho, wo, cp), lambda i: (i, 0, 0, 0)),
            pl.BlockSpec((1, 1, cp), lambda i: (i, 0, 0)),
            pl.BlockSpec((1, 1, cp), lambda i: (i, 0, 0)),
        ),
        out_shape=(
            jax.ShapeDtypeStruct((n, ho, wo, cp), jnp.bfloat16),
            jax.ShapeDtypeStruct((n, 1, cp), jnp.float32),
            jax.ShapeDtypeStruct((n, 1, cp), jnp.float32),
        ),
        scratch_shapes=[pltpu.VMEM((hi + 2, wi + 2, cpi), jnp.bfloat16),
                        pltpu.VMEM((ho * wo, cp), jnp.float32)],
        compiler_params=pltpu.CompilerParams(
            dimension_semantics=("parallel",),
            vmem_limit_bytes=_vmem_limit_bytes()),
        cost_estimate=pl.CostEstimate(flops=flops, transcendentals=0,
                                      bytes_accessed=bytes_accessed),
    )(yin, scale, shift, wf)


def _bn_fold(ssum, ssq, gamma, beta, count, cp):
    """Fold train-mode BN into per-channel (scale, shift) from per-image partial sums."""
    s = jnp.sum(ssum, axis=0)                 # (1, Cp)
    q = jnp.sum(ssq, axis=0)
    mean = s / count
    var = jnp.maximum(q / count - mean * mean, 0.0)
    # TODO(synk): for extreme N*H*W consider mean-subtracted / compensated partial sums;
    #             E[y^2]-mean^2 in f32 can cancel when |mean| >> std.
    cout = gamma.shape[0]
    g = jnp.pad(gamma.reshape(1, cout), ((0, 0), (0, cp - cout)))
    b = jnp.pad(beta.reshape(1, cout), ((0, 0), (0, cp - cout)))
    scale = g * jax.lax.rsqrt(var + EPS)
    shift = b - mean * scale
    return scale, shift


def _finalize(y, scale, shift, skip, *, skip_bn=None):
    n, ho, wo, cp = y.shape
    row = pl.BlockSpec((1, ho, wo, cp), lambda i: (i, 0, 0, 0))
    vec = pl.BlockSpec((1, cp), lambda i: (0, 0))
    if skip_bn is None:
        kernel = _finalize_identity_kernel
        in_specs = [row, vec, vec, row]
        args = (y, scale, shift, skip)
    else:
        scale_d, shift_d = skip_bn
        kernel = _finalize_bnskip_kernel
        in_specs = [row, vec, vec, row, vec, vec]
        args = (y, scale, shift, skip, scale_d, shift_d)
    # TODO(synk): input_output_aliases could reuse y's buffer if the block output were
    #             kept bf16; it is f32 here since this is the module boundary.
    return pl.pallas_call(
        kernel,
        grid=(n,),
        in_specs=in_specs,
        out_specs=row,
        out_shape=jax.ShapeDtypeStruct((n, ho, wo, cp), jnp.float32),
        compiler_params=pltpu.CompilerParams(
            dimension_semantics=("parallel",),
            vmem_limit_bytes=_vmem_limit_bytes()),
    )(*args)


# ---------------------------------------------------------------------------
# Block forward
# ---------------------------------------------------------------------------
def block_forward(x, params, down_sample):
    """Pallas forward of the PyTorch `Block` (NHWC activations)."""
    n, h, w, cin = x.shape
    cout = params["conv1"]["w"].shape[-1]
    cp = _round_up(cout, LANE)
    stride = 2 if down_sample else 1

    # conv1 (and the downsample conv) share the same prepped input.
    xin, (ho, wo) = _prep_conv_input(x, stride)
    taps = _tap_offsets(stride, ho)
    w1 = _prep_weights(params["conv1"]["w"], cin, cp)
    y1, s1, q1 = _conv_pass1(xin, w1, ho, wo, taps)
    count = float(n * ho * wo)
    scale1, shift1 = _bn_fold(s1, q1, params["conv1"]["gamma"],
                              params["conv1"]["beta"], count, cp)

    # conv2: conv1's BN+ReLU is fused into conv2's input staging (no extra HBM pass).
    w2 = _prep_weights(params["conv2"]["w"], cp, cp)
    y2, s2, q2 = _conv_pass1_fused_bn(y1, scale1, shift1, w2, ho, wo)
    scale2, shift2 = _bn_fold(s2, q2, params["conv2"]["gamma"],
                              params["conv2"]["beta"], count, cp)

    # Residual path + final ReLU.
    if down_sample:
        wd = _prep_weights(params["down"]["w"], cin, cp)
        yd, sd, qd = _conv_pass1(xin, wd, ho, wo, taps)
        scale_d, shift_d = _bn_fold(sd, qd, params["down"]["gamma"],
                                    params["down"]["beta"], count, cp)
        out = _finalize(y2, scale2, shift2, yd, skip_bn=(scale_d, shift_d))
    else:
        assert cin == cout, "identity skip requires in_channel == out_channel"
        skip = jnp.pad(x, ((0, 0), (0, 0), (0, 0), (0, cp - cin))).astype(jnp.bfloat16)
        out = _finalize(y2, scale2, shift2, skip)

    return out[:, :, :, :cout]


# ---------------------------------------------------------------------------
# Pure-JAX f32 reference (for correctness verification)
# ---------------------------------------------------------------------------
def _ref_conv_bn(x, params, stride, relu):
    y = jax.lax.conv_general_dilated(
        x, params["w"], window_strides=(stride, stride),
        padding=((1, 1), (1, 1)),
        dimension_numbers=("NHWC", "HWIO", "NHWC"))
    y = y + params["b"]
    mean = jnp.mean(y, axis=(0, 1, 2), keepdims=True)
    var = jnp.mean((y - mean) ** 2, axis=(0, 1, 2), keepdims=True)
    y = (y - mean) * jax.lax.rsqrt(var + EPS) * params["gamma"] + params["beta"]
    return jnp.maximum(y, 0.0) if relu else y


def _ref_block(x, params, down_sample):
    stride = 2 if down_sample else 1
    h = _ref_conv_bn(x, params["conv1"], stride, True)
    h = _ref_conv_bn(h, params["conv2"], 1, False)
    skip = _ref_conv_bn(x, params["down"], 2, True) if down_sample else x
    return jnp.maximum(h + skip, 0.0)


# ---------------------------------------------------------------------------
# Deterministic parameter init
# ---------------------------------------------------------------------------
def _init_conv_params(key, cin, cout):
    kw, kb, kg, kbe = jax.random.split(key, 4)
    fan_in = 3 * 3 * cin
    return dict(
        w=jax.random.normal(kw, (3, 3, cin, cout), jnp.float32) / jnp.sqrt(fan_in),
        b=0.1 * jax.random.normal(kb, (cout,), jnp.float32),
        gamma=1.0 + 0.1 * jax.random.normal(kg, (cout,), jnp.float32),
        beta=0.1 * jax.random.normal(kbe, (cout,), jnp.float32),
    )


def _init_block_params(key, cin, cout, down_sample):
    k1, k2, k3 = jax.random.split(key, 3)
    params = dict(
        conv1=_init_conv_params(k1, cin, cout),
        conv2=_init_conv_params(k2, cout, cout),
    )
    if down_sample:
        params["down"] = _init_conv_params(k3, cin, cout)
    return params


if __name__ == "__main__":
    root = jax.random.PRNGKey(0)
    kx1, kp1, kx2, kp2 = jax.random.split(root, 4)

    # bf16 MXU operands + bf16 intermediates -> tolerances relaxed vs. the f32 reference.
    ATOL = RTOL = 8e-2

    # Case 1: down-sampling block (in=4 -> out=8 channels, stride 2), NHWC input.
    x1 = jax.random.normal(kx1, (2, 16, 16, 4), jnp.float32)
    p1 = _init_block_params(kp1, 4, 8, down_sample=True)
    fwd1 = jax.jit(functools.partial(block_forward, down_sample=True))
    out1 = jax.block_until_ready(fwd1(x1, p1))
    ref1 = _ref_block(x1, p1, down_sample=True)
    assert out1.shape == (2, 8, 8, 8), out1.shape
    err1 = float(jnp.max(jnp.abs(out1 - ref1)))
    assert jnp.allclose(out1, ref1, atol=ATOL, rtol=RTOL), f"downsample mismatch {err1}"

    # Case 2: identity-skip block (in=out=8 channels, stride 1).
    x2 = jax.random.normal(kx2, (2, 8, 8, 8), jnp.float32)
    p2 = _init_block_params(kp2, 8, 8, down_sample=False)
    fwd2 = jax.jit(functools.partial(block_forward, down_sample=False))
    out2 = jax.block_until_ready(fwd2(x2, p2))
    ref2 = _ref_block(x2, p2, down_sample=False)
    assert out2.shape == (2, 8, 8, 8), out2.shape
    err2 = float(jnp.max(jnp.abs(out2 - ref2)))
    assert jnp.allclose(out2, ref2, atol=ATOL, rtol=RTOL), f"identity mismatch {err2}"

    print("KERNEL_OK")
</pallas_src>

<mosaic_0001>
module attributes {stable_mosaic.version = 11 : i64} {
  func.func @_conv_stats_kernel(%arg0: i32, %arg1: memref<1x36x9x4xbf16, #tpu.memory_space<vmem>>, %arg2: memref<9x4x128xbf16, #tpu.memory_space<vmem>>, %arg3: memref<1x8x8x128xbf16, #tpu.memory_space<vmem>>, %arg4: memref<1x1x128xf32, #tpu.memory_space<vmem>>, %arg5: memref<1x1x128xf32, #tpu.memory_space<vmem>>, %arg6: memref<64x128xf32, #tpu.memory_space<vmem>>) attributes {dimension_semantics = [#tpu.dimension_semantics<parallel>], iteration_bounds = array<i64: 2>, scalar_prefetch = 0 : i64, scratch_operands = 1 : i64, tpu.core_type = #tpu.core_type<tc>, window_params = [{transform_indices = @transform_0, window_bounds = array<i64: 1, 36, 9, 4>}, {pipeline_mode = #tpu.pipeline_mode<synchronous>, transform_indices = @transform_1, window_bounds = array<i64: 9, 4, 128>}, {transform_indices = @transform_2, window_bounds = array<i64: 1, 8, 8, 128>}, {transform_indices = @transform_3, window_bounds = array<i64: 1, 1, 128>}, {transform_indices = @transform_4, window_bounds = array<i64: 1, 1, 128>}]} {
    %c0 = arith.constant 0 : index
    %c0_0 = arith.constant 0 : index
    %c0_1 = arith.constant 0 : index
    %c0_2 = arith.constant 0 : index
    %0 = vector.load %arg1[%c0, %c0_0, %c0_1, %c0_2] : memref<1x36x9x4xbf16, #tpu.memory_space<vmem>>, vector<1x8x8x4xbf16>
    %1 = vector.shape_cast %0 : vector<1x8x8x4xbf16> to vector<8x8x4xbf16>
    %2 = vector.shape_cast %1 : vector<8x8x4xbf16> to vector<64x4xbf16>
    %c0_3 = arith.constant 0 : index
    %c0_4 = arith.constant 0 : index
    %c0_5 = arith.constant 0 : index
    %3 = vector.load %arg2[%c0_3, %c0_4, %c0_5] : memref<9x4x128xbf16, #tpu.memory_space<vmem>>, vector<1x4x128xbf16>
    %4 = vector.shape_cast %3 : vector<1x4x128xbf16> to vector<4x128xbf16>
    %cst = arith.constant dense<0.000000e+00> : vector<64x128xf32>
    %5 = tpu.matmul %2, %4, %cst {dimension_numbers = #tpu.dot_dimension_numbers<[1], [0], [0], [1], [0, 0, 1, 1], [], []>} : vector<64x4xbf16>, vector<4x128xbf16>, vector<64x128xf32> -> vector<64x128xf32>
    %c0_6 = arith.constant 0 : index
    %c0_7 = arith.constant 0 : index
    %6 = vector.load %arg6[%c0_6, %c0_7] : memref<64x128xf32, #tpu.memory_space<vmem>>, vector<64x128xf32>
    tpu.vector_store %arg6[%c0_6, %c0_7], %5 {strides = array<i32>} : memref<64x128xf32, #tpu.memory_space<vmem>>, vector<64x128xf32>,
    %c0_8 = arith.constant 0 : index
    %c9 = arith.constant 9 : index
    %c0_9 = arith.constant 0 : index
    %c0_10 = arith.constant 0 : index
    %7 = vector.load %arg1[%c0_8, %c9, %c0_9, %c0_10] : memref<1x36x9x4xbf16, #tpu.memory_space<vmem>>, vector<1x8x8x4xbf16>
    %8 = vector.shape_cast %7 : vector<1x8x8x4xbf16> to vector<8x8x4xbf16>
    %9 = vector.shape_cast %8 : vector<8x8x4xbf16> to vector<64x4xbf16>
    %c1 = arith.constant 1 : index
    %c0_11 = arith.constant 0 : index
    %c0_12 = arith.constant 0 : index
    %10 = vector.load %arg2[%c1, %c0_11, %c0_12] : memref<9x4x128xbf16, #tpu.memory_space<vmem>>, vector<1x4x128xbf16>
    %11 = vector.shape_cast %10 : vector<1x4x128xbf16> to vector<4x128xbf16>
    %cst_13 = arith.constant dense<0.000000e+00> : vector<64x128xf32>
    %12 = tpu.matmul %9, %11, %cst_13 {dimension_numbers = #tpu.dot_dimension_numbers<[1], [0], [0], [1], [0, 0, 1, 1], [], []>} : vector<64x4xbf16>, vector<4x128xbf16>, vector<64x128xf32> -> vector<64x128xf32>
    %c0_14 = arith.constant 0 : index
    %c0_15 = arith.constant 0 : index
    %13 = vector.load %arg6[%c0_14, %c0_15] : memref<64x128xf32, #tpu.memory_space<vmem>>, vector<64x128xf32>
    %14 = arith.addf %13, %12 : vector<64x128xf32>
    %c0_16 = arith.constant 0 : index
    %c0_17 = arith.constant 0 : index
    %15 = vector.load %arg6[%c0_16, %c0_17] : memref<64x128xf32, #tpu.memory_space<vmem>>, vector<64x128xf32>
    tpu.vector_store %arg6[%c0_16, %c0_17], %14 {strides = array<i32>} : memref<64x128xf32, #tpu.memory_space<vmem>>, vector<64x128xf32>,
    %c0_18 = arith.constant 0 : index
    %c0_19 = arith.constant 0 : index
    %c1_20 = arith.constant 1 : index
    %c0_21 = arith.constant 0 : index
    %16 = vector.load %arg1[%c0_18, %c0_19, %c1_20, %c0_21] : memref<1x36x9x4xbf16, #tpu.memory_space<vmem>>, vector<1x8x8x4xbf16>
    %17 = vector.shape_cast %16 : vector<1x8x8x4xbf16> to vector<8x8x4xbf16>
    %18 = vector.shape_cast %17 : vector<8x8x4xbf16> to vector<64x4xbf16>
    %c2 = arith.constant 2 : index
    %c0_22 = arith.constant 0 : index
    %c0_23 = arith.constant 0 : index
    %19 = vector.load %arg2[%c2, %c0_22, %c0_23] : memref<9x4x128xbf16, #tpu.memory_space<vmem>>, vector<1x4x128xbf16>
    %20 = vector.shape_cast %19 : vector<1x4x128xbf16> to vector<4x128xbf16>
    %cst_24 = arith.constant dense<0.000000e+00> : vector<64x128xf32>
    %21 = tpu.matmul %18, %20, %cst_24 {dimension_numbers = #tpu.dot_dimension_numbers<[1], [0], [0], [1], [0, 0, 1, 1], [], []>} : vector<64x4xbf16>, vector<4x128xbf16>, vector<64x128xf32> -> vector<64x128xf32>
    %c0_25 = arith.constant 0 : index
    %c0_26 = arith.constant 0 : index
    %22 = vector.load %arg6[%c0_25, %c0_26] : memref<64x128xf32, #tpu.memory_space<vmem>>, vector<64x128xf32>
    %23 = arith.addf %22, %21 : vector<64x128xf32>
    %c0_27 = arith.constant 0 : index
    %c0_28 = arith.constant 0 : index
    %24 = vector.load %arg6[%c0_27, %c0_28] : memref<64x128xf32, #tpu.memory_space<vmem>>, vector<64x128xf32>
    tpu.vector_store %arg6[%c0_27, %c0_28], %23 {strides = array<i32>} : memref<64x128xf32, #tpu.memory_space<vmem>>, vector<64x128xf32>,
    %c0_29 = arith.constant 0 : index
    %c18 = arith.constant 18 : index
    %c0_30 = arith.constant 0 : index
    %c0_31 = arith.constant 0 : index
    %25 = vector.load %arg1[%c0_29, %c18, %c0_30, %c0_31] : memref<1x36x9x4xbf16, #tpu.memory_space<vmem>>, vector<1x8x8x4xbf16>
    %26 = vector.shape_cast %25 : vector<1x8x8x4xbf16> to vector<8x8x4xbf16>
    %27 = vector.shape_cast %26 : vector<8x8x4xbf16> to vector<64x4xbf16>
    %c3 = arith.constant 3 : index
    %c0_32 = arith.constant 0 : index
    %c0_33 = arith.constant 0 : index
    %28 = vector.load %arg2[%c3, %c0_32, %c0_33] : memref<9x4x128xbf16, #tpu.memory_space<vmem>>, vector<1x4x128xbf16>
    %29 = vector.shape_cast %28 : vector<1x4x128xbf16> to vector<4x128xbf16>
    %cst_34 = arith.constant dense<0.000000e+00> : vector<64x128xf32>
    %30 = tpu.matmul %27, %29, %cst_34 {dimension_numbers = #tpu.dot_dimension_numbers<[1], [0], [0], [1], [0, 0, 1, 1], [], []>} : vector<64x4xbf16>, vector<4x128xbf16>, vector<64x128xf32> -> vector<64x128xf32>
    %c0_35 = arith.constant 0 : index
    %c0_36 = arith.constant 0 : index
    %31 = vector.load %arg6[%c0_35, %c0_36] : memref<64x128xf32, #tpu.memory_space<vmem>>, vector<64x128xf32>
    %32 = arith.addf %31, %30 : vector<64x128xf32>
    %c0_37 = arith.constant 0 : index
    %c0_38 = arith.constant 0 : index
    %33 = vector.load %arg6[%c0_37, %c0_38] : memref<64x128xf32, #tpu.memory_space<vmem>>, vector<64x128xf32>
    tpu.vector_store %arg6[%c0_37, %c0_38], %32 {strides = array<i32>} : memref<64x128xf32, #tpu.memory_space<vmem>>, vector<64x128xf32>,
    %c0_39 = arith.constant 0 : index
    %c27 = arith.constant 27 : index
    %c0_40 = arith.constant 0 : index
    %c0_41 = arith.constant 0 : index
    %34 = vector.load %arg1[%c0_39, %c27, %c0_40, %c0_41] : memref<1x36x9x4xbf16, #tpu.memory_space<vmem>>, vector<1x8x8x4xbf16>
    %35 = vector.shape_cast %34 : vector<1x8x8x4xbf16> to vector<8x8x4xbf16>
    %36 = vector.shape_cast %35 : vector<8x8x4xbf16> to vector<64x4xbf16>
    %c4 = arith.constant 4 : index
    %c0_42 = arith.constant 0 : index
    %c0_43 = arith.constant 0 : index
    %37 = vector.load %arg2[%c4, %c0_42, %c0_43] : memref<9x4x128xbf16, #tpu.memory_space<vmem>>, vector<1x4x128xbf16>
    %38 = vector.shape_cast %37 : vector<1x4x128xbf16> to vector<4x128xbf16>
    %cst_44 = arith.constant dense<0.000000e+00> : vector<64x128xf32>
    %39 = tpu.matmul %36, %38, %cst_44 {dimension_numbers = #tpu.dot_dimension_numbers<[1], [0], [0], [1], [0, 0, 1, 1], [], []>} : vector<64x4xbf16>, vector<4x128xbf16>, vector<64x128xf32> -> vector<64x128xf32>
    %c0_45 = arith.constant 0 : index
    %c0_46 = arith.constant 0 : index
    %40 = vector.load %arg6[%c0_45, %c0_46] : memref<64x128xf32, #tpu.memory_space<vmem>>, vector<64x128xf32>
    %41 = arith.addf %40, %39 : vector<64x128xf32>
    %c0_47 = arith.constant 0 : index
    %c0_48 = arith.constant 0 : index
    %42 = vector.load %arg6[%c0_47, %c0_48] : memref<64x128xf32, #tpu.memory_space<vmem>>, vector<64x128xf32>
    tpu.vector_store %arg6[%c0_47, %c0_48], %41 {strides = array<i32>} : memref<64x128xf32, #tpu.memory_space<vmem>>, vector<64x128xf32>,
    %c0_49 = arith.constant 0 : index
    %c18_50 = arith.constant 18 : index
    %c1_51 = arith.constant 1 : index
    %c0_52 = arith.constant 0 : index
    %43 = vector.load %arg1[%c0_49, %c18_50, %c1_51, %c0_52] : memref<1x36x9x4xbf16, #tpu.memory_space<vmem>>, vector<1x8x8x4xbf16>
    %44 = vector.shape_cast %43 : vector<1x8x8x4xbf16> to vector<8x8x4xbf16>
    %45 = vector.shape_cast %44 : vector<8x8x4xbf16> to vector<64x4xbf16>
    %c5 = arith.constant 5 : index
    %c0_53 = arith.constant 0 : index
    %c0_54 = arith.constant 0 : index
    %46 = vector.load %arg2[%c5, %c0_53, %c0_54] : memref<9x4x128xbf16, #tpu.memory_space<vmem>>, vector<1x4x128xbf16>
    %47 = vector.shape_cast %46 : vector<1x4x128xbf16> to vector<4x128xbf16>
    %cst_55 = arith.constant dense<0.000000e+00> : vector<64x128xf32>
    %48 = tpu.matmul %45, %47, %cst_55 {dimension_numbers = #tpu.dot_dimension_numbers<[1], [0], [0], [1], [0, 0, 1, 1], [], []>} : vector<64x4xbf16>, vector<4x128xbf16>, vector<64x128xf32> -> vector<64x128xf32>
    %c0_56 = arith.constant 0 : index
    %c0_57 = arith.constant 0 : index
    %49 = vector.load %arg6[%c0_56, %c0_57] : memref<64x128xf32, #tpu.memory_space<vmem>>, vector<64x128xf32>
    %50 = arith.addf %49, %48 : vector<64x128xf32>
    %c0_58 = arith.constant 0 : index
    %c0_59 = arith.constant 0 : index
    %51 = vector.load %arg6[%c0_58, %c0_59] : memref<64x128xf32, #tpu.memory_space<vmem>>, vector<64x128xf32>
    tpu.vector_store %arg6[%c0_58, %c0_59], %50 {strides = array<i32>} : memref<64x128xf32, #tpu.memory_space<vmem>>, vector<64x128xf32>,
    %c0_60 = arith.constant 0 : index
    %c1_61 = arith.constant 1 : index
    %c0_62 = arith.constant 0 : index
    %c0_63 = arith.constant 0 : index
    %52 = vector.load %arg1[%c0_60, %c1_61, %c0_62, %c0_63] : memref<1x36x9x4xbf16, #tpu.memory_space<vmem>>, vector<1x8x8x4xbf16>
    %53 = vector.shape_cast %52 : vector<1x8x8x4xbf16> to vector<8x8x4xbf16>
    %54 = vector.shape_cast %53 : vector<8x8x4xbf16> to vector<64x4xbf16>
    %c6 = arith.constant 6 : index
    %c0_64 = arith.constant 0 : index
    %c0_65 = arith.constant 0 : index
    %55 = vector.load %arg2[%c6, %c0_64, %c0_65] : memref<9x4x128xbf16, #tpu.memory_space<vmem>>, vector<1x4x128xbf16>
    %56 = vector.shape_cast %55 : vector<1x4x128xbf16> to vector<4x128xbf16>
    %cst_66 = arith.constant dense<0.000000e+00> : vector<64x128xf32>
    %57 = tpu.matmul %54, %56, %cst_66 {dimension_numbers = #tpu.dot_dimension_numbers<[1], [0], [0], [1], [0, 0, 1, 1], [], []>} : vector<64x4xbf16>, vector<4x128xbf16>, vector<64x128xf32> -> vector<64x128xf32>
    %c0_67 = arith.constant 0 : index
    %c0_68 = arith.constant 0 : index
    %58 = vector.load %arg6[%c0_67, %c0_68] : memref<64x128xf32, #tpu.memory_space<vmem>>, vector<64x128xf32>
    %59 = arith.addf %58, %57 : vector<64x128xf32>
    %c0_69 = arith.constant 0 : index
    %c0_70 = arith.constant 0 : index
    %60 = vector.load %arg6[%c0_69, %c0_70] : memref<64x128xf32, #tpu.memory_space<vmem>>, vector<64x128xf32>
    tpu.vector_store %arg6[%c0_69, %c0_70], %59 {strides = array<i32>} : memref<64x128xf32, #tpu.memory_space<vmem>>, vector<64x128xf32>,
    %c0_71 = arith.constant 0 : index
    %c10 = arith.constant 10 : index
    %c0_72 = arith.constant 0 : index
    %c0_73 = arith.constant 0 : index
    %61 = vector.load %arg1[%c0_71, %c10, %c0_72, %c0_73] : memref<1x36x9x4xbf16, #tpu.memory_space<vmem>>, vector<1x8x8x4xbf16>
    %62 = vector.shape_cast %61 : vector<1x8x8x4xbf16> to vector<8x8x4xbf16>
    %63 = vector.shape_cast %62 : vector<8x8x4xbf16> to vector<64x4xbf16>
    %c7 = arith.constant 7 : index
    %c0_74 = arith.constant 0 : index
    %c0_75 = arith.constant 0 : index
    %64 = vector.load %arg2[%c7, %c0_74, %c0_75] : memref<9x4x128xbf16, #tpu.memory_space<vmem>>, vector<1x4x128xbf16>
    %65 = vector.shape_cast %64 : vector<1x4x128xbf16> to vector<4x128xbf16>
    %cst_76 = arith.constant dense<0.000000e+00> : vector<64x128xf32>
    %66 = tpu.matmul %63, %65, %cst_76 {dimension_numbers = #tpu.dot_dimension_numbers<[1], [0], [0], [1], [0, 0, 1, 1], [], []>} : vector<64x4xbf16>, vector<4x128xbf16>, vector<64x128xf32> -> vector<64x128xf32>
    %c0_77 = arith.constant 0 : index
    %c0_78 = arith.constant 0 : index
    %67 = vector.load %arg6[%c0_77, %c0_78] : memref<64x128xf32, #tpu.memory_space<vmem>>, vector<64x128xf32>
    %68 = arith.addf %67, %66 : vector<64x128xf32>
    %c0_79 = arith.constant 0 : index
    %c0_80 = arith.constant 0 : index
    %69 = vector.load %arg6[%c0_79, %c0_80] : memref<64x128xf32, #tpu.memory_space<vmem>>, vector<64x128xf32>
    tpu.vector_store %arg6[%c0_79, %c0_80], %68 {strides = array<i32>} : memref<64x128xf32, #tpu.memory_space<vmem>>, vector<64x128xf32>,
    %c0_81 = arith.constant 0 : index
    %c1_82 = arith.constant 1 : index
    %c1_83 = arith.constant 1 : index
    %c0_84 = arith.constant 0 : index
    %70 = vector.load %arg1[%c0_81, %c1_82, %c1_83, %c0_84] : memref<1x36x9x4xbf16, #tpu.memory_space<vmem>>, vector<1x8x8x4xbf16>
    %71 = vector.shape_cast %70 : vector<1x8x8x4xbf16> to vector<8x8x4xbf16>
    %72 = vector.shape_cast %71 : vector<8x8x4xbf16> to vector<64x4xbf16>
    %c8 = arith.constant 8 : index
    %c0_85 = arith.constant 0 : index
    %c0_86 = arith.constant 0 : index
    %73 = vector.load %arg2[%c8, %c0_85, %c0_86] : memref<9x4x128xbf16, #tpu.memory_space<vmem>>, vector<1x4x128xbf16>
    %74 = vector.shape_cast %73 : vector<1x4x128xbf16> to vector<4x128xbf16>
    %cst_87 = arith.constant dense<0.000000e+00> : vector<64x128xf32>
    %75 = tpu.matmul %72, %74, %cst_87 {dimension_numbers = #tpu.dot_dimension_numbers<[1], [0], [0], [1], [0, 0, 1, 1], [], []>} : vector<64x4xbf16>, vector<4x128xbf16>, vector<64x128xf32> -> vector<64x128xf32>
    %c0_88 = arith.constant 0 : index
    %c0_89 = arith.constant 0 : index
    %76 = vector.load %arg6[%c0_88, %c0_89] : memref<64x128xf32, #tpu.memory_space<vmem>>, vector<64x128xf32>
    %77 = arith.addf %76, %75 : vector<64x128xf32>
    %c0_90 = arith.constant 0 : index
    %c0_91 = arith.constant 0 : index
    %78 = vector.load %arg6[%c0_90, %c0_91] : memref<64x128xf32, #tpu.memory_space<vmem>>, vector<64x128xf32>
    tpu.vector_store %arg6[%c0_90, %c0_91], %77 {strides = array<i32>} : memref<64x128xf32, #tpu.memory_space<vmem>>, vector<64x128xf32>,
    %c0_92 = arith.constant 0 : index
    %c0_93 = arith.constant 0 : index
    %79 = vector.load %arg6[%c0_92, %c0_93] : memref<64x128xf32, #tpu.memory_space<vmem>>, vector<64x128xf32>
    %80 = vector.shape_cast %79 : vector<64x128xf32> to vector<8x8x128xf32>
    %81 = arith.truncf %80 : vector<8x8x128xf32> to vector<8x8x128xbf16>
    %c0_94 = arith.constant 0 : index
    %c0_95 = arith.constant 0 : index
    %c0_96 = arith.constant 0 : index
    %c0_97 = arith.constant 0 : index
    %82 = vector.load %arg3[%c0_94, %c0_95, %c0_96, %c0_97] : memref<1x8x8x128xbf16, #tpu.memory_space<vmem>>, vector<1x8x8x128xbf16>
    %83 = vector.shape_cast %82 : vector<1x8x8x128xbf16> to vector<8x8x128xbf16>
    %84 = vector.shape_cast %81 : vector<8x8x128xbf16> to vector<1x8x8x128xbf16>
    tpu.vector_store %arg3[%c0_94, %c0_95, %c0_96, %c0_97], %84 {strides = array<i32>} : memref<1x8x8x128xbf16, #tpu.memory_space<vmem>>, vector<1x8x8x128xbf16>,
    %cst_98 = arith.constant dense<0.000000e+00> : vector<128xf32>
    %85 = vector.multi_reduction <add>, %79, %cst_98 [0] : vector<64x128xf32> to vector<128xf32>
    %86 = vector.shape_cast %85 : vector<128xf32> to vector<1x128xf32>
    %c0_99 = arith.constant 0 : index
    %c0_100 = arith.constant 0 : index
    %c0_101 = arith.constant 0 : index
    %87 = vector.load %arg4[%c0_99, %c0_100, %c0_101] : memref<1x1x128xf32, #tpu.memory_space<vmem>>, vector<1x1x128xf32>
    %88 = vector.shape_cast %87 : vector<1x1x128xf32> to vector<1x128xf32>
    %89 = vector.shape_cast %86 : vector<1x128xf32> to vector<1x1x128xf32>
    tpu.vector_store %arg4[%c0_99, %c0_100, %c0_101], %89 {strides = array<i32>} : memref<1x1x128xf32, #tpu.memory_space<vmem>>, vector<1x1x128xf32>,
    %90 = arith.mulf %79, %79 : vector<64x128xf32>
    %cst_102 = arith.constant dense<0.000000e+00> : vector<128xf32>
    %91 = vector.multi_reduction <add>, %90, %cst_102 [0] : vector<64x128xf32> to vector<128xf32>
    %92 = vector.shape_cast %91 : vector<128xf32> to vector<1x128xf32>
    %c0_103 = arith.constant 0 : index
    %c0_104 = arith.constant 0 : index
    %c0_105 = arith.constant 0 : index
    %93 = vector.load %arg5[%c0_103, %c0_104, %c0_105] : memref<1x1x128xf32, #tpu.memory_space<vmem>>, vector<1x1x128xf32>
    %94 = vector.shape_cast %93 : vector<1x1x128xf32> to vector<1x128xf32>
    %95 = vector.shape_cast %92 : vector<1x128xf32> to vector<1x1x128xf32>
    tpu.vector_store %arg5[%c0_103, %c0_104, %c0_105], %95 {strides = array<i32>} : memref<1x1x128xf32, #tpu.memory_space<vmem>>, vector<1x1x128xf32>,
    return
  }
  func.func @transform_0(%arg0: i32) -> (i32, i32, i32, i32) {
    %c0_i32 = arith.constant 0 : i32
    %c0_i32_0 = arith.constant 0 : i32
    %c0_i32_1 = arith.constant 0 : i32
    %c0_i32_2 = arith.constant 0 : i32
    return %arg0, %c0_i32, %c0_i32_0, %c0_i32_1 : i32, i32, i32, i32
  }
  func.func @transform_1(%arg0: i32) -> (i32, i32, i32) {
    %c0_i32 = arith.constant 0 : i32
    %c0_i32_0 = arith.constant 0 : i32
    %c0_i32_1 = arith.constant 0 : i32
    %c0_i32_2 = arith.constant 0 : i32
    return %c0_i32, %c0_i32_0, %c0_i32_1 : i32, i32, i32
  }
  func.func @transform_2(%arg0: i32) -> (i32, i32, i32, i32) {
    %c0_i32 = arith.constant 0 : i32
    %c0_i32_0 = arith.constant 0 : i32
    %c0_i32_1 = arith.constant 0 : i32
    %c0_i32_2 = arith.constant 0 : i32
    return %arg0, %c0_i32, %c0_i32_0, %c0_i32_1 : i32, i32, i32, i32
  }
  func.func @transform_3(%arg0: i32) -> (i32, i32, i32) {
    %c0_i32 = arith.constant 0 : i32
    %c0_i32_0 = arith.constant 0 : i32
    %c0_i32_1 = arith.constant 0 : i32
    return %arg0, %c0_i32, %c0_i32_0 : i32, i32, i32
  }
  func.func @transform_4(%arg0: i32) -> (i32, i32, i32) {
    %c0_i32 = arith.constant 0 : i32
    %c0_i32_0 = arith.constant 0 : i32
    %c0_i32_1 = arith.constant 0 : i32
    return %arg0, %c0_i32, %c0_i32_0 : i32, i32, i32
  }
}

module attributes {stable_mosaic.version = 11 : i64} {
  func.func @_conv_fusedbn_stats_kernel(%arg0: i32, %arg1: memref<1x8x8x128xbf16, #tpu.memory_space<vmem>>, %arg2: memref<1x128xf32, #tpu.memory_space<vmem>>, %arg3: memref<1x128xf32, #tpu.memory_space<vmem>>, %arg4: memref<9x128x128xbf16, #tpu.memory_space<vmem>>, %arg5: memref<1x8x8x128xbf16, #tpu.memory_space<vmem>>, %arg6: memref<1x1x128xf32, #tpu.memory_space<vmem>>, %arg7: memref<1x1x128xf32, #tpu.memory_space<vmem>>, %arg8: memref<10x10x128xbf16, #tpu.memory_space<vmem>>, %arg9: memref<64x128xf32, #tpu.memory_space<vmem>>) attributes {dimension_semantics = [#tpu.dimension_semantics<parallel>], iteration_bounds = array<i64: 2>, scalar_prefetch = 0 : i64, scratch_operands = 2 : i64, tpu.core_type = #tpu.core_type<tc>, window_params = [{transform_indices = @transform_0, window_bounds = array<i64: 1, 8, 8, 128>}, {pipeline_mode = #tpu.pipeline_mode<synchronous>, transform_indices = @transform_1, window_bounds = array<i64: 1, 128>}, {pipeline_mode = #tpu.pipeline_mode<synchronous>, transform_indices = @transform_2, window_bounds = array<i64: 1, 128>}, {pipeline_mode = #tpu.pipeline_mode<synchronous>, transform_indices = @transform_3, window_bounds = array<i64: 9, 128, 128>}, {transform_indices = @transform_4, window_bounds = array<i64: 1, 8, 8, 128>}, {transform_indices = @transform_5, window_bounds = array<i64: 1, 1, 128>}, {transform_indices = @transform_6, window_bounds = array<i64: 1, 1, 128>}]} {
    %c0 = arith.constant 0 : index
    %c0_0 = arith.constant 0 : index
    %0 = vector.load %arg2[%c0, %c0_0] : memref<1x128xf32, #tpu.memory_space<vmem>>, vector<1x128xf32>
    %1 = vector.shape_cast %0 : vector<1x128xf32> to vector<1x1x128xf32>
    %c0_1 = arith.constant 0 : index
    %c0_2 = arith.constant 0 : index
    %2 = vector.load %arg3[%c0_1, %c0_2] : memref<1x128xf32, #tpu.memory_space<vmem>>, vector<1x128xf32>
    %3 = vector.shape_cast %2 : vector<1x128xf32> to vector<1x1x128xf32>
    %c0_3 = arith.constant 0 : index
    %c0_4 = arith.constant 0 : index
    %c0_5 = arith.constant 0 : index
    %c0_6 = arith.constant 0 : index
    %4 = vector.load %arg1[%c0_3, %c0_4, %c0_5, %c0_6] : memref<1x8x8x128xbf16, #tpu.memory_space<vmem>>, vector<1x8x8x128xbf16>
    %5 = vector.shape_cast %4 : vector<1x8x8x128xbf16> to vector<8x8x128xbf16>
    %6 = arith.extf %5 : vector<8x8x128xbf16> to vector<8x8x128xf32>
    %7 = vector.broadcast %1 : vector<1x1x128xf32> to vector<8x8x128xf32>
    %8 = arith.mulf %6, %7 : vector<8x8x128xf32>
    %9 = vector.broadcast %3 : vector<1x1x128xf32> to vector<8x8x128xf32>
    %10 = arith.addf %8, %9 : vector<8x8x128xf32>
    %cst = arith.constant 0.000000e+00 : f32
    %11 = vector.broadcast %cst : f32 to vector<8x8x128xf32>
    %12 = arith.maximumf %10, %11 : vector<8x8x128xf32>
    %cst_7 = arith.constant 0.000000e+00 : bf16
    %13 = vector.broadcast %cst_7 : bf16 to vector<10x10x128xbf16>
    %c0_8 = arith.constant 0 : index
    %c0_9 = arith.constant 0 : index
    %c0_10 = arith.constant 0 : index
    %14 = vector.load %arg8[%c0_8, %c0_9, %c0_10] : memref<10x10x128xbf16, #tpu.memory_space<vmem>>, vector<10x10x128xbf16>
    tpu.vector_store %arg8[%c0_8, %c0_9, %c0_10], %13 {strides = array<i32>} : memref<10x10x128xbf16, #tpu.memory_space<vmem>>, vector<10x10x128xbf16>,
    %15 = arith.truncf %12 : vector<8x8x128xf32> to vector<8x8x128xbf16>
    %c1 = arith.constant 1 : index
    %c1_11 = arith.constant 1 : index
    %c0_12 = arith.constant 0 : index
    %16 = vector.load %arg8[%c1, %c1_11, %c0_12] : memref<10x10x128xbf16, #tpu.memory_space<vmem>>, vector<8x8x128xbf16>
    tpu.vector_store %arg8[%c1, %c1_11, %c0_12], %15 {strides = array<i32>} : memref<10x10x128xbf16, #tpu.memory_space<vmem>>, vector<8x8x128xbf16>,
    %c0_13 = arith.constant 0 : index
    %c0_14 = arith.constant 0 : index
    %c0_15 = arith.constant 0 : index
    %17 = vector.load %arg8[%c0_13, %c0_14, %c0_15] : memref<10x10x128xbf16, #tpu.memory_space<vmem>>, vector<8x8x128xbf16>
    %18 = vector.shape_cast %17 : vector<8x8x128xbf16> to vector<64x128xbf16>
    %c0_16 = arith.constant 0 : index
    %c0_17 = arith.constant 0 : index
    %c0_18 = arith.constant 0 : index
    %19 = vector.load %arg4[%c0_16, %c0_17, %c0_18] : memref<9x128x128xbf16, #tpu.memory_space<vmem>>, vector<1x128x128xbf16>
    %20 = vector.shape_cast %19 : vector<1x128x128xbf16> to vector<128x128xbf16>
    %cst_19 = arith.constant dense<0.000000e+00> : vector<64x128xf32>
    %21 = tpu.matmul %18, %20, %cst_19 {dimension_numbers = #tpu.dot_dimension_numbers<[1], [0], [0], [1], [0, 0, 1, 1], [], []>} : vector<64x128xbf16>, vector<128x128xbf16>, vector<64x128xf32> -> vector<64x128xf32>
    %c0_20 = arith.constant 0 : index
    %c0_21 = arith.constant 0 : index
    %22 = vector.load %arg9[%c0_20, %c0_21] : memref<64x128xf32, #tpu.memory_space<vmem>>, vector<64x128xf32>
    tpu.vector_store %arg9[%c0_20, %c0_21], %21 {strides = array<i32>} : memref<64x128xf32, #tpu.memory_space<vmem>>, vector<64x128xf32>,
    %c0_22 = arith.constant 0 : index
    %c1_23 = arith.constant 1 : index
    %c0_24 = arith.constant 0 : index
    %23 = vector.load %arg8[%c0_22, %c1_23, %c0_24] : memref<10x10x128xbf16, #tpu.memory_space<vmem>>, vector<8x8x128xbf16>
    %24 = vector.shape_cast %23 : vector<8x8x128xbf16> to vector<64x128xbf16>
    %c1_25 = arith.constant 1 : index
    %c0_26 = arith.constant 0 : index
    %c0_27 = arith.constant 0 : index
    %25 = vector.load %arg4[%c1_25, %c0_26, %c0_27] : memref<9x128x128xbf16, #tpu.memory_space<vmem>>, vector<1x128x128xbf16>
    %26 = vector.shape_cast %25 : vector<1x128x128xbf16> to vector<128x128xbf16>
    %cst_28 = arith.constant dense<0.000000e+00> : vector<64x128xf32>
    %27 = tpu.matmul %24, %26, %cst_28 {dimension_numbers = #tpu.dot_dimension_numbers<[1], [0], [0], [1], [0, 0, 1, 1], [], []>} : vector<64x128xbf16>, vector<128x128xbf16>, vector<64x128xf32> -> vector<64x128xf32>
    %c0_29 = arith.constant 0 : index
    %c0_30 = arith.constant 0 : index
    %28 = vector.load %arg9[%c0_29, %c0_30] : memref<64x128xf32, #tpu.memory_space<vmem>>, vector<64x128xf32>
    %29 = arith.addf %28, %27 : vector<64x128xf32>
    %c0_31 = arith.constant 0 : index
    %c0_32 = arith.constant 0 : index
    %30 = vector.load %arg9[%c0_31, %c0_32] : memref<64x128xf32, #tpu.memory_space<vmem>>, vector<64x128xf32>
    tpu.vector_store %arg9[%c0_31, %c0_32], %29 {strides = array<i32>} : memref<64x128xf32, #tpu.memory_space<vmem>>, vector<64x128xf32>,
    %c0_33 = arith.constant 0 : index
    %c2 = arith.constant 2 : index
    %c0_34 = arith.constant 0 : index
    %31 = vector.load %arg8[%c0_33, %c2, %c0_34] : memref<10x10x128xbf16, #tpu.memory_space<vmem>>, vector<8x8x128xbf16>
    %32 = vector.shape_cast %31 : vector<8x8x128xbf16> to vector<64x128xbf16>
    %c2_35 = arith.constant 2 : index
    %c0_36 = arith.constant 0 : index
    %c0_37 = arith.constant 0 : index
    %33 = vector.load %arg4[%c2_35, %c0_36, %c0_37] : memref<9x128x128xbf16, #tpu.memory_space<vmem>>, vector<1x128x128xbf16>
    %34 = vector.shape_cast %33 : vector<1x128x128xbf16> to vector<128x128xbf16>
    %cst_38 = arith.constant dense<0.000000e+00> : vector<64x128xf32>
    %35 = tpu.matmul %32, %34, %cst_38 {dimension_numbers = #tpu.dot_dimension_numbers<[1], [0], [0], [1], [0, 0, 1, 1], [], []>} : vector<64x128xbf16>, vector<128x128xbf16>, vector<64x128xf32> -> vector<64x128xf32>
    %c0_39 = arith.constant 0 : index
    %c0_40 = arith.constant 0 : index
    %36 = vector.load %arg9[%c0_39, %c0_40] : memref<64x128xf32, #tpu.memory_space<vmem>>, vector<64x128xf32>
    %37 = arith.addf %36, %35 : vector<64x128xf32>
    %c0_41 = arith.constant 0 : index
    %c0_42 = arith.constant 0 : index
    %38 = vector.load %arg9[%c0_41, %c0_42] : memref<64x128xf32, #tpu.memory_space<vmem>>, vector<64x128xf32>
    tpu.vector_store %arg9[%c0_41, %c0_42], %37 {strides = array<i32>} : memref<64x128xf32, #tpu.memory_space<vmem>>, vector<64x128xf32>,
    %c1_43 = arith.constant 1 : index
    %c0_44 = arith.constant 0 : index
    %c0_45 = arith.constant 0 : index
    %39 = vector.load %arg8[%c1_43, %c0_44, %c0_45] : memref<10x10x128xbf16, #tpu.memory_space<vmem>>, vector<8x8x128xbf16>
    %40 = vector.shape_cast %39 : vector<8x8x128xbf16> to vector<64x128xbf16>
    %c3 = arith.constant 3 : index
    %c0_46 = arith.constant 0 : index
    %c0_47 = arith.constant 0 : index
    %41 = vector.load %arg4[%c3, %c0_46, %c0_47] : memref<9x128x128xbf16, #tpu.memory_space<vmem>>, vector<1x128x128xbf16>
    %42 = vector.shape_cast %41 : vector<1x128x128xbf16> to vector<128x128xbf16>
    %cst_48 = arith.constant dense<0.000000e+00> : vector<64x128xf32>
    %43 = tpu.matmul %40, %42, %cst_48 {dimension_numbers = #tpu.dot_dimension_numbers<[1], [0], [0], [1], [0, 0, 1, 1], [], []>} : vector<64x128xbf16>, vector<128x128xbf16>, vector<64x128xf32> -> vector<64x128xf32>
    %c0_49 = arith.constant 0 : index
    %c0_50 = arith.constant 0 : index
    %44 = vector.load %arg9[%c0_49, %c0_50] : memref<64x128xf32, #tpu.memory_space<vmem>>, vector<64x128xf32>
    %45 = arith.addf %44, %43 : vector<64x128xf32>
    %c0_51 = arith.constant 0 : index
    %c0_52 = arith.constant 0 : index
    %46 = vector.load %arg9[%c0_51, %c0_52] : memref<64x128xf32, #tpu.memory_space<vmem>>, vector<64x128xf32>
    tpu.vector_store %arg9[%c0_51, %c0_52], %45 {strides = array<i32>} : memref<64x128xf32, #tpu.memory_space<vmem>>, vector<64x128xf32>,
    %c1_53 = arith.constant 1 : index
    %c1_54 = arith.constant 1 : index
    %c0_55 = arith.constant 0 : index
    %47 = vector.load %arg8[%c1_53, %c1_54, %c0_55] : memref<10x10x128xbf16, #tpu.memory_space<vmem>>, vector<8x8x128xbf16>
    %48 = vector.shape_cast %47 : vector<8x8x128xbf16> to vector<64x128xbf16>
    %c4 = arith.constant 4 : index
    %c0_56 = arith.constant 0 : index
    %c0_57 = arith.constant 0 : index
    %49 = vector.load %arg4[%c4, %c0_56, %c0_57] : memref<9x128x128xbf16, #tpu.memory_space<vmem>>, vector<1x128x128xbf16>
    %50 = vector.shape_cast %49 : vector<1x128x128xbf16> to vector<128x128xbf16>
    %cst_58 = arith.constant dense<0.000000e+00> : vector<64x128xf32>
    %51 = tpu.matmul %48, %50, %cst_58 {dimension_numbers = #tpu.dot_dimension_numbers<[1], [0], [0], [1], [0, 0, 1, 1], [], []>} : vector<64x128xbf16>, vector<128x128xbf16>, vector<64x128xf32> -> vector<64x128xf32>
    %c0_59 = arith.constant 0 : index
    %c0_60 = arith.constant 0 : index
    %52 = vector.load %arg9[%c0_59, %c0_60] : memref<64x128xf32, #tpu.memory_space<vmem>>, vector<64x128xf32>
    %53 = arith.addf %52, %51 : vector<64x128xf32>
    %c0_61 = arith.constant 0 : index
    %c0_62 = arith.constant 0 : index
    %54 = vector.load %arg9[%c0_61, %c0_62] : memref<64x128xf32, #tpu.memory_space<vmem>>, vector<64x128xf32>
    tpu.vector_store %arg9[%c0_61, %c0_62], %53 {strides = array<i32>} : memref<64x128xf32, #tpu.memory_space<vmem>>, vector<64x128xf32>,
    %c1_63 = arith.constant 1 : index
    %c2_64 = arith.constant 2 : index
    %c0_65 = arith.constant 0 : index
    %55 = vector.load %arg8[%c1_63, %c2_64, %c0_65] : memref<10x10x128xbf16, #tpu.memory_space<vmem>>, vector<8x8x128xbf16>
    %56 = vector.shape_cast %55 : vector<8x8x128xbf16> to vector<64x128xbf16>
    %c5 = arith.constant 5 : index
    %c0_66 = arith.constant 0 : index
    %c0_67 = arith.constant 0 : index
    %57 = vector.load %arg4[%c5, %c0_66, %c0_67] : memref<9x128x128xbf16, #tpu.memory_space<vmem>>, vector<1x128x128xbf16>
    %58 = vector.shape_cast %57 : vector<1x128x128xbf16> to vector<128x128xbf16>
    %cst_68 = arith.constant dense<0.000000e+00> : vector<64x128xf32>
    %59 = tpu.matmul %56, %58, %cst_68 {dimension_numbers = #tpu.dot_dimension_numbers<[1], [0], [0], [1], [0, 0, 1, 1], [], []>} : vector<64x128xbf16>, vector<128x128xbf16>, vector<64x128xf32> -> vector<64x128xf32>
    %c0_69 = arith.constant 0 : index
    %c0_70 = arith.constant 0 : index
    %60 = vector.load %arg9[%c0_69, %c0_70] : memref<64x128xf32, #tpu.memory_space<vmem>>, vector<64x128xf32>
    %61 = arith.addf %60, %59 : vector<64x128xf32>
    %c0_71 = arith.constant 0 : index
    %c0_72 = arith.constant 0 : index
    %62 = vector.load %arg9[%c0_71, %c0_72] : memref<64x128xf32, #tpu.memory_space<vmem>>, vector<64x128xf32>
    tpu.vector_store %arg9[%c0_71, %c0_72], %61 {strides = array<i32>} : memref<64x128xf32, #tpu.memory_space<vmem>>, vector<64x128xf32>,
    %c2_73 = arith.constant 2 : index
    %c0_74 = arith.constant 0 : index
    %c0_75 = arith.constant 0 : index
    %63 = vector.load %arg8[%c2_73, %c0_74, %c0_75] : memref<10x10x128xbf16, #tpu.memory_space<vmem>>, vector<8x8x128xbf16>
    %64 = vector.shape_cast %63 : vector<8x8x128xbf16> to vector<64x128xbf16>
    %c6 = arith.constant 6 : index
    %c0_76 = arith.constant 0 : index
    %c0_77 = arith.constant 0 : index
    %65 = vector.load %arg4[%c6, %c0_76, %c0_77] : memref<9x128x128xbf16, #tpu.memory_space<vmem>>, vector<1x128x128xbf16>
    %66 = vector.shape_cast %65 : vector<1x128x128xbf16> to vector<128x128xbf16>
    %cst_78 = arith.constant dense<0.000000e+00> : vector<64x128xf32>
    %67 = tpu.matmul %64, %66, %cst_78 {dimension_numbers = #tpu.dot_dimension_numbers<[1], [0], [0], [1], [0, 0, 1, 1], [], []>} : vector<64x128xbf16>, vector<128x128xbf16>, vector<64x128xf32> -> vector<64x128xf32>
    %c0_79 = arith.constant 0 : index
    %c0_80 = arith.constant 0 : index
    %68 = vector.load %arg9[%c0_79, %c0_80] : memref<64x128xf32, #tpu.memory_space<vmem>>, vector<64x128xf32>
    %69 = arith.addf %68, %67 : vector<64x128xf32>
    %c0_81 = arith.constant 0 : index
    %c0_82 = arith.constant 0 : index
    %70 = vector.load %arg9[%c0_81, %c0_82] : memref<64x128xf32, #tpu.memory_space<vmem>>, vector<64x128xf32>
    tpu.vector_store %arg9[%c0_81, %c0_82], %69 {strides = array<i32>} : memref<64x128xf32, #tpu.memory_space<vmem>>, vector<64x128xf32>,
    %c2_83 = arith.constant 2 : index
    %c1_84 = arith.constant 1 : index
    %c0_85 = arith.constant 0 : index
    %71 = vector.load %arg8[%c2_83, %c1_84, %c0_85] : memref<10x10x128xbf16, #tpu.memory_space<vmem>>, vector<8x8x128xbf16>
    %72 = vector.shape_cast %71 : vector<8x8x128xbf16> to vector<64x128xbf16>
    %c7 = arith.constant 7 : index
    %c0_86 = arith.constant 0 : index
    %c0_87 = arith.constant 0 : index
    %73 = vector.load %arg4[%c7, %c0_86, %c0_87] : memref<9x128x128xbf16, #tpu.memory_space<vmem>>, vector<1x128x128xbf16>
    %74 = vector.shape_cast %73 : vector<1x128x128xbf16> to vector<128x128xbf16>
    %cst_88 = arith.constant dense<0.000000e+00> : vector<64x128xf32>
    %75 = tpu.matmul %72, %74, %cst_88 {dimension_numbers = #tpu.dot_dimension_numbers<[1], [0], [0], [1], [0, 0, 1, 1], [], []>} : vector<64x128xbf16>, vector<128x128xbf16>, vector<64x128xf32> -> vector<64x128xf32>
    %c0_89 = arith.constant 0 : index
    %c0_90 = arith.constant 0 : index
    %76 = vector.load %arg9[%c0_89, %c0_90] : memref<64x128xf32, #tpu.memory_space<vmem>>, vector<64x128xf32>
    %77 = arith.addf %76, %75 : vector<64x128xf32>
    %c0_91 = arith.constant 0 : index
    %c0_92 = arith.constant 0 : index
    %78 = vector.load %arg9[%c0_91, %c0_92] : memref<64x128xf32, #tpu.memory_space<vmem>>, vector<64x128xf32>
    tpu.vector_store %arg9[%c0_91, %c0_92], %77 {strides = array<i32>} : memref<64x128xf32, #tpu.memory_space<vmem>>, vector<64x128xf32>,
    %c2_93 = arith.constant 2 : index
    %c2_94 = arith.constant 2 : index
    %c0_95 = arith.constant 0 : index
    %79 = vector.load %arg8[%c2_93, %c2_94, %c0_95] : memref<10x10x128xbf16, #tpu.memory_space<vmem>>, vector<8x8x128xbf16>
    %80 = vector.shape_cast %79 : vector<8x8x128xbf16> to vector<64x128xbf16>
    %c8 = arith.constant 8 : index
    %c0_96 = arith.constant 0 : index
    %c0_97 = arith.constant 0 : index
    %81 = vector.load %arg4[%c8, %c0_96, %c0_97] : memref<9x128x128xbf16, #tpu.memory_space<vmem>>, vector<1x128x128xbf16>
    %82 = vector.shape_cast %81 : vector<1x128x128xbf16> to vector<128x128xbf16>
    %cst_98 = arith.constant dense<0.000000e+00> : vector<64x128xf32>
    %83 = tpu.matmul %80, %82, %cst_98 {dimension_numbers = #tpu.dot_dimension_numbers<[1], [0], [0], [1], [0, 0, 1, 1], [], []>} : vector<64x128xbf16>, vector<128x128xbf16>, vector<64x128xf32> -> vector<64x128xf32>
    %c0_99 = arith.constant 0 : index
    %c0_100 = arith.constant 0 : index
    %84 = vector.load %arg9[%c0_99, %c0_100] : memref<64x128xf32, #tpu.memory_space<vmem>>, vector<64x128xf32>
    %85 = arith.addf %84, %83 : vector<64x128xf32>
    %c0_101 = arith.constant 0 : index
    %c0_102 = arith.constant 0 : index
    %86 = vector.load %arg9[%c0_101, %c0_102] : memref<64x128xf32, #tpu.memory_space<vmem>>, vector<64x128xf32>
    tpu.vector_store %arg9[%c0_101, %c0_102], %85 {strides = array<i32>} : memref<64x128xf32, #tpu.memory_space<vmem>>, vector<64x128xf32>,
    %c0_103 = arith.constant 0 : index
    %c0_104 = arith.constant 0 : index
    %87 = vector.load %arg9[%c0_103, %c0_104] : memref<64x128xf32, #tpu.memory_space<vmem>>, vector<64x128xf32>
    %88 = vector.shape_cast %87 : vector<64x128xf32> to vector<8x8x128xf32>
    %89 = arith.truncf %88 : vector<8x8x128xf32> to vector<8x8x128xbf16>
    %c0_105 = arith.constant 0 : index
    %c0_106 = arith.constant 0 : index
    %c0_107 = arith.constant 0 : index
    %c0_108 = arith.constant 0 : index
    %90 = vector.load %arg5[%c0_105, %c0_106, %c0_107, %c0_108] : memref<1x8x8x128xbf16, #tpu.memory_space<vmem>>, vector<1x8x8x128xbf16>
    %91 = vector.shape_cast %90 : vector<1x8x8x128xbf16> to vector<8x8x128xbf16>
    %92 = vector.shape_cast %89 : vector<8x8x128xbf16> to vector<1x8x8x128xbf16>
    tpu.vector_store %arg5[%c0_105, %c0_106, %c0_107, %c0_108], %92 {strides = array<i32>} : memref<1x8x8x128xbf16, #tpu.memory_space<vmem>>, vector<1x8x8x128xbf16>,
    %cst_109 = arith.constant dense<0.000000e+00> : vector<128xf32>
    %93 = vector.multi_reduction <add>, %87, %cst_109 [0] : vector<64x128xf32> to vector<128xf32>
    %94 = vector.shape_cast %93 : vector<128xf32> to vector<1x128xf32>
    %c0_110 = arith.constant 0 : index
    %c0_111 = arith.constant 0 : index
    %c0_112 = arith.constant 0 : index
    %95 = vector.load %arg6[%c0_110, %c0_111, %c0_112] : memref<1x1x128xf32, #tpu.memory_space<vmem>>, vector<1x1x128xf32>
    %96 = vector.shape_cast %95 : vector<1x1x128xf32> to vector<1x128xf32>
    %97 = vector.shape_cast %94 : vector<1x128xf32> to vector<1x1x128xf32>
    tpu.vector_store %arg6[%c0_110, %c0_111, %c0_112], %97 {strides = array<i32>} : memref<1x1x128xf32, #tpu.memory_space<vmem>>, vector<1x1x128xf32>,
    %98 = arith.mulf %87, %87 : vector<64x128xf32>
    %cst_113 = arith.constant dense<0.000000e+00> : vector<128xf32>
    %99 = vector.multi_reduction <add>, %98, %cst_113 [0] : vector<64x128xf32> to vector<128xf32>
    %100 = vector.shape_cast %99 : vector<128xf32> to vector<1x128xf32>
    %c0_114 = arith.constant 0 : index
    %c0_115 = arith.constant 0 : index
    %c0_116 = arith.constant 0 : index
    %101 = vector.load %arg7[%c0_114, %c0_115, %c0_116] : memref<1x1x128xf32, #tpu.memory_space<vmem>>, vector<1x1x128xf32>
    %102 = vector.shape_cast %101 : vector<1x1x128xf32> to vector<1x128xf32>
    %103 = vector.shape_cast %100 : vector<1x128xf32> to vector<1x1x128xf32>
    tpu.vector_store %arg7[%c0_114, %c0_115, %c0_116], %103 {strides = array<i32>} : memref<1x1x128xf32, #tpu.memory_space<vmem>>, vector<1x1x128xf32>,
    return
  }
  func.func @transform_0(%arg0: i32) -> (i32, i32, i32, i32) {
    %c0_i32 = arith.constant 0 : i32
    %c0_i32_0 = arith.constant 0 : i32
    %c0_i32_1 = arith.constant 0 : i32
    %c0_i32_2 = arith.constant 0 : i32
    return %arg0, %c0_i32, %c0_i32_0, %c0_i32_1 : i32, i32, i32, i32
  }
  func.func @transform_1(%arg0: i32) -> (i32, i32) {
    %c0_i32 = arith.constant 0 : i32
    %c0_i32_0 = arith.constant 0 : i32
    %c0_i32_1 = arith.constant 0 : i32
    return %c0_i32, %c0_i32_0 : i32, i32
  }
  func.func @transform_2(%arg0: i32) -> (i32, i32) {
    %c0_i32 = arith.constant 0 : i32
    %c0_i32_0 = arith.constant 0 : i32
    %c0_i32_1 = arith.constant 0 : i32
    return %c0_i32, %c0_i32_0 : i32, i32
  }
  func.func @transform_3(%arg0: i32) -> (i32, i32, i32) {
    %c0_i32 = arith.constant 0 : i32
    %c0_i32_0 = arith.constant 0 : i32
    %c0_i32_1 = arith.constant 0 : i32
    %c0_i32_2 = arith.constant 0 : i32
    return %c0_i32, %c0_i32_0, %c0_i32_1 : i32, i32, i32
  }
  func.func @transform_4(%arg0: i32) -> (i32, i32, i32, i32) {
    %c0_i32 = arith.constant 0 : i32
    %c0_i32_0 = arith.constant 0 : i32
    %c0_i32_1 = arith.constant 0 : i32
    %c0_i32_2 = arith.constant 0 : i32
    return %arg0, %c0_i32, %c0_i32_0, %c0_i32_1 : i32, i32, i32, i32
  }
  func.func @transform_5(%arg0: i32) -> (i32, i32, i32) {
    %c0_i32 = arith.constant 0 : i32
    %c0_i32_0 = arith.constant 0 : i32
    %c0_i32_1 = arith.constant 0 : i32
    return %arg0, %c0_i32, %c0_i32_0 : i32, i32, i32
  }
  func.func @transform_6(%arg0: i32) -> (i32, i32, i32) {
    %c0_i32 = arith.constant 0 : i32
    %c0_i32_0 = arith.constant 0 : i32
    %c0_i32_1 = arith.constant 0 : i32
    return %arg0, %c0_i32, %c0_i32_0 : i32, i32, i32
  }
}

module attributes {stable_mosaic.version = 11 : i64} {
  func.func @_finalize_bnskip_kernel(%arg0: i32, %arg1: memref<1x8x8x128xbf16, #tpu.memory_space<vmem>>, %arg2: memref<1x128xf32, #tpu.memory_space<vmem>>, %arg3: memref<1x128xf32, #tpu.memory_space<vmem>>, %arg4: memref<1x8x8x128xbf16, #tpu.memory_space<vmem>>, %arg5: memref<1x128xf32, #tpu.memory_space<vmem>>, %arg6: memref<1x128xf32, #tpu.memory_space<vmem>>, %arg7: memref<1x8x8x128xf32, #tpu.memory_space<vmem>>) attributes {dimension_semantics = [#tpu.dimension_semantics<parallel>], iteration_bounds = array<i64: 2>, scalar_prefetch = 0 : i64, scratch_operands = 0 : i64, tpu.core_type = #tpu.core_type<tc>, window_params = [{transform_indices = @transform_0, window_bounds = array<i64: 1, 8, 8, 128>}, {pipeline_mode = #tpu.pipeline_mode<synchronous>, transform_indices = @transform_1, window_bounds = array<i64: 1, 128>}, {pipeline_mode = #tpu.pipeline_mode<synchronous>, transform_indices = @transform_2, window_bounds = array<i64: 1, 128>}, {transform_indices = @transform_3, window_bounds = array<i64: 1, 8, 8, 128>}, {pipeline_mode = #tpu.pipeline_mode<synchronous>, transform_indices = @transform_4, window_bounds = array<i64: 1, 128>}, {pipeline_mode = #tpu.pipeline_mode<synchronous>, transform_indices = @transform_5, window_bounds = array<i64: 1, 128>}, {transform_indices = @transform_6, window_bounds = array<i64: 1, 8, 8, 128>}]} {
    %c0 = arith.constant 0 : index
    %c0_0 = arith.constant 0 : index
    %c0_1 = arith.constant 0 : index
    %c0_2 = arith.constant 0 : index
    %0 = vector.load %arg1[%c0, %c0_0, %c0_1, %c0_2] : memref<1x8x8x128xbf16, #tpu.memory_space<vmem>>, vector<1x8x8x128xbf16>
    %1 = vector.shape_cast %0 : vector<1x8x8x128xbf16> to vector<8x8x128xbf16>
    %2 = arith.extf %1 : vector<8x8x128xbf16> to vector<8x8x128xf32>
    %c0_3 = arith.constant 0 : index
    %c0_4 = arith.constant 0 : index
    %3 = vector.load %arg2[%c0_3, %c0_4] : memref<1x128xf32, #tpu.memory_space<vmem>>, vector<1x128xf32>
    %4 = vector.shape_cast %3 : vector<1x128xf32> to vector<1x1x128xf32>
    %5 = vector.broadcast %4 : vector<1x1x128xf32> to vector<8x8x128xf32>
    %6 = arith.mulf %2, %5 : vector<8x8x128xf32>
    %c0_5 = arith.constant 0 : index
    %c0_6 = arith.constant 0 : index
    %7 = vector.load %arg3[%c0_5, %c0_6] : memref<1x128xf32, #tpu.memory_space<vmem>>, vector<1x128xf32>
    %8 = vector.shape_cast %7 : vector<1x128xf32> to vector<1x1x128xf32>
    %9 = vector.broadcast %8 : vector<1x1x128xf32> to vector<8x8x128xf32>
    %10 = arith.addf %6, %9 : vector<8x8x128xf32>
    %c0_7 = arith.constant 0 : index
    %c0_8 = arith.constant 0 : index
    %c0_9 = arith.constant 0 : index
    %c0_10 = arith.constant 0 : index
    %11 = vector.load %arg4[%c0_7, %c0_8, %c0_9, %c0_10] : memref<1x8x8x128xbf16, #tpu.memory_space<vmem>>, vector<1x8x8x128xbf16>
    %12 = vector.shape_cast %11 : vector<1x8x8x128xbf16> to vector<8x8x128xbf16>
    %13 = arith.extf %12 : vector<8x8x128xbf16> to vector<8x8x128xf32>
    %c0_11 = arith.constant 0 : index
    %c0_12 = arith.constant 0 : index
    %14 = vector.load %arg5[%c0_11, %c0_12] : memref<1x128xf32, #tpu.memory_space<vmem>>, vector<1x128xf32>
    %15 = vector.shape_cast %14 : vector<1x128xf32> to vector<1x1x128xf32>
    %16 = vector.broadcast %15 : vector<1x1x128xf32> to vector<8x8x128xf32>
    %17 = arith.mulf %13, %16 : vector<8x8x128xf32>
    %c0_13 = arith.constant 0 : index
    %c0_14 = arith.constant 0 : index
    %18 = vector.load %arg6[%c0_13, %c0_14] : memref<1x128xf32, #tpu.memory_space<vmem>>, vector<1x128xf32>
    %19 = vector.shape_cast %18 : vector<1x128xf32> to vector<1x1x128xf32>
    %20 = vector.broadcast %19 : vector<1x1x128xf32> to vector<8x8x128xf32>
    %21 = arith.addf %17, %20 : vector<8x8x128xf32>
    %cst = arith.constant 0.000000e+00 : f32
    %22 = vector.broadcast %cst : f32 to vector<8x8x128xf32>
    %23 = arith.maximumf %21, %22 : vector<8x8x128xf32>
    %24 = arith.addf %10, %23 : vector<8x8x128xf32>
    %cst_15 = arith.constant 0.000000e+00 : f32
    %25 = vector.broadcast %cst_15 : f32 to vector<8x8x128xf32>
    %26 = arith.maximumf %24, %25 : vector<8x8x128xf32>
    %c0_16 = arith.constant 0 : index
    %c0_17 = arith.constant 0 : index
    %c0_18 = arith.constant 0 : index
    %c0_19 = arith.constant 0 : index
    %27 = vector.load %arg7[%c0_16, %c0_17, %c0_18, %c0_19] : memref<1x8x8x128xf32, #tpu.memory_space<vmem>>, vector<1x8x8x128xf32>
    %28 = vector.shape_cast %27 : vector<1x8x8x128xf32> to vector<8x8x128xf32>
    %29 = vector.shape_cast %26 : vector<8x8x128xf32> to vector<1x8x8x128xf32>
    tpu.vector_store %arg7[%c0_16, %c0_17, %c0_18, %c0_19], %29 {strides = array<i32>} : memref<1x8x8x128xf32, #tpu.memory_space<vmem>>, vector<1x8x8x128xf32>,
    return
  }
  func.func @transform_0(%arg0: i32) -> (i32, i32, i32, i32) {
    %c0_i32 = arith.constant 0 : i32
    %c0_i32_0 = arith.constant 0 : i32
    %c0_i32_1 = arith.constant 0 : i32
    %c0_i32_2 = arith.constant 0 : i32
    return %arg0, %c0_i32, %c0_i32_0, %c0_i32_1 : i32, i32, i32, i32
  }
  func.func @transform_1(%arg0: i32) -> (i32, i32) {
    %c0_i32 = arith.constant 0 : i32
    %c0_i32_0 = arith.constant 0 : i32
    %c0_i32_1 = arith.constant 0 : i32
    return %c0_i32, %c0_i32_0 : i32, i32
  }
  func.func @transform_2(%arg0: i32) -> (i32, i32) {
    %c0_i32 = arith.constant 0 : i32
    %c0_i32_0 = arith.constant 0 : i32
    %c0_i32_1 = arith.constant 0 : i32
    return %c0_i32, %c0_i32_0 : i32, i32
  }
  func.func @transform_3(%arg0: i32) -> (i32, i32, i32, i32) {
    %c0_i32 = arith.constant 0 : i32
    %c0_i32_0 = arith.constant 0 : i32
    %c0_i32_1 = arith.constant 0 : i32
    %c0_i32_2 = arith.constant 0 : i32
    return %arg0, %c0_i32, %c0_i32_0, %c0_i32_1 : i32, i32, i32, i32
  }
  func.func @transform_4(%arg0: i32) -> (i32, i32) {
    %c0_i32 = arith.constant 0 : i32
    %c0_i32_0 = arith.constant 0 : i32
    %c0_i32_1 = arith.constant 0 : i32
    return %c0_i32, %c0_i32_0 : i32, i32
  }
  func.func @transform_5(%arg0: i32) -> (i32, i32) {
    %c0_i32 = arith.constant 0 : i32
    %c0_i32_0 = arith.constant 0 : i32
    %c0_i32_1 = arith.constant 0 : i32
    return %c0_i32, %c0_i32_0 : i32, i32
  }
  func.func @transform_6(%arg0: i32) -> (i32, i32, i32, i32) {
    %c0_i32 = arith.constant 0 : i32
    %c0_i32_0 = arith.constant 0 : i32
    %c0_i32_1 = arith.constant 0 : i32
    %c0_i32_2 = arith.constant 0 : i32
    return %arg0, %c0_i32, %c0_i32_0, %c0_i32_1 : i32, i32, i32, i32
  }
}

</mosaic_0001>

<bundles_post_ra>
// kernel: block_forward.7
= control target key start
LH: loop header
LB: loop body
LE: loop exit
PB: predicated region body
PF: predicated region fallthrough
CT: control target
= control target key end

     0   :  { %11 = vsyncpa [#allocation3], 0  ;;  %s869_s0 = inlined_call_operand.vmem [shape: bf16[2,8,8,128], index: 0, kind: input, shape index: {}]   ;;  %s870_s1 = inlined_call_operand.vmem [shape: f32[1,128], index: 1, kind: input, shape index: {}]   ;;  %s871_s2 = inlined_call_operand.vmem [shape: f32[1,128], index: 2, kind: input, shape index: {}]   ;;  %s872_s3 = inlined_call_operand.vmem [shape: bf16[2,8,8,128], index: 3, kind: input, shape index: {}]   ;;  %s873_s4 = inlined_call_operand.vmem [shape: f32[1,128], index: 4, kind: input, shape index: {}]   ;;  %s874_s5 = inlined_call_operand.vmem [shape: f32[1,128], index: 5, kind: input, shape index: {}]   ;;  %s875_s6 = inlined_call_operand.hbm [shape: f32[2,8,8,128], index: 6, kind: output, shape index: {}]  }
   0x1   :  { %13 = vsyncpa [#allocation3 + $0x1], 0  ;;  %s684_s21 = smov 0   ;;  %s686_s22 = smov 0  }
   0x2   :  { %s688_s23 = smov 0   ;;  %s690_s24 = smov 0  }
   0x3 LB: > { %s705_s25 = sadd.s32 4294967295, %s644_s24   ;;  %s482_s26 = sadd.s32 4294967294, %s644_s24   ;;  %s644_s24 = sphi %s690_s24, %s881_s24   ;;  %s640_s23 = sphi %s688_s23, %s880_s23   ;;  %s636_s22 = sphi %s686_s22, %s879_s22   ;;  %s632_s21 = sphi %s684_s21, %s878_s21  }
   0x4   : > { %s709_s27 = sadd.s32 1, %s644_s24   ;;  %s162_s28 = sadd.s32 1, %s640_s23 }
   0x5   : > { %s159_s29 = ssub.s32 %s644_s24, %s709_s27  ;;  %p172_p0 = scmp.ne.s32.totalorder %s640_s23, %s636_s22 }
   0x6   : > { %p160_p1 = scmp.eq.s32.totalorder %s159_s29, 0  ;;  %p173_p2 = scmp.eq.s32.totalorder %s705_s25, 1 }
   0x7   : > { %p178_p3 = scmp.ne.s32.totalorder %s636_s22, %s632_s21  ;;  %p179_p4 = scmp.eq.s32.totalorder %s482_s26, 1 }
   0x8   : > { %s720_s30 = scalar_select %p160_p1, %s640_s23, %s162_s28  }
   0x9   : > { %p722_p5 = por %p173_p2, %p172_p0  ;;  %p726_p6 = por %p179_p4, %p178_p3 }
   0xa   : > { %p485_p7 = scmp.ge.s32.totalorder %s644_s24, 1  ;;  %p225_p8 = scmp.lt.s32.totalorder %s644_s24, 3 }
   0xc   : > { %p226_p9 = pnand %p485_p7, %p225_p8 }
   0xd   : > { %p260_p10 = scmp.lt.s32.totalorder (!%p226_p9), %s705_s25, 1  ;;  %v747_v0 = vld [vmem:[%s870_s1] ss:$0 sm:$0xff] (!%p226_p9)  ;;  %s502_s14 = sshll.u32 (!%p226_p9), %s705_s25, 10 }
   0xe   : > { %229 = sbr.rel (%p226_p9) target bundleno = 66 (0x42), region = 44  ;;  %v752_v1 = vld [vmem:[%s873_s4] ss:$0 sm:$0xff] (!%p226_p9)  ;;  %s822_s17 = scalar_lea.hbm (!%p226_p9), %s875_s6, %s502_s14 }
   0xf   : > { %v761_v10 = vld [vmem:[%s871_s2] ss:$0 sm:$0xff] (!%p226_p9)  ;;  %s646_s19 = smov (!%p226_p9), [#allocation2]  }
  0x10   : > { %v766_v11 = vld [vmem:[%s874_s5] ss:$0 sm:$0xff] (!%p226_p9)  ;;  %s586_s20 = sshll.u32 (!%p226_p9), %s646_s19, 4  ;;  %s587_s20 = int_to_ptr.vmem [resolvable:$false] %s586_s20 }
  0x11   : > { %s588_s26 = scalar_lea.vmem (!%p226_p9), %s587_s20, 2048 }
  0x15   : > { %s261_s9 = scalar_select %p260_p10, %s705_s25, 1 }
  0x17   : > { %s500_s10 = sshll.u32 %s261_s9, 5 }
  0x18   : > { %s737_s13 = scalar_lea.vmem %s869_s0, %s500_s10  ;;  %s742_s16 = scalar_lea.vmem %s872_s3, %s500_s10 }
  0x19   : > { %v504_v2 = vld [vmem:[%s737_s13] sm:$0xff]   ;;  %v535_v4 = vld [vmem:[%s737_s13 + $0x8] sm:$0xff]   ;;  %s257_s10 = sand.u32 1, %s636_s22   ;;  %v536_v24 = vld [vmem:[%s737_s13 + $0x10] sm:$0xff]  }
  0x1a   : > { %v520_v3 = vld [vmem:[%s742_s16] sm:$0xff]   ;;  %v505_v5 = vunpack.c.l.bf16 %v504_v2  ;;  %v506_v7 = vunpack.c.h.bf16 %v504_v2  ;;  %v538_v9 = vld [vmem:[%s742_s16 + $0x8] sm:$0xff]   ;;  %v509_v12 = vunpack.c.l.bf16 %v535_v4  ;;  %v510_v14 = vunpack.c.h.bf16 %v535_v4  ;;  %v539_v25 = vld [vmem:[%s742_s16 + $0x10] sm:$0xff]   ;;  %s486_s11 = sshll.u32 %s257_s10, 6  ;;  %s828_s18 = scalar_lea.sflag [#allocation3], %s257_s10 }
  0x1b   : > { %v521_v6 = vunpack.c.l.bf16 %v520_v3  ;;  %v522_v8 = vunpack.c.h.bf16 %v520_v3  ;;  %v525_v13 = vunpack.c.l.bf16 %v538_v9  ;;  %v526_v15 = vunpack.c.h.bf16 %v538_v9  ;;  %v537_v50 = vld [vmem:[%s737_s13 + $0x18] sm:$0xff]   ;;  %s799_s12 = scalar_lea.vmem [#allocation2], %s486_s11 }
  0x1c   : > { %v293_v16 = vmul.f32 %v505_v5, %v747_v0  ;;  %v294_v18 = vmul.f32 %v506_v7, %v747_v0  ;;  %v295_v20 = vmul.f32 %v509_v12, %v747_v0  ;;  %v296_v22 = vmul.f32 %v510_v14, %v747_v0  ;;  %v540_v51 = vld [vmem:[%s742_s16 + $0x18] sm:$0xff]   ;;  %s408_s13 = sshll.u32 %s799_s12, 4  ;;  %s817_s13 = int_to_ptr.vmem [resolvable:$true] %s408_s13 }
  0x1d   : > { %v339_v17 = vmul.f32 %v521_v6, %v752_v1  ;;  %v340_v19 = vmul.f32 %v522_v8, %v752_v1  ;;  %v341_v21 = vmul.f32 %v525_v13, %v752_v1  ;;  %v342_v23 = vmul.f32 %v526_v15, %v752_v1  ;;  %s582_s25 = scalar_lea.vmem %s817_s13, 1024  ;;  %p589_p0 = scmp.lt.s32.totalorder %s817_s13, %s587_s20 }
  0x1e   : > { %v308_v26 = vadd.f32 %v761_v10, %v293_v16  ;;  %v309_v28 = vadd.f32 %v761_v10, %v294_v18  ;;  %v310_v30 = vadd.f32 %v761_v10, %v295_v20  ;;  %v311_v32 = vadd.f32 %v761_v10, %v296_v22  ;;  %p583_p11 = scmp.ne.s32.totalorder %s817_s13, %s582_s25  ;;  %p590_p1 = scmp.lt.s32.totalorder %s588_s26, %s582_s25 }
  0x1f   : > { %v354_v27 = vadd.f32 %v766_v11, %v339_v17  ;;  %v355_v29 = vadd.f32 %v766_v11, %v340_v19  ;;  %v356_v31 = vadd.f32 %v766_v11, %v341_v21  ;;  %v357_v33 = vadd.f32 %v766_v11, %v342_v23 }
  0x20   : > { %v513_v36 = vunpack.c.l.bf16 %v536_v24  ;;  %v529_v37 = vunpack.c.l.bf16 %v539_v25  ;;  %v514_v40 = vunpack.c.h.bf16 %v536_v24  ;;  %v530_v41 = vunpack.c.h.bf16 %v539_v25  ;;  %p584_p12 = pnand %p583_p11, %p722_p5  ;;  %p591_p2 = por %p590_p1, %p589_p0 }
  0x21   : > { %v362_v34 = vmax.f32 %v354_v27, 0.0  ;;  %v363_v35 = vmax.f32 %v355_v29, 0.0  ;;  %v364_v38 = vmax.f32 %v356_v31, 0.0  ;;  %v365_v39 = vmax.f32 %v357_v33, 0.0 }
  0x22   : > { %v297_v44 = vmul.f32 %v513_v36, %v747_v0  ;;  %v343_v45 = vmul.f32 %v529_v37, %v752_v1  ;;  %v298_v48 = vmul.f32 %v514_v40, %v747_v0  ;;  %v344_v49 = vmul.f32 %v530_v41, %v752_v1  ;;  %p585_p13 = pneg %p584_p12 }
  0x23   : > { %v370_v42 = vadd.f32 %v362_v34, %v308_v26  ;;  %v371_v43 = vadd.f32 %v363_v35, %v309_v28  ;;  %v372_v46 = vadd.f32 %v364_v38, %v310_v30  ;;  %v373_v47 = vadd.f32 %v365_v39, %v311_v32 }
  0x24   : > { %v312_v54 = vadd.f32 %v761_v10, %v297_v44  ;;  %v358_v55 = vadd.f32 %v766_v11, %v343_v45  ;;  %v313_v58 = vadd.f32 %v761_v10, %v298_v48  ;;  %v359_v59 = vadd.f32 %v766_v11, %v344_v49  ;;  %p592_p3 = pnand %p591_p2, %p585_p13 }
  0x25   : > { %v378_v52 = vmax.f32 %v370_v42, 0.0  ;;  %v379_v53 = vmax.f32 %v371_v43, 0.0  ;;  %v380_v56 = vmax.f32 %v372_v46, 0.0  ;;  %v381_v57 = vmax.f32 %v373_v47, 0.0 }
  0x26   : > { %v366_v60 = vmax.f32 %v358_v55, 0.0  ;;  %v517_v61 = vunpack.c.l.bf16 %v537_v50  ;;  %v533_v62 = vunpack.c.l.bf16 %v540_v51  ;;  %v518_v63 = vunpack.c.h.bf16 %v537_v50 }
  0x27   : > { %386 = vst [vmem:[%s799_s12] sm:$0xff] %v378_v52  ;;  %387 = vst [vmem:[%s799_s12 + $0x8] sm:$0xff] %v379_v53  ;;  %v367_v2 = vmax.f32 %v359_v59, 0.0  ;;  %v534_v3 = vunpack.c.h.bf16 %v540_v51 }
  0x28   : > { %388 = vst [vmem:[%s799_s12 + $0x10] sm:$0xff] %v380_v56  ;;  %389 = vst [vmem:[%s799_s12 + $0x18] sm:$0xff] %v381_v57  ;;  %v374_v4 = vadd.f32 %v366_v60, %v312_v54  ;;  %v299_v5 = vmul.f32 %v517_v61, %v747_v0  ;;  %v345_v6 = vmul.f32 %v533_v62, %v752_v1 }
  0x29   : > { %v300_v7 = vmul.f32 %v518_v63, %v747_v0  ;;  %v375_v8 = vadd.f32 %v367_v2, %v313_v58  ;;  %v346_v9 = vmul.f32 %v534_v3, %v752_v1 }
  0x2a   : > { %v382_v12 = vmax.f32 %v374_v4, 0.0  ;;  %v314_v13 = vadd.f32 %v761_v10, %v299_v5  ;;  %v360_v14 = vadd.f32 %v766_v11, %v345_v6 }
  0x2b   : > { %v383_v15 = vmax.f32 %v375_v8, 0.0  ;;  %v315_v16 = vadd.f32 %v761_v10, %v300_v7  ;;  %v361_v17 = vadd.f32 %v766_v11, %v346_v9 }
  0x2c   : > { %390 = vst [vmem:[%s799_s12 + $0x20] sm:$0xff] %v382_v12  ;;  %v368_v18 = vmax.f32 %v360_v14, 0.0 }
  0x2d   : > { %391 = vst [vmem:[%s799_s12 + $0x28] sm:$0xff] %v383_v15  ;;  %v369_v0 = vmax.f32 %v361_v17, 0.0 }
  0x2e   : > { %v376_v1 = vadd.f32 %v368_v18, %v314_v13 }
  0x2f   : > { %v377_v19 = vadd.f32 %v369_v0, %v315_v16 }
  0x30   : > { %v384_v20 = vmax.f32 %v376_v1, 0.0 }
  0x31   : > { %v385_v10 = vmax.f32 %v377_v19, 0.0 }
  0x32   : > { %392 = vst [vmem:[%s799_s12 + $0x30] sm:$0xff] %v384_v20 }
  0x33   : > { %393 = vst [vmem:[%s799_s12 + $0x38] sm:$0xff] %v385_v10 }
  0x34   : > { %595 = shalt.err (!%p592_p3)
}
  0x35   : > { %s596_s28 = scalar_lea.hbm %s822_s17, 1024  ;;  %s600_s10 = scalar_lea.hbm %s875_s6, 2048 }
  0x36   : > { %p597_p4 = scmp.ne.s32.totalorder %s822_s17, %s596_s28  ;;  %p601_p9 = scmp.lt.u32.totalorder %s822_s17, %s875_s6 }
  0x37   : > { %p602_p10 = scmp.lt.u32.totalorder %s600_s10, %s596_s28  ;;  %p604_p12 = scmp.lt.u32.totalorder %s596_s28, %s822_s17 }
  0x38   : > { %p598_p7 = pnand %p597_p4, %p722_p5 }
  0x39   : > { %p603_p11 = por %p602_p10, %p601_p9 }
  0x3a   : > { %p599_p8 = pneg %p598_p7 }
  0x3b   : > { %p605_p13 = por %p604_p12, %p603_p11 }
  0x3d   : > { %p606_p0 = pnand %p605_p13, %p599_p8 }
  0x3f   : > { %609 = shalt.err (!%p606_p0)
}
  0x40   : > { %s647_s14 = smov 128   ;;  %s648_s15 = smov 8  }
  0x41   : > { %541 = dma.vmem_to_hbm [thread:$0]  (%p722_p5), %s817_s13, 1024, %s822_s17, %s828_s18, %s647_s14, %s647_s14, %s648_s15  }
  0x42 PF: > { %p547_p1 = scmp.ge.s32.totalorder %s644_s24, 2  ;;  %s423_s16 = sand.u32 1, %s632_s21  }
  0x43   : > { %s424_s25 = scalar_lea.sflag [#allocation3], %s423_s16 }
  0x44   : > { %p544_p2 = pnand %p547_p1, %p726_p6 }
  0x46   : > { %627 = dma.done.wait (!%p544_p2), %s424_s25, 1024  }
  0x47   : > { %629 = vsyncadd (!%p544_p2), %s424_s25, 4294966272  ;;  %p16_p3 = scmp.ge.s32.totalorder %s709_s27, 4   ;;  %s878_s21 = smov %s636_s22 }
  0x48   : > { %s879_s22 = smov %s640_s23  ;;  %s880_s23 = smov %s720_s30 }
  0x49   : > { %s881_s24 = smov %s709_s27  ;;  %18 = sbr.rel (!%p16_p3) target bundleno = 3 (0x3), region = 82 }
  0x50   :  { %429 = vsyncpa [#allocation3], 1 }
  0x51   :  { %431 = vsyncpa [#allocation3 + $0x1], 1 }

// kernel: block_forward.6
= control target key start
LH: loop header
LB: loop body
LE: loop exit
PB: predicated region body
PF: predicated region fallthrough
CT: control target
= control target key end

     0   :  { %s2379_s15 = smov 0   ;;  %s2651_s0 = inlined_call_operand.vmem [shape: bf16[2,36,9,4], index: 0, kind: input, shape index: {}]   ;;  %s2652_s1 = inlined_call_operand.vmem [shape: bf16[9,4,128], index: 1, kind: input, shape index: {}]   ;;  %s2653_s2 = inlined_call_operand.vmem [shape: bf16[2,8,8,128], index: 2, kind: output, shape index: {0}]   ;;  %s2654_s3 = inlined_call_operand.vmem [shape: f32[2,1,128], index: 3, kind: output, shape index: {1}]   ;;  %s2655_s4 = inlined_call_operand.vmem [shape: f32[2,1,128], index: 4, kind: output, shape index: {2}]  }
   0x1 LB: > { %s1916_s16 = sadd.s32 4294967295, %s2352_s15   ;;  %p1920_p0 = scmp.ge.s32.totalorder %s2352_s15, 1  ;;  %s2352_s15 = sphi %s2379_s15, %s15_s15  }
   0x2   : > { %p167_p1 = scmp.lt.s32.totalorder %s2352_s15, 3 }
   0x4   : > { %p168_p2 = pnand %p1920_p0, %p167_p1 }
   0x5   : > { %v224_v0 = vld [vmem:[%s2652_s1] sm:$0x3] (!%p168_p2)  ;;  %vm258_vm0 = vcmask (!%p168_p2), 1041408   ;;  %v2393_v1 = vld [vmem:[%s2652_s1 + $0x8] sm:$0x3] (!%p168_p2)  ;;  %p199_p3 = scmp.lt.s32.totalorder (!%p168_p2), %s1916_s16, 1 }
   0x6   : > { %171 = sbr.rel (%p168_p2) target bundleno = 332 (0x14c), region = 28  ;;  %2303 = vmatprep.subr.msk.bf16.mxu1 (!%p168_p2), %vm258_vm0, %v224_v0  ;;  %2307 = vmatprep.subr.msk.bf16.mxu0 (!%p168_p2), %vm258_vm0, %v2393_v1  ;;  %v260_v2 = vsel (!%p168_p2), %vm258_vm0, %v224_v0, 0  ;;  %v2401_v3 = vsel (!%p168_p2), %vm258_vm0, %v2393_v1, 0  ;;  %v1940_v4 = vld [vmem:[%s2652_s1 + $0x2] sm:$0x3] (!%p168_p2)  ;;  %vm245_vm1 = vcmask (!%p168_p2), 31744  }
   0x7   : > { %2148 = vmatpush3.bf16.msra.mxu1 (!%p168_p2), %v260_v2  ;;  %2188 = vmatpush3.bf16.msra.mxu0 (!%p168_p2), %v2401_v3  ;;  %v2008_v5 = vld [vmem:[%s2652_s1 + $0xa] sm:$0x3] (!%p168_p2)  ;;  %v379_v6 = vsel (!%p168_p2), %vm258_vm0, %v1940_v4, 0  ;;  %v2025_v9 = vld [vmem:[%s2652_s1 + $0xc] sm:$0x3] (!%p168_p2) }
   0x8   : > { %2304 = vmatprep.subr.msk.bf16.mxu1 (!%p168_p2), %vm258_vm0, %v1940_v4  ;;  %2309 = vmatprep.subr.msk.bf16.mxu0 (!%p168_p2), %vm258_vm0, %v2008_v5  ;;  %v1144_v7 = vsel (!%p168_p2), %vm258_vm0, %v2008_v5, 0  ;;  %v1949_v10 = vld [vmem:[%s2652_s1 + $0x4] sm:$0x3] (!%p168_p2)  ;;  %vm486_vm2 = vsmask.f32 (!%p168_p2), 3328  ;;  %v2438_v15 = vsel (!%p168_p2), %vm258_vm0, %v2025_v9, 0 }
   0x9   : > { %vm487_vm3 = vsmask.f32 (!%p168_p2), 7440  ;;  %v2441_v16 = vsel (!%p168_p2), %vm258_vm0, %v1949_v10, 0 }
   0xa   : > { %vm2458_vm4 = vmor (!%p168_p2), %vm486_vm2, %vm487_vm3 }
   0xd   : > { %s2659_s16 = smov (!%p199_p3, %s1916_s16), 1 }
   0xe   : > { %s2313_s25 = smul.u32 288, %s2659_s16  ;;  %s2078_s13 = sshll.u32 %s2659_s16, 5 }
   0xf   : > { %s2634_s18 = scalar_lea.vmem %s2653_s2, %s2078_s13  ;;  %s211_s21 = scalar_lea.vmem %s2654_s3, %s2659_s16 }
  0x10   : > { %s2418_s28 = scalar_lea.vmem %s2651_s0, %s2313_s25  ;;  %s214_s24 = scalar_lea.vmem %s2655_s4, %s2659_s16 }
  0x11   : > { %v2322_v8 = vld [vmem:[%s2418_s28] ss:$8 sps:$4 sm:$0xff]   ;;  %v2324_v12 = vld [vmem:[%s2418_s28 + $0x10] ss:$8 sps:$4 sm:$0xff]   ;;  %v1993_v19 = vld [vmem:[%s2418_s28 + $0x94] sm:$0x1] }
  0x12   : > { %v2323_v11 = vld [vmem:[%s2418_s28 + $0xd8] ss:$8 sps:$4 sm:$0xff]   ;;  %2149 = vmatprep.mubr.msk.bf16.mxu1 %vm245_vm1, %v2322_v8  ;;  %v2325_v13 = vld [vmem:[%s2418_s28 + $0xe8] ss:$8 sps:$4 sm:$0xff]   ;;  %v1995_v21 = vld [vmem:[%s2418_s28 + $0x9c] sm:$0x1] }
  0x13   : > { %2189 = vmatprep.mubr.msk.bf16.mxu0 %vm245_vm1, %v2323_v11  ;;  %2150 = vmatmul.mubr.msk.bf16.vlgmr.msra.gmra.mrb[0].mxu1 %vm245_vm1, %v2324_v12  ;;  %v2326_v14 = vld [vmem:[%s2418_s28 + $0x20] ss:$8 sps:$4 sm:$0xff]   ;;  %v2327_v17 = vld [vmem:[%s2418_s28 + $0x30] ss:$8 sps:$4 sm:$0xff]   ;;  %v1015_v24 = vshll.u32 %v1993_v19, 16  ;;  %v1029_v27 = vshll.u32 %v1995_v21, 16 }
  0x14   : > { %2158 = vmatpush3.bf16.msra.mxu1 %v379_v6  ;;  %2190 = vmatmul.mubr.msk.bf16.vlgmr.msra.gmra.mrb[0].mxu0 %vm245_vm1, %v2325_v13  ;;  %v1992_v18 = vld [vmem:[%s2418_s28 + $0x90] sm:$0xf]  ;;  %v1994_v20 = vld [vmem:[%s2418_s28 + $0x98] sm:$0xf]  ;;  %v1996_v28 = vld [vmem:[%s2418_s28 + $0xa0] sm:$0xf] }
  0x15   : > { %2198 = vmatpush3.bf16.msra.mxu0 %v1144_v7  ;;  %2153 = vmatprep.mubr.msk.bf16.mxu1 %vm245_vm1, %v2326_v14  ;;  %v1006_v22 = vshrl.u32 %v1992_v18, 16  ;;  %v1009_v23 = vshll.u32 %v1992_v18, 16  ;;  %v1020_v25 = vshrl.u32 %v1994_v20, 16  ;;  %v1023_v26 = vshll.u32 %v1994_v20, 16  ;;  %v1997_v29 = vld [vmem:[%s2418_s28 + $0xa4] sm:$0x1] }
  0x16   : > { %2310 = vmatprep.subr.msk.bf16.mxu0 %vm258_vm0, %v2025_v9  ;;  %2305 = vmatprep.subr.msk.bf16.mxu1 %vm258_vm0, %v1949_v10  ;;  %v1017_v32 = vrot.slane %v1015_v24, 5  ;;  %v1998_v34 = vld [vmem:[%s2418_s28 + $0xa8] sm:$0xf]  ;;  %v1031_v36 = vrot.slane %v1029_v27, 5  ;;  %v1999_v37 = vld [vmem:[%s2418_s28 + $0xac] sm:$0x1] }
  0x17   : > { %v1008_v30 = vrot.slane %v1006_v22, 4  ;;  %v1011_v31 = vrot.slane %v1009_v23, 5  ;;  %v1022_v33 = vrot.slane %v1020_v25, 4  ;;  %v1025_v35 = vrot.slane %v1023_v26, 5  ;;  %v2328_v53 = vld [vmem:[%s2418_s28 + $0x48] ss:$8 sps:$4 sm:$0xff]  }
  0x18   : > { %v1034_v38 = vshrl.u32 %v1996_v28, 16  ;;  %v1037_v39 = vshll.u32 %v1996_v28, 16  ;;  %v1043_v41 = vshll.u32 %v1997_v29, 16  ;;  %v1048_v42 = vshrl.u32 %v1998_v34, 16  ;;  %v2329_v59 = vld [vmem:[%s2418_s28 + $0x58] ss:$8 sps:$4 sm:$0xff]  }
  0x19   : > { %v1012_v40 = vor.u32 %v1011_v31, %v1008_v30  ;;  %v1051_v43 = vshll.u32 %v1998_v34, 16  ;;  %v1026_v45 = vor.u32 %v1025_v35, %v1022_v33  ;;  %v1057_v48 = vshll.u32 %v1999_v37, 16  ;;  %v2000_v60 = vld [vmem:[%s2418_s28 + $0xb0] sm:$0xf]  ;;  %v2001_v61 = vld [vmem:[%s2418_s28 + $0xb4] sm:$0x1] }
  0x1a   : > { %v1036_v46 = vrot.slane %v1034_v38, 4  ;;  %v1039_v47 = vrot.slane %v1037_v39, 5  ;;  %v1045_v50 = vrot.slane %v1043_v41, 5  ;;  %v1050_v51 = vrot.slane %v1048_v42, 4  ;;  %v2002_v0 = vld [vmem:[%s2418_s28 + $0xb8] sm:$0xf] }
  0x1b   : > { %2154 = vmatmul.mubr.msk.bf16.gmra.mrb[4].mxu1 %vm245_vm1, %v2327_v17  ;;  %v1013_v49 = vrot.slane %v1012_v40, 4  ;;  %v1053_v52 = vrot.slane %v1051_v43, 5  ;;  %v1027_v54 = vrot.slane %v1026_v45, 4  ;;  %v1059_v56 = vrot.slane %v1057_v48, 5  ;;  %v2003_v2 = vld [vmem:[%s2418_s28 + $0xbc] sm:$0x1] }
  0x1c   : > { %v1040_v55 = vor.u32 %v1039_v47, %v1036_v46  ;;  %2159 = vmatprep.mubr.msk.bf16.mxu1 %vm245_vm1, %v2328_v53  ;;  %v1062_v4 = vshrl.u32 %v2000_v60, 16  ;;  %v1065_v7 = vshll.u32 %v2000_v60, 16  ;;  %v1071_v8 = vshll.u32 %v2001_v61, 16  ;;  %v2004_v9 = vld [vmem:[%s2418_s28 + $0xc0] sm:$0xf] }
  0x1d   : > { %v1018_v57 = vsel %vm2458_vm4, %v1013_v49, %v1017_v32  ;;  %v1054_v58 = vor.u32 %v1053_v52, %v1050_v51  ;;  %v1032_v62 = vsel %vm2458_vm4, %v1027_v54, %v1031_v36  ;;  %v2477_v10 = vld [vmem:[%s2652_s1 + $0x6] sm:$0x3]  ;;  %v1076_v13 = vshrl.u32 %v2002_v0, 16  ;;  %v2005_v17 = vld [vmem:[%s2418_s28 + $0xc4] sm:$0x1] }
  0x1e   : > { %v1041_v63 = vrot.slane %v1040_v55, 4  ;;  %v2009_v5 = vcombine.low %v1018_v57, %v1032_v62  ;;  %v1064_v12 = vrot.slane %v1062_v4, 4  ;;  %v1079_v14 = vshll.u32 %v2002_v0, 16  ;;  %v2006_v22 = vld [vmem:[%s2418_s28 + $0xc8] sm:$0xf] }
  0x1f   : > { %v1055_v6 = vrot.slane %v1054_v58, 4  ;;  %v1067_v19 = vrot.slane %v1065_v7, 5  ;;  %v1073_v20 = vrot.slane %v1071_v8, 5  ;;  %v1085_v21 = vshll.u32 %v2003_v2, 16  ;;  %v2489_v23 = vld [vmem:[%s2652_s1 + $0xe] sm:$0x3] }
  0x20   : > { %v1046_v11 = vsel %vm2458_vm4, %v1041_v63, %v1045_v50  ;;  %2199 = vmatprep.mubr.msk.bf16.mxu0 %vm245_vm1, %v2009_v5  ;;  %v1078_v25 = vrot.slane %v1076_v13, 4  ;;  %v1081_v26 = vrot.slane %v1079_v14, 5  ;;  %v2007_v27 = vld [vmem:[%s2418_s28 + $0xcc] sm:$0x1]  ;;  %v1090_v28 = vshrl.u32 %v2004_v9, 16 }
  0x21   : > { %v1060_v18 = vsel %vm2458_vm4, %v1055_v6, %v1059_v56  ;;  %v1068_v29 = vor.u32 %v1067_v19, %v1064_v12  ;;  %v1087_v30 = vrot.slane %v1085_v21, 5  ;;  %v1093_v31 = vshll.u32 %v2004_v9, 16  ;;  %v2332_v53 = vld [vmem:[%s2418_s28 + $0x8] ss:$8 sps:$4 sm:$0xff]   ;;  %v470_v54 = vld [vmem:[%s2418_s28] sm:$0xf] }
  0x22   : > { %v2010_v24 = vcombine.low %v1046_v11, %v1060_v18  ;;  %v1099_v32 = vshll.u32 %v2005_v17, 16  ;;  %v1082_v33 = vor.u32 %v1081_v26, %v1078_v25  ;;  %v1092_v34 = vrot.slane %v1090_v28, 4  ;;  %v471_v56 = vld [vmem:[%s2418_s28 + $0x4] sm:$0x1]  ;;  %v472_v57 = vld [vmem:[%s2418_s28 + $0x8] sm:$0xf] }
  0x23   : > { %2160 = vmatmul.mubr.msk.bf16.vlgmr.msra.gmra.mrb[0].mxu1 %vm245_vm1, %v2329_v59  ;;  %v1104_v35 = vshrl.u32 %v2006_v22, 16  ;;  %v1107_v36 = vshll.u32 %v2006_v22, 16  ;;  %v1069_v37 = vrot.slane %v1068_v29, 4  ;;  %v1095_v38 = vrot.slane %v1093_v31, 5  ;;  %v473_v58 = vld [vmem:[%s2418_s28 + $0xc] sm:$0x1] }
  0x24   : > { %2168 = vmatpush3.bf16.msra.mxu1 %v2441_v16  ;;  %2200 = vmatmul.mubr.msk.bf16.vlgmr.msra.gmra.mrb[0].mxu0 %vm245_vm1, %v2010_v24  ;;  %v1113_v39 = vshll.u32 %v2007_v27, 16  ;;  %v2330_v16 = vld [vmem:[%s2418_s28 + $0x68] ss:$8 sps:$4 sm:$0xff]   ;;  %v1083_v40 = vrot.slane %v1082_v33, 4  ;;  %v1101_v46 = vrot.slane %v1099_v32, 5  ;;  %v490_v60 = vshrl.u32 %v470_v54, 16 }
  0x25   : > { %2306 = vmatprep.subr.msk.bf16.mxu1 %vm258_vm0, %v2477_v10  ;;  %2208 = vmatpush3.bf16.msra.mxu0 %v2438_v15  ;;  %v1106_v41 = vrot.slane %v1104_v35, 4  ;;  %v1109_v42 = vrot.slane %v1107_v36, 5  ;;  %v1074_v43 = vsel %vm2458_vm4, %v1069_v37, %v1073_v20  ;;  %v1096_v45 = vor.u32 %v1095_v38, %v1092_v34  ;;  %v2331_v15 = vld [vmem:[%s2418_s28 + $0x78] ss:$8 sps:$4 sm:$0xff]   ;;  %v474_v63 = vld [vmem:[%s2418_s28 + $0x10] sm:$0xf] }
  0x26   : > { %2311 = vmatprep.subr.msk.bf16.mxu0 %vm258_vm0, %v2489_v23  ;;  %2163 = vmatprep.mubr.msk.bf16.mxu1 %vm245_vm1, %v2330_v16  ;;  %v1088_v47 = vsel %vm2458_vm4, %v1083_v40, %v1087_v30  ;;  %v1115_v49 = vrot.slane %v1113_v39, 5  ;;  %v493_v61 = vshll.u32 %v470_v54, 16  ;;  %v499_v62 = vshll.u32 %v471_v56, 16  ;;  %v475_v6 = vld [vmem:[%s2418_s28 + $0x14] sm:$0x1] }
  0x27   : > { %v1110_v48 = vor.u32 %v1109_v42, %v1106_v41  ;;  %v2011_v50 = vcombine.low %v1074_v43, %v1088_v47  ;;  %v1097_v51 = vrot.slane %v1096_v45, 4  ;;  %v504_v2 = vshrl.u32 %v472_v57, 16  ;;  %v476_v11 = vld [vmem:[%s2418_s28 + $0x18] sm:$0xf]  ;;  %v477_v18 = vld [vmem:[%s2418_s28 + $0x1c] sm:$0x1] }
  0x28   : > { %v507_v4 = vshll.u32 %v472_v57, 16  ;;  %v513_v5 = vshll.u32 %v473_v58, 16  ;;  %v492_v7 = vrot.slane %v490_v60, 4  ;;  %v495_v8 = vrot.slane %v493_v61, 5  ;;  %v2333_v29 = vld [vmem:[%s2418_s28 + $0x18] ss:$8 sps:$4 sm:$0xff]  }
  0x29   : > { %v1111_v52 = vrot.slane %v1110_v48, 4  ;;  %2203 = vmatprep.mubr.msk.bf16.mxu0 %vm245_vm1, %v2011_v50  ;;  %v1102_v55 = vsel %vm2458_vm4, %v1097_v51, %v1101_v46  ;;  %v501_v9 = vrot.slane %v499_v62, 5  ;;  %v518_v12 = vshrl.u32 %v474_v63, 16  ;;  %v2334_v37 = vld [vmem:[%s2418_s28 + $0x28] ss:$8 sps:$4 sm:$0xff]  }
  0x2a   : > { %v506_v13 = vrot.slane %v504_v2, 4  ;;  %v509_v14 = vrot.slane %v507_v4, 5  ;;  %v515_v17 = vrot.slane %v513_v5, 5  ;;  %v521_v19 = vshll.u32 %v474_v63, 16  ;;  %v478_v40 = vld [vmem:[%s2418_s28 + $0x20] sm:$0xf] }
  0x2b   : > { %2164 = vmatmul.mubr.msk.bf16.gmra.mrb[4].mxu1 %vm245_vm1, %v2331_v15  ;;  %v1116_v59 = vsel %vm2458_vm4, %v1111_v52, %v1115_v49  ;;  %v496_v20 = vor.u32 %v495_v8, %v492_v7  ;;  %v520_v21 = vrot.slane %v518_v12, 4  ;;  %v527_v22 = vshll.u32 %v475_v6, 16  ;;  %v479_v45 = vld [vmem:[%s2418_s28 + $0x24] sm:$0x1]  ;;  %v480_v46 = vld [vmem:[%s2418_s28 + $0x28] sm:$0xf] }
  0x2c   : > { %v2012_v0 = vcombine.low %v1102_v55, %v1116_v59  ;;  %v532_v24 = vshrl.u32 %v476_v11, 16  ;;  %v510_v25 = vor.u32 %v509_v14, %v506_v13  ;;  %v523_v26 = vrot.slane %v521_v19, 5  ;;  %v481_v48 = vld [vmem:[%s2418_s28 + $0x2c] sm:$0x1]  ;;  %v482_v55 = vld [vmem:[%s2418_s28 + $0x30] sm:$0xf] }
  0x2d   : > { %v535_v27 = vshll.u32 %v476_v11, 16  ;;  %v541_v28 = vshll.u32 %v477_v18, 16  ;;  %v1414_v30 = vsel %vm258_vm0, %v2489_v23, 0  ;;  %v497_v31 = vrot.slane %v496_v20, 4  ;;  %v2536_v23 = vld [vmem:[%s2652_s1 + $0x10] sm:$0x3] }
  0x2e   : > { %2204 = vmatmul.mubr.msk.bf16.gmra.mrb[4].mxu0 %vm245_vm1, %v2012_v0  ;;  %v529_v32 = vrot.slane %v527_v22, 5  ;;  %v534_v33 = vrot.slane %v532_v24, 4  ;;  %v511_v34 = vrot.slane %v510_v25, 4  ;;  %v524_v35 = vor.u32 %v523_v26, %v520_v21  ;;  %v483_v60 = vld [vmem:[%s2418_s28 + $0x34] sm:$0x1] }
  0x2f   : > { %2209 = vmatprep.mubr.msk.bf16.mxu0 %vm245_vm1, %v2332_v53  ;;  %v537_v36 = vrot.slane %v535_v27, 5  ;;  %v502_v38 = vsel %vm2458_vm4, %v497_v31, %v501_v9  ;;  %v543_v39 = vrot.slane %v541_v28, 5  ;;  %v763_v16 = vsel %vm258_vm0, %v2477_v10, 0  ;;  %v2335_v62 = vld [vmem:[%s2418_s28 + $0x38] ss:$8 sps:$4 sm:$0xff]  }
  0x30   : > { %v516_v41 = vsel %vm2458_vm4, %v511_v34, %v515_v17  ;;  %v525_v42 = vrot.slane %v524_v35, 4  ;;  %v546_v15 = vshrl.u32 %v478_v40, 16  ;;  %v549_v49 = vshll.u32 %v478_v40, 16  ;;  %v484_v0 = vld [vmem:[%s2418_s28 + $0x38] sm:$0xf] }
  0x31   : > { %v538_v43 = vor.u32 %v537_v36, %v534_v33  ;;  %v1950_v47 = vcombine.low %v502_v38, %v516_v41  ;;  %v555_v10 = vshll.u32 %v479_v45, 16  ;;  %v560_v50 = vshrl.u32 %v480_v46, 16  ;;  %v485_v2 = vld [vmem:[%s2418_s28 + $0x3c] sm:$0x1]  ;;  %v2336_v14 = vld [vmem:[%s2418_s28 + $0x50] ss:$8 sps:$4 sm:$0xff]  }
  0x32   : > { %v530_v51 = vsel %vm2458_vm4, %v525_v42, %v529_v32  ;;  %v548_v53 = vrot.slane %v546_v15, 4  ;;  %v563_v54 = vshll.u32 %v480_v46, 16  ;;  %v551_v56 = vrot.slane %v549_v49, 5  ;;  %v2337_v35 = vld [vmem:[%s2418_s28 + $0x60] ss:$8 sps:$4 sm:$0xff]  }
  0x33   : > { %v539_v52 = vrot.slane %v538_v43, 4  ;;  %2169 = vmatprep.mubr.msk.bf16.mxu1 %vm245_vm1, %v1950_v47  ;;  %v557_v57 = vrot.slane %v555_v10, 5  ;;  %v562_v58 = vrot.slane %v560_v50, 4  ;;  %v569_v59 = vshll.u32 %v481_v48, 16  ;;  %v2052_v40 = vld [vmem:[%s2418_s28 + $0xc] sm:$0x1] }
  0x34   : > { %v565_v63 = vrot.slane %v563_v54, 5  ;;  %v574_v4 = vshrl.u32 %v482_v55, 16  ;;  %v552_v6 = vor.u32 %v551_v56, %v548_v53  ;;  %v577_v8 = vshll.u32 %v482_v55, 16  ;;  %v2053_v41 = vld [vmem:[%s2418_s28 + $0x10] sm:$0xf] }
  0x35   : > { %v544_v61 = vsel %vm2458_vm4, %v539_v52, %v543_v39  ;;  %v571_v7 = vrot.slane %v569_v59, 5  ;;  %v583_v12 = vshll.u32 %v483_v60, 16  ;;  %v588_v13 = vshrl.u32 %v484_v0, 16  ;;  %v2340_v39 = vld [vmem:[%s2418_s28 + $0x70] ss:$8 sps:$4 sm:$0xff]  }
  0x36   : > { %2210 = vmatmul.mubr.msk.bf16.vlgmr.msra.gmra.mrb[0].mxu0 %vm245_vm1, %v2333_v29  ;;  %v1951_v5 = vcombine.low %v530_v51, %v544_v61  ;;  %v566_v9 = vor.u32 %v565_v63, %v562_v58  ;;  %v576_v11 = vrot.slane %v574_v4, 4  ;;  %v553_v17 = vrot.slane %v552_v6, 4  ;;  %v2054_v42 = vld [vmem:[%s2418_s28 + $0x14] sm:$0x1]  ;;  %v2055_v48 = vld [vmem:[%s2418_s28 + $0x18] sm:$0xf] }
  0x37   : > { %2218 = vmatpush3.bf16.msra.mxu0 %v1414_v30  ;;  %2213 = vmatprep.mubr.msk.bf16.mxu0 %vm245_vm1, %v2334_v37  ;;  %v579_v18 = vrot.slane %v577_v8, 5  ;;  %v591_v19 = vshll.u32 %v484_v0, 16  ;;  %v597_v20 = vshll.u32 %v485_v2, 16  ;;  %v590_v22 = vrot.slane %v588_v13, 4  ;;  %v2338_v37 = vld [vmem:[%s2418_s28 + $0x90] ss:$8 sps:$4 sm:$0xff]  }
  0x38   : > { %2312 = vmatprep.subr.msk.bf16.mxu0 %vm258_vm0, %v2536_v23  ;;  %2170 = vmatmul.mubr.msk.bf16.vlgmr.msra.gmra.mrb[0].mxu1 %vm245_vm1, %v1951_v5  ;;  %v567_v21 = vrot.slane %v566_v9, 4  ;;  %v558_v24 = vsel %vm2458_vm4, %v553_v17, %v557_v57  ;;  %v585_v26 = vrot.slane %v583_v12, 5  ;;  %v1660_v34 = vsel %vm258_vm0, %v2536_v23, 0  ;;  %v2056_v50 = vld [vmem:[%s2418_s28 + $0x1c] sm:$0x1] }
  0x39   : > { %2178 = vmatpush3.bf16.msra.mxu1 %v763_v16  ;;  %v580_v25 = vor.u32 %v579_v18, %v576_v11  ;;  %v593_v27 = vrot.slane %v591_v19, 5  ;;  %v599_v32 = vrot.slane %v597_v20, 5  ;;  %v2051_v16 = vld [vmem:[%s2418_s28 + $0x8] sm:$0xf]  ;;  %v1531_v23 = vshll.u32 %v2052_v40, 16 }
  0x3a   : > { %2308 = vmatprep.subr.msk.bf16.mxu1 %vm258_vm0, %v2393_v1  ;;  %v572_v28 = vsel %vm2458_vm4, %v567_v21, %v571_v7  ;;  %v1522_v43 = vshrl.u32 %v2051_v16, 16  ;;  %v1525_v45 = vshll.u32 %v2051_v16, 16  ;;  %v1536_v46 = vshrl.u32 %v2053_v41, 16  ;;  %v2057_v51 = vld [vmem:[%s2418_s28 + $0x20] sm:$0xf] }
  0x3b   : > { %v1952_v29 = vcombine.low %v558_v24, %v572_v28  ;;  %v581_v30 = vrot.slane %v580_v25, 4  ;;  %v594_v31 = vor.u32 %v593_v27, %v590_v22  ;;  %v1539_v15 = vshll.u32 %v2053_v41, 16  ;;  %v2339_v52 = vld [vmem:[%s2418_s28 + $0xa0] ss:$8 sps:$4 sm:$0xff]   ;;  %v2058_v58 = vld [vmem:[%s2418_s28 + $0x24] sm:$0x1] }
  0x3c   : > { %v1545_v47 = vshll.u32 %v2054_v42, 16  ;;  %v1524_v49 = vrot.slane %v1522_v43, 4  ;;  %v1527_v10 = vrot.slane %v1525_v45, 5  ;;  %v2341_v53 = vld [vmem:[%s2418_s28 + $0x80] ss:$8 sps:$4 sm:$0xff]   ;;  %v1533_v54 = vrot.slane %v1531_v23, 5 }
  0x3d   : > { %2173 = vmatprep.mubr.msk.bf16.mxu1 %vm245_vm1, %v1952_v29  ;;  %v586_v1 = vsel %vm2458_vm4, %v581_v30, %v585_v26  ;;  %v595_v33 = vrot.slane %v594_v31, 4  ;;  %v1538_v55 = vrot.slane %v1536_v46, 4  ;;  %v1541_v56 = vrot.slane %v1539_v15, 5  ;;  %v2342_v5 = vld [vmem:[%s2418_s28 + $0xb0] ss:$8 sps:$4 sm:$0xff]  }
  0x3e   : > { %2214 = vmatmul.mubr.msk.bf16.gmra.mrb[4].mxu0 %vm245_vm1, %v2335_v62  ;;  %v1547_v57 = vrot.slane %v1545_v47, 5  ;;  %v1528_v59 = vor.u32 %v1527_v10, %v1524_v49  ;;  %v1550_v60 = vshrl.u32 %v2055_v48, 16  ;;  %v1553_v61 = vshll.u32 %v2055_v48, 16  ;;  %v2059_v17 = vld [vmem:[%s2418_s28 + $0x28] sm:$0xf] }
  0x3f   : > { %2219 = vmatprep.mubr.msk.bf16.mxu0 %vm245_vm1, %v2336_v14  ;;  %v600_v36 = vsel %vm2458_vm4, %v595_v33, %v599_v32  ;;  %v1559_v62 = vshll.u32 %v2056_v50, 16  ;;  %v1542_v63 = vor.u32 %v1541_v56, %v1538_v55  ;;  %v1564_v0 = vshrl.u32 %v2057_v51, 16  ;;  %v2060_v20 = vld [vmem:[%s2418_s28 + $0x2c] sm:$0x1]  ;;  %v2061_v21 = vld [vmem:[%s2418_s28 + $0x30] sm:$0xf] }
  0x40   : > { %v1953_v38 = vcombine.low %v586_v1, %v600_v36  ;;  %v1567_v2 = vshll.u32 %v2057_v51, 16  ;;  %v1573_v4 = vshll.u32 %v2058_v58, 16  ;;  %v1529_v6 = vrot.slane %v1528_v59, 4  ;;  %v2062_v22 = vld [vmem:[%s2418_s28 + $0x34] sm:$0x1] }
  0x41   : > { %v1552_v7 = vrot.slane %v1550_v60, 4  ;;  %v1555_v8 = vrot.slane %v1553_v61, 5  ;;  %v1561_v9 = vrot.slane %v1559_v62, 5  ;;  %v1543_v11 = vrot.slane %v1542_v63, 4  ;;  %v2343_v32 = vld [vmem:[%s2418_s28 + $0xc0] ss:$8 sps:$4 sm:$0xff]  }
  0x42   : > { %2174 = vmatmul.mubr.msk.bf16.gmra.mrb[4].mxu1 %vm245_vm1, %v1953_v38  ;;  %v1566_v12 = vrot.slane %v1564_v0, 4  ;;  %v1569_v13 = vrot.slane %v1567_v2, 5  ;;  %v1575_v14 = vrot.slane %v1573_v4, 5  ;;  %v1534_v18 = vsel %vm2458_vm4, %v1529_v6, %v1533_v54  ;;  %v2063_v36 = vld [vmem:[%s2418_s28 + $0x38] sm:$0xf] }
  0x43   : > { %2179 = vmatprep.mubr.msk.bf16.mxu1 %vm245_vm1, %v2338_v37  ;;  %v1556_v19 = vor.u32 %v1555_v8, %v1552_v7  ;;  %v1548_v24 = vsel %vm2458_vm4, %v1543_v11, %v1547_v57  ;;  %v1578_v26 = vshrl.u32 %v2059_v17, 16  ;;  %v1581_v27 = vshll.u32 %v2059_v17, 16  ;;  %v2064_v16 = vld [vmem:[%s2418_s28 + $0x3c] sm:$0x1]  ;;  %v2065_v43 = vld [vmem:[%s2418_s28 + $0x40] sm:$0xf] }
  0x44   : > { %v1570_v25 = vor.u32 %v1569_v13, %v1566_v12  ;;  %v2068_v28 = vcombine.low %v1534_v18, %v1548_v24  ;;  %v1587_v30 = vshll.u32 %v2060_v20, 16  ;;  %v1592_v31 = vshrl.u32 %v2061_v21, 16  ;;  %v2066_v45 = vld [vmem:[%s2418_s28 + $0x44] sm:$0x1]  ;;  %v2344_v15 = vld [vmem:[%s2418_s28 + $0xf8] ss:$8 sps:$4 sm:$0xff]  }
  0x45   : > { %v1557_v29 = vrot.slane %v1556_v19, 4  ;;  %v1580_v33 = vrot.slane %v1578_v26, 4  ;;  %v1606_v23 = vshrl.u32 %v2063_v36, 16  ;;  %v1609_v48 = vshll.u32 %v2063_v36, 16  ;;  %v2345_v8 = vld [vmem:[%s2418_s28 + $0x108] ss:$8 sps:$4 sm:$0xff]  }
  0x46   : > { %2220 = vmatmul.mubr.msk.bf16.vlgmr.msra.gmra.mrb[0].mxu0 %vm245_vm1, %v2337_v35  ;;  %v1571_v1 = vrot.slane %v1570_v25, 4  ;;  %v1595_v35 = vshll.u32 %v2061_v21, 16  ;;  %v1589_v37 = vrot.slane %v1587_v30, 5  ;;  %v1594_v38 = vrot.slane %v1592_v31, 4 }
  0x47   : > { %2228 = vmatpush3.bf16.msra.mxu0 %v1660_v34  ;;  %2223 = vmatprep.mubr.msk.bf16.mxu0 %vm245_vm1, %v2340_v39  ;;  %v1583_v34 = vrot.slane %v1581_v27, 5  ;;  %v1601_v39 = vshll.u32 %v2062_v22, 16  ;;  %v1615_v49 = vshll.u32 %v2064_v16, 16  ;;  %v1608_v51 = vrot.slane %v1606_v23, 4 }
  0x48   : > { %v1576_v40 = vsel %vm2458_vm4, %v1571_v1, %v1575_v14  ;;  %v1597_v42 = vrot.slane %v1595_v35, 5  ;;  %v1623_v54 = vshll.u32 %v2065_v43, 16  ;;  %v1629_v55 = vshll.u32 %v2066_v45, 16 }
  0x49   : > { %v1584_v41 = vor.u32 %v1583_v34, %v1580_v33  ;;  %v1603_v47 = vrot.slane %v1601_v39, 5  ;;  %v1617_v60 = vrot.slane %v1615_v49, 5 }
  0x4a   : > { %2180 = vmatmul.mubr.msk.bf16.vlgmr.msra.gmra.mrb[0].mxu1 %vm245_vm1, %v2339_v52  ;;  %v1598_v50 = vor.u32 %v1597_v42, %v1594_v38  ;;  %v1620_v52 = vshrl.u32 %v2065_v43, 16  ;;  %v1625_v61 = vrot.slane %v1623_v54, 5  ;;  %v1631_v4 = vrot.slane %v1629_v55, 5 }
  0x4b   : > { %2238 = vmatpush3.bf16.msra.mxu1 %v2401_v3  ;;  %2183 = vmatprep.mubr.msk.bf16.mxu1 %vm245_vm1, %v2342_v5  ;;  %v1562_v3 = vsel %vm2458_vm4, %v1557_v29, %v1561_v9  ;;  %v1585_v10 = vrot.slane %v1584_v41, 4 }
  0x4c   : > { %v2069_v46 = vcombine.low %v1562_v3, %v1576_v40  ;;  %v1599_v57 = vrot.slane %v1598_v50, 4  ;;  %v1622_v58 = vrot.slane %v1620_v52, 4 }
  0x4d   : > { %v1590_v56 = vsel %vm2458_vm4, %v1585_v10, %v1589_v37 }
  0x4e   : > { %2224 = vmatmul.mubr.msk.bf16.gmra.mrb[4].mxu0 %vm245_vm1, %v2341_v53  ;;  %v1611_v53 = vrot.slane %v1609_v48, 5  ;;  %v1604_v62 = vsel %vm2458_vm4, %v1599_v57, %v1603_v47  ;;  %v1626_v2 = vor.u32 %v1625_v61, %v1622_v58 }
  0x4f   : > { %2229 = vmatprep.mubr.msk.bf16.mxu0 %vm245_vm1, %v2068_v28  ;;  %v2070_v63 = vcombine.low %v1590_v56, %v1604_v62 }
  0x50   : > { %v1612_v59 = vor.u32 %v1611_v53, %v1608_v51  ;;  %v1627_v6 = vrot.slane %v1626_v2, 4 }
  0x52   : > { %2184 = vmatmul.mubr.msk.bf16.gmra.mrb[4].mxu1 %vm245_vm1, %v2343_v32  ;;  %v1613_v0 = vrot.slane %v1612_v59, 4  ;;  %v1632_v7 = vsel %vm2458_vm4, %v1627_v6, %v1631_v4 }
  0x53   : > { %2193 = vmatprep.mubr.msk.bf16.mxu1 %vm245_vm1, %v2344_v15 }
  0x54   : > { %v1618_v5 = vsel %vm2458_vm4, %v1613_v0, %v1617_v60 }
  0x55   : > { %v2071_v9 = vcombine.low %v1618_v5, %v1632_v7 }
  0x56   : > { %2230 = vmatmul.mubr.msk.bf16.vlgmr.msra.gmra.mrb[0].mxu0 %vm245_vm1, %v2069_v46 }
  0x57   : > { %2233 = vmatprep.mubr.msk.bf16.mxu0 %vm245_vm1, %v2070_v63 }
  0x5e   : > { %2234 = vmatmul.mubr.msk.bf16.gmra.mrb[4].mxu0 %vm245_vm1, %v2071_v9  ;;  %2194 = vmatmul.mubr.msk.bf16.vlgmr.msra.gmra.mrb[4].mxu1 %vm245_vm1, %v2345_v8 }
 0x11d   : > { %v2181_v11 = vpop.f32.mrb[0].mxu1 }
 0x11e   : > { %v799_v12 = vpop.f32.mrb[1].mxu1 }
 0x11f   : > { %v2182_v13 = vpop.f32.mrb[2].mxu1 }
 0x120   : > { %v802_v14 = vpop.f32.mrb[3].mxu1 }
 0x129   : > { %v2231_v17 = vpop.f32.mrb[0].mxu0 }
 0x12a   : > { %v2239_v18 = vadd.f32 %v2231_v17, %v2181_v11  ;;  %v1696_v19 = vpop.f32.mrb[1].mxu0 }
 0x12b   : > { %v2240_v20 = vadd.f32 %v1696_v19, %v799_v12  ;;  %v2232_v21 = vpop.f32.mrb[2].mxu0 }
 0x12c   : > { %v2241_v22 = vadd.f32 %v2232_v21, %v2182_v13  ;;  %v1699_v24 = vpop.f32.mrb[3].mxu0  ;;  %v1791_v30 = vmul.f32 %v2239_v18, %v2239_v18 }
 0x12d   : > { %v2242_v44 = vadd.f32 %v1699_v24, %v802_v14  ;;  %v1789_v26 = vmul.f32 %v2240_v20, %v2240_v20 }
 0x12e   : > { %v2087_v25 = vpack.c.bf16 %v2241_v22, %v2239_v18  ;;  %v1792_v1 = vmul.f32 %v2241_v22, %v2241_v22 }
 0x12f   : > { %v2082_v27 = vpack.c.bf16 %v2242_v44, %v2240_v20  ;;  %v1775_v28 = vadd.f32 %v2242_v44, %v2240_v20  ;;  %v1790_v29 = vmul.f32 %v2242_v44, %v2242_v44 }
 0x130   : > { %2099 = vst [vmem:[%s2634_s18 + $0x8] sm:$0xff] %v2087_v25  }
 0x131   : > { %2083 = vst [vmem:[%s2634_s18] sm:$0xff] %v2082_v27   ;;  %v1776_v31 = vadd.f32 %v2239_v18, %v1775_v28  ;;  %v1797_v32 = vadd.f32 %v1790_v29, %v1789_v26  ;;  %v2235_v34 = vpop.f32.mrb[4].mxu0  ;;  %v2195_v3 = vpop.f32.mrb[4].mxu1 }
 0x132   : > { %v1712_v36 = vpop.f32.mrb[5].mxu0  ;;  %v2243_v39 = vadd.f32 %v2235_v34, %v2195_v3  ;;  %v950_v16 = vpop.f32.mrb[5].mxu1 }
 0x133   : > { %v1798_v33 = vadd.f32 %v1797_v32, %v1791_v30  ;;  %v1777_v35 = vadd.f32 %v2241_v22, %v1776_v31  ;;  %v2236_v38 = vpop.f32.mrb[6].mxu0  ;;  %v2244_v41 = vadd.f32 %v1712_v36, %v950_v16  ;;  %v2196_v42 = vpop.f32.mrb[6].mxu1 }
 0x134   : > { %v1715_v40 = vpop.f32.mrb[7].mxu0  ;;  %v2245_v43 = vadd.f32 %v2236_v38, %v2196_v42  ;;  %v953_v45 = vpop.f32.mrb[7].mxu1  ;;  %v1795_v51 = vmul.f32 %v2243_v39, %v2243_v39 }
 0x135   : > { %v1799_v37 = vadd.f32 %v1798_v33, %v1792_v1  ;;  %v1778_v23 = vadd.f32 %v2244_v41, %v1777_v35  ;;  %v1793_v46 = vmul.f32 %v2244_v41, %v2244_v41  ;;  %v2246_v15 = vadd.f32 %v1715_v40, %v953_v45 }
 0x136   : > { %v2097_v47 = vpack.c.bf16 %v2245_v43, %v2243_v39  ;;  %v1796_v54 = vmul.f32 %v2245_v43, %v2245_v43 }
 0x137   : > { %v1800_v48 = vadd.f32 %v1799_v37, %v1793_v46  ;;  %v2092_v49 = vpack.c.bf16 %v2246_v15, %v2244_v41  ;;  %v1779_v10 = vadd.f32 %v2246_v15, %v1778_v23  ;;  %v1794_v50 = vmul.f32 %v2246_v15, %v2246_v15 }
 0x138   : > { %2101 = vst [vmem:[%s2634_s18 + $0x18] sm:$0xff] %v2097_v47  }
 0x139   : > { %2100 = vst [vmem:[%s2634_s18 + $0x10] sm:$0xff] %v2092_v49   ;;  %v1780_v52 = vadd.f32 %v2243_v39, %v1779_v10  ;;  %v1801_v53 = vadd.f32 %v1800_v48, %v1794_v50 }
 0x13b   : > { %v1781_v55 = vadd.f32 %v2245_v43, %v1780_v52  ;;  %v1802_v56 = vadd.f32 %v1801_v53, %v1795_v51 }
 0x13d   : > { %v1782_v57 = vrot.slane %v1781_v55, 4  ;;  %v1803_v58 = vadd.f32 %v1802_v56, %v1796_v54 }
 0x13f   : > { %v1783_v59 = vadd.f32 %v1782_v57, %v1781_v55  ;;  %v1804_v60 = vrot.slane %v1803_v58, 4 }
 0x141   : > { %v1784_v61 = vrot.slane %v1783_v59, 2  ;;  %v1805_v62 = vadd.f32 %v1804_v60, %v1803_v58 }
 0x143   : > { %v1785_v63 = vadd.f32 %v1784_v61, %v1783_v59  ;;  %v1806_v0 = vrot.slane %v1805_v62, 2 }
 0x145   : > { %v1786_v2 = vrot.slane %v1785_v63, 1  ;;  %v1807_v4 = vadd.f32 %v1806_v0, %v1805_v62 }
 0x147   : > { %v1787_v5 = vadd.f32 %v1786_v2, %v1785_v63  ;;  %v1808_v6 = vrot.slane %v1807_v4, 1 }
 0x149   : > { %1788 = vst [vmem:[%s211_s21] sm:$0x1] %v1787_v5  ;;  %v1809_v7 = vadd.f32 %v1808_v6, %v1807_v4 }
 0x14b   : > { %1810 = vst [vmem:[%s214_s24] sm:$0x1] %v1809_v7 }
 0x14c PF: > { %s15_s15 = sadd.s32 1, %s2352_s15  }
 0x14d   : > { %p12_p4 = scmp.ge.s32.totalorder %s15_s15, 4  }
 0x14f   :  { %14 = sbr.rel (!%p12_p4) target bundleno = 1 (0x1), region = 95 }

// kernel: block_forward.5
= control target key start
LH: loop header
LB: loop body
LE: loop exit
PB: predicated region body
PF: predicated region fallthrough
CT: control target
= control target key end

     0   :  { %s3694_s21 = smov 0   ;;  %s4257_s0 = inlined_call_operand.vmem [shape: bf16[2,8,8,128], index: 0, kind: input, shape index: {}]   ;;  %s4258_s1 = inlined_call_operand.vmem [shape: f32[1,128], index: 1, kind: input, shape index: {}]   ;;  %s4259_s2 = inlined_call_operand.vmem [shape: f32[1,128], index: 2, kind: input, shape index: {}]   ;;  %s4260_s3 = inlined_call_operand.vmem [shape: bf16[9,128,128], index: 3, kind: input, shape index: {}]   ;;  %s4261_s4 = inlined_call_operand.vmem [shape: bf16[2,8,8,128], index: 4, kind: output, shape index: {0}]   ;;  %s4262_s5 = inlined_call_operand.vmem [shape: f32[2,1,128], index: 5, kind: output, shape index: {1}]   ;;  %s4263_s6 = inlined_call_operand.vmem [shape: f32[2,1,128], index: 6, kind: output, shape index: {2}]  }
   0x1 LB: > { %s2820_s22 = sadd.s32 4294967295, %s3656_s21   ;;  %p2824_p0 = scmp.ge.s32.totalorder %s3656_s21, 1  ;;  %s3656_s21 = sphi %s3694_s21, %s17_s21  }
   0x2   : > { %p217_p1 = scmp.lt.s32.totalorder %s3656_s21, 3 }
   0x4   : > { %p218_p2 = pnand %p2824_p0, %p217_p1 }
   0x5   : > { %v3566_v0 = vld [vmem:[%s4260_s3] sm:$0xff] (!%p218_p2)   ;;  %p3707_p3 = scmp.lt.s32.totalorder (!%p218_p2), %s2820_s22, 1  ;;  %v3567_v1 = vld [vmem:[%s4260_s3 + $0x8] sm:$0xff] (!%p218_p2)   ;;  %v3658_v2 = vmov (!%p218_p2), 0   ;;  %v3568_v4 = vld [vmem:[%s4260_s3 + $0x10] sm:$0xff] (!%p218_p2)   ;;  %vm457_vm0 = vcmask (!%p218_p2), 1043456  }
   0x6   : > { %221 = sbr.rel (%p218_p2) target bundleno = 447 (0x1bf), region = 36  ;;  %3261 = vmatprep.subr.bf16.mxu1 (!%p218_p2), %v3566_v0  ;;  %324 = vst [vmem:[#allocation2] sm:$0xf] (!%p218_p2), %v3658_v2  ;;  %326 = vst [vmem:[#allocation2 + $0x8] sm:$0xf] (!%p218_p2), %v3658_v2  ;;  %v3569_v3 = vld [vmem:[%s4260_s3 + $0x100] sm:$0xff] (!%p218_p2)  }
   0x7   : > { %325 = vst [vmem:[#allocation2 + $0x4] sm:$0x1] (!%p218_p2), %v3658_v2  ;;  %327 = vst [vmem:[#allocation2 + $0xc] sm:$0x1] (!%p218_p2), %v3658_v2  ;;  %3262 = vmatpush3.bf16.msra.mxu1 (!%p218_p2), %v3566_v0  ;;  %3357 = vmatprep.subr.bf16.mxu0 (!%p218_p2), %v3569_v3  ;;  %v3571_v5 = vld [vmem:[%s4260_s3 + $0x108] sm:$0xff] (!%p218_p2)   ;;  %v3573_v6 = vld [vmem:[%s4260_s3 + $0x110] sm:$0xff] (!%p218_p2)  }
   0x8   : > { %328 = vst [vmem:[#allocation2 + $0x10] sm:$0xf] (!%p218_p2), %v3658_v2  ;;  %329 = vst [vmem:[#allocation2 + $0x14] sm:$0x1] (!%p218_p2), %v3658_v2  ;;  %3263 = vmatprep.subr.bf16.mxu1 (!%p218_p2), %v3567_v1  ;;  %3358 = vmatpush3.bf16.msra.mxu0 (!%p218_p2), %v3569_v3  ;;  %v3570_v7 = vld [vmem:[%s4260_s3 + $0x18] sm:$0xff] (!%p218_p2)   ;;  %v3572_v9 = vld [vmem:[%s4260_s3 + $0x20] sm:$0xff] (!%p218_p2)  }
   0x9   : > { %330 = vst [vmem:[#allocation2 + $0x18] sm:$0xf] (!%p218_p2), %v3658_v2  ;;  %331 = vst [vmem:[#allocation2 + $0x1c] sm:$0x1] (!%p218_p2), %v3658_v2  ;;  %3359 = vmatprep.subr.bf16.mxu0 (!%p218_p2), %v3571_v5  ;;  %v3575_v8 = vld [vmem:[%s4260_s3 + $0x118] sm:$0xff] (!%p218_p2)   ;;  %v3574_v12 = vld [vmem:[%s4260_s3 + $0x28] sm:$0xff] (!%p218_p2)  }
   0xa   : > { %332 = vst [vmem:[#allocation2 + $0x20] sm:$0xf] (!%p218_p2), %v3658_v2  ;;  %333 = vst [vmem:[#allocation2 + $0x24] sm:$0x1] (!%p218_p2), %v3658_v2  ;;  %v3752_v10 = vld [vmem:[%s4258_s1] ss:$0 sm:$0xff] (!%p218_p2) }
   0xb   : > { %334 = vst [vmem:[#allocation2 + $0x28] sm:$0xf] (!%p218_p2), %v3658_v2  ;;  %335 = vst [vmem:[#allocation2 + $0x2c] sm:$0x1] (!%p218_p2), %v3658_v2  ;;  %3264 = vmatpush3.bf16.msra.mxu1 (!%p218_p2), %v3567_v1  ;;  %v3577_v13 = vld [vmem:[%s4260_s3 + $0x120] sm:$0xff] (!%p218_p2)   ;;  %v3579_v20 = vld [vmem:[%s4260_s3 + $0x128] sm:$0xff] (!%p218_p2)  }
   0xc   : > { %336 = vst [vmem:[#allocation2 + $0x30] sm:$0xf] (!%p218_p2), %v3658_v2  ;;  %337 = vst [vmem:[#allocation2 + $0x34] sm:$0x1] (!%p218_p2), %v3658_v2  ;;  %3265 = vmatprep.subr.bf16.mxu1 (!%p218_p2), %v3568_v4  ;;  %3360 = vmatpush3.bf16.msra.mxu0 (!%p218_p2), %v3571_v5  ;;  %v3764_v16 = vld [vmem:[%s4259_s2] ss:$0 sm:$0xff] (!%p218_p2) }
   0xd   : > { %338 = vst [vmem:[#allocation2 + $0x38] sm:$0xf] %v3658_v2  ;;  %339 = vst [vmem:[#allocation2 + $0x3c] sm:$0x1] %v3658_v2  ;;  %s4274_s22 = smov (!%p3707_p3, %s2820_s22), 1  ;;  %3361 = vmatprep.subr.bf16.mxu0 %v3573_v6  ;;  %v3576_v25 = vld [vmem:[%s4260_s3 + $0x30] sm:$0xff]  }
   0xe   : > { %340 = vst [vmem:[#allocation2 + $0x40] sm:$0xf] %v3658_v2  ;;  %341 = vst [vmem:[#allocation2 + $0x44] sm:$0x1] %v3658_v2  ;;  %s3101_s14 = sshll.u32 %s4274_s22, 5  ;;  %v3582_v31 = vld [vmem:[%s4260_s3 + $0x130] sm:$0xff]   ;;  %s265_s8 = scalar_lea.vmem %s4262_s5, %s4274_s22 }
   0xf   : > { %342 = vst [vmem:[#allocation2 + $0x48] sm:$0xf] %v3658_v2  ;;  %343 = vst [vmem:[#allocation2 + $0x4c] sm:$0x1] %v3658_v2  ;;  %3266 = vmatpush3.bf16.msra.mxu1 %v3568_v4  ;;  %s3744_s19 = scalar_lea.vmem %s4257_s0, %s3101_s14  ;;  %vm458_vm1 = vsmask.f32 7938  ;;  %s262_s30 = scalar_lea.vmem %s4261_s4, %s3101_s14 }
  0x10   : > { %3267 = vmatprep.subr.bf16.mxu1 %v3570_v7  ;;  %3362 = vmatpush3.bf16.msra.mxu0 %v3573_v6  ;;  %v3112_v11 = vld [vmem:[%s3744_s19] sm:$0xff]   ;;  %v3147_v19 = vld [vmem:[%s3744_s19 + $0x8] sm:$0xff]   ;;  %v3578_v34 = vld [vmem:[%s4260_s3 + $0x38] sm:$0xff]   ;;  %vm463_vm2 = vcmask 1040384   ;;  %vm464_vm3 = vsmask.f32 256  ;;  %s268_s11 = scalar_lea.vmem %s4263_s6, %s4274_s22 }
  0x11   : > { %3363 = vmatprep.subr.bf16.mxu0 %v3575_v8  ;;  %v3113_v14 = vunpack.c.l.bf16 %v3112_v11  ;;  %v3114_v15 = vunpack.c.h.bf16 %v3112_v11  ;;  %v3117_v22 = vunpack.c.l.bf16 %v3147_v19  ;;  %v3118_v23 = vunpack.c.h.bf16 %v3147_v19  ;;  %vm3788_vm4 = vmand %vm457_vm0, %vm458_vm1  ;;  %v460_v41 = vld [vmem:[#allocation2 + $0x8] sm:$0xf]  ;;  %v3795_v42 = vld [vmem:[%s4260_s3 + $0x40] sm:$0xff]  }
  0x12   : > { %v469_v44 = vld [vmem:[#allocation2 + $0x10] sm:$0xf]  ;;  %v3585_v45 = vld [vmem:[%s4260_s3 + $0x138] sm:$0xff]   ;;  %vm3802_vm5 = vmand %vm463_vm2, %vm464_vm3  ;;  %vm696_vm6 = vsmask.f32 3328  ;;  %vm1013_vm9 = vcmask 1042432  }
  0x13   : > { %3268 = vmatpush3.bf16.msra.mxu1 %v3570_v7  ;;  %v294_v17 = vmul.f32 %v3113_v14, %v3752_v10  ;;  %v295_v18 = vmul.f32 %v3114_v15, %v3752_v10  ;;  %v296_v27 = vmul.f32 %v3117_v22, %v3752_v10  ;;  %v297_v29 = vmul.f32 %v3118_v23, %v3752_v10  ;;  %v466_v51 = vld [vmem:[#allocation2 + $0xc] sm:$0x1]  ;;  %v472_v57 = vld [vmem:[#allocation2 + $0x14] sm:$0x1]  ;;  %v475_v59 = vld [vmem:[#allocation2 + $0x18] sm:$0xf] }
  0x14   : > { %3269 = vmatprep.subr.bf16.mxu1 %v3572_v9  ;;  %3364 = vmatpush3.bf16.msra.mxu0 %v3575_v8  ;;  %v478_v63 = vld [vmem:[#allocation2 + $0x1c] sm:$0x1]  ;;  %v3815_v4 = vld [vmem:[%s4260_s3 + $0x140] sm:$0xff]   ;;  %vm697_vm7 = vsmask.f32 7440  ;;  %vm1014_vm10 = vcmask 1046532  }
  0x15   : > { %3365 = vmatprep.subr.bf16.mxu0 %v3577_v13  ;;  %v308_v21 = vadd.f32 %v3764_v16, %v294_v17  ;;  %v309_v24 = vadd.f32 %v3764_v16, %v295_v18  ;;  %v310_v32 = vadd.f32 %v3764_v16, %v296_v27  ;;  %v311_v35 = vadd.f32 %v3764_v16, %v297_v29  ;;  %v481_v5 = vld [vmem:[#allocation2 + $0x20] sm:$0xf]  ;;  %v484_v11 = vld [vmem:[#allocation2 + $0x24] sm:$0x1]  ;;  %v3149_v23 = vld [vmem:[%s3744_s19 + $0x18] sm:$0xff]  }
  0x16   : > { %vm3846_vm8 = vmor %vm696_vm6, %vm697_vm7  ;;  %v3604_v38 = vld [vmem:[%s4260_s3 + $0x90] sm:$0xff]  }
  0x17   : > { %3270 = vmatpush3.bf16.msra.mxu1 %v3572_v9  ;;  %v316_v26 = vmax.f32 %v308_v21, 0.0  ;;  %v317_v28 = vmax.f32 %v309_v24, 0.0  ;;  %v318_v39 = vmax.f32 %v310_v32, 0.0  ;;  %v319_v46 = vmax.f32 %v311_v35, 0.0  ;;  %vm3993_vm11 = vmor %vm1013_vm9, %vm1014_vm10 }
  0x18   : > { %3271 = vmatprep.subr.bf16.mxu1 %v3574_v12  ;;  %3366 = vmatpush3.bf16.msra.mxu0 %v3577_v13  ;;  %v3125_v24 = vunpack.c.l.bf16 %v3149_v23 }
  0x19   : > { %3367 = vmatprep.subr.bf16.mxu0 %v3579_v20  ;;  %v3103_v30 = vpack.c.bf16 %v316_v26, %v316_v26  ;;  %v3104_v33 = vpack.c.bf16 %v317_v28, %v317_v28  ;;  %v3105_v48 = vpack.c.bf16 %v318_v39, %v318_v39  ;;  %v3106_v52 = vpack.c.bf16 %v319_v46, %v319_v46  ;;  %v3584_v39 = vld [vmem:[%s4260_s3 + $0x48] sm:$0xff]  }
  0x1a   : > { %v300_v32 = vmul.f32 %v3125_v24, %v3752_v10  ;;  %v3588_v24 = vld [vmem:[%s4260_s3 + $0x58] sm:$0xff]  }
  0x1b   : > { %3272 = vmatpush3.bf16.msra.mxu1 %v3574_v12  ;;  %v377_v36 = vshrl.u32 %v3103_v30, 16  ;;  %v380_v37 = vshll.u32 %v3103_v30, 16  ;;  %v385_v40 = vshrl.u32 %v3104_v33, 16  ;;  %v388_v43 = vshll.u32 %v3104_v33, 16  ;;  %v3148_v12 = vld [vmem:[%s3744_s19 + $0x10] sm:$0xff]  }
  0x1c   : > { %3273 = vmatprep.subr.bf16.mxu1 %v3576_v25  ;;  %3368 = vmatpush3.bf16.msra.mxu0 %v3579_v20  ;;  %v393_v56 = vshrl.u32 %v3105_v48, 16  ;;  %v396_v58 = vshll.u32 %v3105_v48, 16  ;;  %v401_v61 = vshrl.u32 %v3106_v52, 16  ;;  %v404_v62 = vshll.u32 %v3106_v52, 16 }
  0x1d   : > { %v379_v47 = vrot.slane %v377_v36, 7  ;;  %3369 = vmatprep.subr.bf16.mxu0 %v3582_v31  ;;  %v387_v49 = vrot.slane %v385_v40, 7  ;;  %v3121_v15 = vunpack.c.l.bf16 %v3148_v12  ;;  %v3122_v19 = vunpack.c.h.bf16 %v3148_v12 }
  0x1e   : > { %v395_v1 = vrot.slane %v393_v56, 7  ;;  %v403_v7 = vrot.slane %v401_v61, 7 }
  0x1f   : > { %3274 = vmatpush3.bf16.msra.mxu1 %v3576_v25  ;;  %v382_v53 = vor.u32 %v380_v37, %v379_v47  ;;  %v383_v54 = vrot.slane %v379_v47, 4  ;;  %v390_v55 = vor.u32 %v388_v43, %v387_v49  ;;  %v391_v60 = vrot.slane %v387_v49, 4 }
  0x20   : > { %3275 = vmatprep.subr.bf16.mxu1 %v3578_v34  ;;  %3370 = vmatpush3.bf16.msra.mxu0 %v3582_v31  ;;  %v398_v8 = vor.u32 %v396_v58, %v395_v1  ;;  %v399_v9 = vrot.slane %v395_v1, 4  ;;  %v406_v13 = vor.u32 %v404_v62, %v403_v7  ;;  %v407_v14 = vrot.slane %v403_v7, 4 }
  0x21   : > { %v461_v0 = vsel %vm3788_vm4, %v382_v53, %v460_v41  ;;  %v470_v2 = vsel %vm3788_vm4, %v390_v55, %v469_v44  ;;  %3371 = vmatprep.subr.bf16.mxu0 %v3585_v45  ;;  %v467_v3 = vsel %vm3802_vm5, %v383_v54, %v466_v51  ;;  %v473_v6 = vsel %vm3802_vm5, %v391_v60, %v472_v57 }
  0x22   : > { %462 = vst [vmem:[#allocation2 + $0x8] sm:$0xf] %v461_v0  ;;  %471 = vst [vmem:[#allocation2 + $0x10] sm:$0xf] %v470_v2  ;;  %v476_v17 = vsel %vm3788_vm4, %v398_v8, %v475_v59  ;;  %v479_v18 = vsel %vm3802_vm5, %v399_v9, %v478_v63  ;;  %v482_v20 = vsel %vm3788_vm4, %v406_v13, %v481_v5  ;;  %v3126_v31 = vunpack.c.h.bf16 %v3149_v23  ;;  %v3586_v2 = vld [vmem:[%s4260_s3 + $0x50] sm:$0xff]  }
  0x23   : > { %3276 = vmatpush3.bf16.msra.mxu1 %v3578_v34  ;;  %468 = vst [vmem:[#allocation2 + $0xc] sm:$0x1] %v467_v3  ;;  %474 = vst [vmem:[#allocation2 + $0x14] sm:$0x1] %v473_v6  ;;  %v485_v21 = vsel %vm3802_vm5, %v407_v14, %v484_v11  ;;  %v298_v22 = vmul.f32 %v3121_v15, %v3752_v10  ;;  %v299_v27 = vmul.f32 %v3122_v19, %v3752_v10  ;;  %v680_v11 = vld [vmem:[#allocation2] sm:$0xf] }
  0x24   : > { %3285 = vmatprep.subr.bf16.mxu1 %v3795_v42  ;;  %3372 = vmatpush3.bf16.msra.mxu0 %v3585_v45  ;;  %477 = vst [vmem:[#allocation2 + $0x18] sm:$0xf] %v476_v17  ;;  %480 = vst [vmem:[#allocation2 + $0x1c] sm:$0x1] %v479_v18  ;;  %v314_v59 = vadd.f32 %v3764_v16, %v300_v32  ;;  %v3841_v60 = vmul.f32 %v3126_v31, %v3752_v10  ;;  %v3855_v17 = vld [vmem:[#allocation2 + $0x4] sm:$0x1] }
  0x25   : > { %3381 = vmatprep.subr.bf16.mxu0 %v3815_v4  ;;  %483 = vst [vmem:[#allocation2 + $0x20] sm:$0xf] %v482_v20  ;;  %486 = vst [vmem:[#allocation2 + $0x24] sm:$0x1] %v485_v21  ;;  %v312_v25 = vadd.f32 %v3764_v16, %v298_v22  ;;  %v313_v47 = vadd.f32 %v3764_v16, %v299_v27  ;;  %v487_v32 = vld [vmem:[#allocation2 + $0x28] sm:$0xf] }
  0x27   : > { %v320_v43 = vmax.f32 %v312_v25, 0.0  ;;  %v321_v25 = vmax.f32 %v313_v47, 0.0 }
  0x29   : > { %v3580_v26 = vld [vmem:[#allocation2] ss:$8 sps:$4 sm:$0xff]   ;;  %v1406_v30 = vld [vmem:[#allocation2 + $0x10] sm:$0xf]  ;;  %v3107_v58 = vpack.c.bf16 %v320_v43, %v320_v43 }
  0x2a   : > { %v1404_v28 = vld [vmem:[#allocation2 + $0x8] sm:$0xf]  ;;  %v1405_v29 = vld [vmem:[#allocation2 + $0xc] sm:$0x1]  ;;  %3277 = vmatprep.mubr.bf16.mxu1 %v3580_v26  ;;  %v1407_v33 = vld [vmem:[#allocation2 + $0x14] sm:$0x1] }
  0x2b   : > { %v1421_v34 = vshrl.u32 %v1404_v28, 16  ;;  %v1424_v35 = vshll.u32 %v1404_v28, 16  ;;  %v1430_v36 = vshll.u32 %v1405_v29, 16  ;;  %v1435_v37 = vshrl.u32 %v1406_v30, 16  ;;  %v3583_v44 = vld [vmem:[#allocation2 + $0x10] ss:$8 sps:$4 sm:$0xff]  }
  0x2c   : > { %v1438_v40 = vshll.u32 %v1406_v30, 16  ;;  %v1444_v41 = vshll.u32 %v1407_v33, 16  ;;  %v1408_v53 = vld [vmem:[#allocation2 + $0x18] sm:$0xf]  ;;  %3278 = vmatmul.mubr.bf16.vlgmr.msra.gmra.mrb[0].mxu1 %v3583_v44  ;;  %v1409_v55 = vld [vmem:[#allocation2 + $0x1c] sm:$0x1]  ;;  %v3108_v33 = vpack.c.bf16 %v321_v25, %v321_v25 }
  0x2d   : > { %v1423_v45 = vrot.slane %v1421_v34, 4  ;;  %v1426_v46 = vrot.slane %v1424_v35, 5  ;;  %v1432_v48 = vrot.slane %v1430_v36, 5  ;;  %v1437_v49 = vrot.slane %v1435_v37, 4  ;;  %v1410_v56 = vld [vmem:[#allocation2 + $0x20] sm:$0xf]  ;;  %3286 = vmatpush3.bf16.msra.mxu1 %v3795_v42 }
  0x2e   : > { %v1440_v51 = vrot.slane %v1438_v40, 5  ;;  %v1446_v52 = vrot.slane %v1444_v41, 5  ;;  %v1411_v57 = vld [vmem:[#allocation2 + $0x24] sm:$0x1]  ;;  %v1449_v63 = vshrl.u32 %v1408_v53, 16  ;;  %v1452_v0 = vshll.u32 %v1408_v53, 16  ;;  %3287 = vmatprep.subr.bf16.mxu1 %v3584_v39 }
  0x2f   : > { %v1427_v54 = vor.u32 %v1426_v46, %v1423_v45  ;;  %v1458_v1 = vshll.u32 %v1409_v55, 16  ;;  %v1463_v10 = vshrl.u32 %v1410_v56, 16  ;;  %v1466_v5 = vshll.u32 %v1410_v56, 16  ;;  %v3589_v37 = vld [vmem:[%s4260_s3 + $0x148] sm:$0xff]   ;;  %v3590_v46 = vld [vmem:[%s4260_s3 + $0x60] sm:$0xff]  }
  0x30   : > { %v1441_v62 = vor.u32 %v1440_v51, %v1437_v49  ;;  %v1472_v6 = vshll.u32 %v1411_v57, 16  ;;  %v1451_v7 = vrot.slane %v1449_v63, 4  ;;  %v1454_v8 = vrot.slane %v1452_v0, 5  ;;  %v682_v41 = vld [vmem:[#allocation2 + $0x8] sm:$0xf] }
  0x31   : > { %v1428_v3 = vrot.slane %v1427_v54, 4  ;;  %v1460_v9 = vrot.slane %v1458_v1, 5  ;;  %v1465_v13 = vrot.slane %v1463_v10, 4  ;;  %v1468_v14 = vrot.slane %v1466_v5, 5  ;;  %3288 = vmatpush3.bf16.msra.mxu1 %v3584_v39  ;;  %v683_v43 = vld [vmem:[#allocation2 + $0xc] sm:$0x1] }
  0x32   : > { %v1442_v42 = vrot.slane %v1441_v62, 4  ;;  %v1474_v15 = vrot.slane %v1472_v6, 5  ;;  %v1455_v19 = vor.u32 %v1454_v8, %v1451_v7  ;;  %v409_v20 = vshrl.u32 %v3107_v58, 16  ;;  %3289 = vmatprep.subr.bf16.mxu1 %v3586_v2  ;;  %v490_v51 = vld [vmem:[#allocation2 + $0x2c] sm:$0x1]  ;;  %v3591_v10 = vld [vmem:[%s4260_s3 + $0x150] sm:$0xff]  }
  0x33   : > { %v1433_v12 = vsel %vm3846_vm8, %v1428_v3, %v1432_v48  ;;  %v412_v21 = vshll.u32 %v3107_v58, 16  ;;  %v1469_v23 = vor.u32 %v1468_v14, %v1465_v13  ;;  %v322_v26 = vmax.f32 %v314_v59, 0.0  ;;  %v493_v55 = vld [vmem:[#allocation2 + $0x30] sm:$0xf]  ;;  %v499_v56 = vld [vmem:[#allocation2 + $0x38] sm:$0xf] }
  0x34   : > { %v1447_v18 = vsel %vm3846_vm8, %v1442_v42, %v1446_v52  ;;  %v1456_v27 = vrot.slane %v1455_v19, 4  ;;  %v411_v28 = vrot.slane %v409_v20, 7  ;;  %v700_v29 = vshrl.u32 %v680_v11, 16  ;;  %v496_v58 = vld [vmem:[#allocation2 + $0x34] sm:$0x1]  ;;  %v3592_v62 = vld [vmem:[%s4260_s3 + $0x68] sm:$0xff]  }
  0x35   : > { %v2959_v22 = vcombine.low %v1433_v12, %v1447_v18  ;;  %v703_v30 = vshll.u32 %v680_v11, 16  ;;  %v1470_v31 = vrot.slane %v1469_v23, 4  ;;  %v3109_v34 = vpack.c.bf16 %v322_v26, %v322_v26  ;;  %3290 = vmatpush3.bf16.msra.mxu1 %v3586_v2  ;;  %v684_v59 = vld [vmem:[#allocation2 + $0x10] sm:$0xf]  ;;  %v3878_v2 = vld [vmem:[#allocation2 + $0x14] sm:$0x1] }
  0x36   : > { %v709_v35 = vshll.u32 %v3855_v17, 16  ;;  %v1461_v36 = vsel %vm3846_vm8, %v1456_v27, %v1460_v9  ;;  %v414_v39 = vor.u32 %v412_v21, %v411_v28  ;;  %v415_v40 = vrot.slane %v411_v28, 4  ;;  %3291 = vmatprep.subr.bf16.mxu1 %v3588_v24  ;;  %v686_v8 = vld [vmem:[#allocation2 + $0x18] sm:$0xf]  ;;  %v3889_v9 = vld [vmem:[#allocation2 + $0x1c] sm:$0x1] }
  0x37   : > { %3373 = vmatprep.mubr.bf16.mxu0 %v2959_v22  ;;  %v702_v44 = vrot.slane %v700_v29, 4  ;;  %v1475_v45 = vsel %vm3846_vm8, %v1470_v31, %v1474_v15  ;;  %v417_v47 = vshrl.u32 %v3108_v33, 16  ;;  %v420_v48 = vshll.u32 %v3108_v33, 16  ;;  %v502_v21 = vld [vmem:[#allocation2 + $0x3c] sm:$0x1]  ;;  %v3595_v27 = vld [vmem:[%s4260_s3 + $0x70] sm:$0xff]  }
  0x38   : > { %v425_v49 = vshrl.u32 %v3109_v34, 16  ;;  %v2960_v52 = vcombine.low %v1461_v36, %v1475_v45  ;;  %v488_v53 = vsel %vm3788_vm4, %v414_v39, %v487_v32  ;;  %v428_v54 = vshll.u32 %v3109_v34, 16  ;;  %v3593_v26 = vld [vmem:[%s4260_s3 + $0x158] sm:$0xff]   ;;  %v2425_v61 = vld [vmem:[#allocation2 + $0x20] sm:$0xe] }
  0x39   : > { %v705_v57 = vrot.slane %v703_v30, 5  ;;  %489 = vst [vmem:[#allocation2 + $0x28] sm:$0xf] %v488_v53  ;;  %v419_v63 = vrot.slane %v417_v47, 7  ;;  %v714_v1 = vshrl.u32 %v682_v41, 16  ;;  %v3882_v3 = vadd.f32 %v3764_v16, %v3841_v60  ;;  %3292 = vmatpush3.bf16.msra.mxu1 %v3588_v24  ;;  %v3598_v53 = vld [vmem:[%s4260_s3 + $0x78] sm:$0xff]  }
  0x3a   : > { %v427_v0 = vrot.slane %v425_v49, 7  ;;  %3374 = vmatmul.mubr.bf16.vlgmr.msra.gmra.mrb[0].mxu0 %v2960_v52  ;;  %v717_v6 = vshll.u32 %v682_v41, 16  ;;  %v723_v42 = vshll.u32 %v683_v43, 16  ;;  %v491_v7 = vsel %vm3802_vm5, %v415_v40, %v490_v51  ;;  %3293 = vmatprep.subr.bf16.mxu1 %v3590_v46  ;;  %v3596_v52 = vld [vmem:[%s4260_s3 + $0x160] sm:$0xff]  }
  0x3b   : > { %v706_v5 = vor.u32 %v705_v57, %v702_v44  ;;  %3382 = vmatpush3.bf16.msra.mxu0 %v3815_v4  ;;  %v422_v16 = vor.u32 %v420_v48, %v419_v63  ;;  %v423_v60 = vrot.slane %v419_v63, 4  ;;  %v711_v12 = vrot.slane %v709_v35, 5  ;;  %492 = vst [vmem:[#allocation2 + $0x2c] sm:$0x1] %v491_v7 }
  0x3c   : > { %v430_v11 = vor.u32 %v428_v54, %v427_v0  ;;  %3383 = vmatprep.subr.bf16.mxu0 %v3589_v37  ;;  %v431_v13 = vrot.slane %v427_v0, 4  ;;  %v716_v15 = vrot.slane %v714_v1, 4  ;;  %v719_v17 = vrot.slane %v717_v6, 5 }
  0x3d   : > { %v707_v14 = vrot.slane %v706_v5, 4  ;;  %v494_v18 = vsel %vm3788_vm4, %v422_v16, %v493_v55  ;;  %v497_v4 = vsel %vm3802_vm5, %v423_v60, %v496_v58  ;;  %v728_v20 = vshrl.u32 %v684_v59, 16  ;;  %3294 = vmatpush3.bf16.msra.mxu1 %v3590_v46 }
  0x3e   : > { %v500_v19 = vsel %vm3788_vm4, %v430_v11, %v499_v56  ;;  %495 = vst [vmem:[#allocation2 + $0x30] sm:$0xf] %v494_v18  ;;  %v720_v22 = vor.u32 %v719_v17, %v716_v15  ;;  %v725_v23 = vrot.slane %v723_v42, 5  ;;  %498 = vst [vmem:[#allocation2 + $0x34] sm:$0x1] %v497_v4  ;;  %v731_v24 = vshll.u32 %v684_v59, 16  ;;  %3295 = vmatprep.subr.bf16.mxu1 %v3592_v62 }
  0x3f   : > { %501 = vst [vmem:[#allocation2 + $0x38] sm:$0xf] %v500_v19  ;;  %v737_v25 = vshll.u32 %v3878_v2, 16  ;;  %3384 = vmatpush3.bf16.msra.mxu0 %v3589_v37  ;;  %v730_v28 = vrot.slane %v728_v20, 4  ;;  %v742_v29 = vshrl.u32 %v686_v8, 16  ;;  %v745_v30 = vshll.u32 %v686_v8, 16 }
  0x40   : > { %v751_v31 = vshll.u32 %v3889_v9, 16  ;;  %3385 = vmatprep.subr.bf16.mxu0 %v3591_v10  ;;  %v3594_v32 = vld [vmem:[#allocation2 + $0x20] ss:$8 sps:$4 sm:$0xff]   ;;  %v721_v33 = vrot.slane %v720_v22, 4  ;;  %v733_v34 = vrot.slane %v731_v24, 5  ;;  %v503_v35 = vsel %vm3802_vm5, %v431_v13, %v502_v21  ;;  %v3601_v4 = vld [vmem:[%s4260_s3 + $0x170] sm:$0xff]  }
  0x41   : > { %v712_v36 = vsel %vm3846_vm8, %v707_v14, %v711_v12  ;;  %v1412_v37 = vld [vmem:[#allocation2 + $0x28] sm:$0xf]  ;;  %v744_v39 = vrot.slane %v742_v29, 4  ;;  %v747_v40 = vrot.slane %v745_v30, 5  ;;  %504 = vst [vmem:[#allocation2 + $0x3c] sm:$0x1] %v503_v35  ;;  %3296 = vmatpush3.bf16.msra.mxu1 %v3592_v62  ;;  %3281 = vmatprep.mubr.bf16.mxu1 %v3594_v32 }
  0x42   : > { %v726_v41 = vsel %vm3846_vm8, %v721_v33, %v725_v23  ;;  %v1413_v43 = vld [vmem:[#allocation2 + $0x2c] sm:$0x1]  ;;  %v1477_v44 = vshrl.u32 %v1412_v37, 16  ;;  %v1480_v45 = vshll.u32 %v1412_v37, 16  ;;  %v734_v46 = vor.u32 %v733_v34, %v730_v28  ;;  %3297 = vmatprep.subr.bf16.mxu1 %v3595_v27  ;;  %v3922_v62 = vld [vmem:[%s4260_s3 + $0x80] sm:$0xff]  }
  0x43   : > { %3386 = vmatpush3.bf16.msra.mxu0 %v3591_v10  ;;  %v1486_v47 = vshll.u32 %v1413_v43, 16  ;;  %v739_v48 = vrot.slane %v737_v25, 5  ;;  %v748_v49 = vor.u32 %v747_v40, %v744_v39  ;;  %v323_v51 = vmax.f32 %v3882_v3, 0.0  ;;  %v3599_v9 = vld [vmem:[%s4260_s3 + $0x168] sm:$0xff]   ;;  %v505_v17 = vld [vmem:[#allocation2 + $0x40] sm:$0xf] }
  0x44   : > { %3387 = vmatprep.subr.bf16.mxu0 %v3593_v26  ;;  %v1479_v54 = vrot.slane %v1477_v44, 4  ;;  %v1482_v55 = vrot.slane %v1480_v45, 5  ;;  %v735_v56 = vrot.slane %v734_v46, 4  ;;  %v753_v57 = vrot.slane %v751_v31, 5  ;;  %v3933_v13 = vld [vmem:[#allocation2 + $0x8] sm:$0xe] }
  0x45   : > { %v2867_v59 = vcombine.low %v712_v36, %v726_v41  ;;  %v3110_v63 = vpack.c.bf16 %v323_v51, %v323_v51  ;;  %3298 = vmatpush3.bf16.msra.mxu1 %v3595_v27  ;;  %v1414_v0 = vld [vmem:[#allocation2 + $0x30] sm:$0xf]  ;;  %v1415_v1 = vld [vmem:[#allocation2 + $0x34] sm:$0x1]  ;;  %v3924_v3 = vrot.slane %v1486_v47, 5  ;;  %v749_v10 = vrot.slane %v748_v49, 4 }
  0x46   : > { %v3597_v58 = vld [vmem:[#allocation2 + $0x30] ss:$8 sps:$4 sm:$0xff]   ;;  %v1483_v2 = vor.u32 %v1482_v55, %v1479_v54  ;;  %v1491_v5 = vshrl.u32 %v1414_v0, 16  ;;  %v1494_v6 = vshll.u32 %v1414_v0, 16  ;;  %v1500_v42 = vshll.u32 %v1415_v1, 16  ;;  %3299 = vmatprep.subr.bf16.mxu1 %v3598_v53  ;;  %v3602_v27 = vld [vmem:[%s4260_s3 + $0x88] sm:$0xff]  }
  0x47   : > { %3388 = vmatpush3.bf16.msra.mxu0 %v3593_v26  ;;  %3282 = vmatmul.mubr.bf16.gmra.mrb[4].mxu1 %v3597_v58  ;;  %v433_v7 = vshrl.u32 %v3110_v63, 16  ;;  %v1416_v8 = vld [vmem:[#allocation2 + $0x38] sm:$0xf]  ;;  %v740_v60 = vsel %vm3846_vm8, %v735_v56, %v739_v48  ;;  %v754_v11 = vsel %vm3846_vm8, %v749_v10, %v753_v57  ;;  %v436_v12 = vshll.u32 %v3110_v63, 16  ;;  %v508_v21 = vld [vmem:[#allocation2 + $0x44] sm:$0x1] }
  0x48   : > { %3389 = vmatprep.subr.bf16.mxu0 %v3596_v52  ;;  %v1484_v16 = vrot.slane %v1483_v2, 4  ;;  %3301 = vmatprep.mubr.bf16.mxu1 %v2867_v59  ;;  %v1493_v14 = vrot.slane %v1491_v5, 4  ;;  %v1496_v15 = vrot.slane %v1494_v6, 5  ;;  %v1417_v18 = vld [vmem:[#allocation2 + $0x3c] sm:$0x1]  ;;  %v1505_v19 = vshrl.u32 %v1416_v8, 16 }
  0x49   : > { %3300 = vmatpush3.bf16.msra.mxu1 %v3598_v53  ;;  %v435_v20 = vrot.slane %v433_v7, 7  ;;  %v1508_v22 = vshll.u32 %v1416_v8, 16  ;;  %v3938_v23 = vld [vmem:[#allocation2 + $0xc] sm:$0x1]  ;;  %v1502_v25 = vrot.slane %v1500_v42, 5  ;;  %v2868_v26 = vcombine.low %v740_v60, %v754_v11  ;;  %v3603_v44 = vld [vmem:[%s4260_s3 + $0x178] sm:$0xff]  }
  0x4a   : > { %3309 = vmatprep.subr.bf16.mxu1 %v3922_v62  ;;  %v1497_v24 = vor.u32 %v1496_v15, %v1493_v14  ;;  %v3944_v28 = vld [vmem:[#allocation2 + $0x10] sm:$0xe]  ;;  %v3946_v29 = vld [vmem:[#allocation2 + $0x14] sm:$0x1]  ;;  %v2971_v30 = vrot.slane %v3933_v13, 9  ;;  %v1489_v31 = vsel %vm3846_vm8, %v1484_v16, %v3924_v3  ;;  %v1514_v34 = vshll.u32 %v1417_v18, 16 }
  0x4b   : > { %3390 = vmatpush3.bf16.msra.mxu0 %v3596_v52  ;;  %v438_v32 = vor.u32 %v436_v12, %v435_v20  ;;  %v439_v33 = vrot.slane %v435_v20, 4  ;;  %v3952_v35 = vld [vmem:[#allocation2 + $0x18] sm:$0xe]  ;;  %v1507_v37 = vrot.slane %v1505_v19, 4  ;;  %v1510_v39 = vrot.slane %v1508_v22, 5  ;;  %v3980_v54 = vld [vmem:[%s4260_s3 + $0x180] sm:$0xff]  }
  0x4c   : > { %3391 = vmatprep.subr.bf16.mxu0 %v3599_v9  ;;  %v1498_v36 = vrot.slane %v1497_v24, 4  ;;  %v1736_v40 = vrot.slane %v3938_v23, 5  ;;  %v3962_v45 = vld [vmem:[#allocation2 + $0x1c] sm:$0x1]  ;;  %v2972_v50 = vrot.slane %v3944_v28, 9  ;;  %v1740_v47 = vrot.slane %v3946_v29, 5 }
  0x4d   : > { %v506_v41 = vsel %vm3788_vm4, %v438_v32, %v505_v17  ;;  %v509_v43 = vsel %vm3802_vm5, %v439_v33, %v508_v21  ;;  %v3971_v48 = vld [vmem:[#allocation2 + $0x20] sm:$0xe]  ;;  %v3974_v51 = vrot.slane %v1514_v34, 5  ;;  %v2973_v52 = vrot.slane %v3952_v35, 9  ;;  %v689_v56 = vld [vmem:[#allocation2 + $0x24] sm:$0x1] }
  0x4e   : > { %v1503_v46 = vsel %vm3846_vm8, %v1498_v36, %v1502_v25  ;;  %507 = vst [vmem:[#allocation2 + $0x40] sm:$0xf] %v506_v41  ;;  %510 = vst [vmem:[#allocation2 + $0x44] sm:$0x1] %v509_v43  ;;  %v1511_v53 = vor.u32 %v1510_v39, %v1507_v37  ;;  %v688_v55 = vld [vmem:[#allocation2 + $0x20] sm:$0xf]  ;;  %v1741_v32 = vsel %vm3993_vm11, %v2972_v50, %v1740_v47 }
  0x4f   : > { %3392 = vmatpush3.bf16.msra.mxu0 %v3599_v9  ;;  %3302 = vmatmul.mubr.bf16.vlgmr.msra.gmra.mrb[0].mxu1 %v2868_v26  ;;  %v2961_v49 = vcombine.low %v1489_v31, %v1503_v46  ;;  %v690_v57 = vld [vmem:[#allocation2 + $0x28] sm:$0xf]  ;;  %v3982_v58 = vld [vmem:[#allocation2 + $0x24] sm:$0x1]  ;;  %v1744_v59 = vrot.slane %v3962_v45, 5  ;;  %v756_v0 = vshrl.u32 %v688_v55, 16  ;;  %v1737_v31 = vsel %vm3993_vm11, %v2971_v30, %v1736_v40 }
  0x50   : > { %3393 = vmatprep.subr.bf16.mxu0 %v3601_v4  ;;  %3310 = vmatpush3.bf16.msra.mxu1 %v3922_v62  ;;  %v3606_v62 = vld [vmem:[%s4260_s3 + $0x98] sm:$0xff]   ;;  %v691_v63 = vld [vmem:[#allocation2 + $0x2c] sm:$0x1]  ;;  %v759_v1 = vshll.u32 %v688_v55, 16  ;;  %v765_v2 = vshll.u32 %v689_v56, 16  ;;  %v2974_v3 = vrot.slane %v3971_v48, 9 }
  0x51   : > { %3311 = vmatprep.subr.bf16.mxu1 %v3602_v27  ;;  %3377 = vmatprep.mubr.bf16.mxu0 %v2961_v49  ;;  %v770_v10 = vshrl.u32 %v690_v57, 16  ;;  %v773_v5 = vshll.u32 %v690_v57, 16  ;;  %v779_v6 = vshll.u32 %v691_v63, 16  ;;  %v3989_v42 = vrot.slane %v1511_v53, 4  ;;  %v3608_v19 = vld [vmem:[%s4260_s3 + $0xa0] sm:$0xff]   ;;  %v3610_v50 = vld [vmem:[%s4260_s3 + $0xa8] sm:$0xff]  }
  0x52   : > { %v758_v7 = vrot.slane %v756_v0, 4  ;;  %v761_v8 = vrot.slane %v759_v1, 5  ;;  %v767_v9 = vrot.slane %v765_v2, 5  ;;  %v1748_v20 = vrot.slane %v3982_v58, 5  ;;  %v692_v24 = vld [vmem:[#allocation2 + $0x30] sm:$0xf] }
  0x53   : > { %3394 = vmatpush3.bf16.msra.mxu0 %v3601_v4  ;;  %v772_v11 = vrot.slane %v770_v10, 4  ;;  %v775_v12 = vrot.slane %v773_v5, 5  ;;  %v781_v22 = vrot.slane %v779_v6, 5  ;;  %v693_v29 = vld [vmem:[#allocation2 + $0x34] sm:$0x1]  ;;  %v784_v37 = vshrl.u32 %v692_v24, 16 }
  0x54   : > { %3395 = vmatprep.subr.bf16.mxu0 %v3603_v44  ;;  %3312 = vmatpush3.bf16.msra.mxu1 %v3602_v27  ;;  %v762_v4 = vor.u32 %v761_v8, %v758_v7  ;;  %v694_v34 = vld [vmem:[#allocation2 + $0x38] sm:$0xf]  ;;  %v695_v36 = vld [vmem:[#allocation2 + $0x3c] sm:$0x1]  ;;  %v787_v43 = vshll.u32 %v692_v24, 16  ;;  %v1517_v40 = vsel %vm3846_vm8, %v3989_v42, %v3974_v51  ;;  %v2995_v63 = vcombine.low %v1737_v31, %v1741_v32  ;;  %v3612_v51 = vld [vmem:[%s4260_s3 + $0xb0] sm:$0xff]  }
  0x55   : > { %3313 = vmatprep.subr.bf16.mxu1 %v3604_v38  ;;  %v1418_v16 = vld [vmem:[#allocation2 + $0x40] sm:$0xf]  ;;  %v1419_v60 = vld [vmem:[#allocation2 + $0x44] sm:$0x1]  ;;  %v776_v21 = vor.u32 %v775_v12, %v772_v11  ;;  %v786_v23 = vrot.slane %v784_v37, 4  ;;  %v798_v46 = vshrl.u32 %v694_v34, 16  ;;  %v1745_v12 = vsel %vm3993_vm11, %v2973_v52, %v1744_v59 }
  0x56   : > { %v1519_v14 = vshrl.u32 %v1418_v16, 16  ;;  %v1522_v15 = vshll.u32 %v1418_v16, 16  ;;  %v1528_v17 = vshll.u32 %v1419_v60, 16  ;;  %v763_v28 = vrot.slane %v762_v4, 4  ;;  %v981_v58 = vld [vmem:[#allocation2] sm:$0xe] }
  0x57   : > { %3396 = vmatpush3.bf16.msra.mxu0 %v3603_v44  ;;  %v777_v33 = vrot.slane %v776_v21, 4  ;;  %v793_v44 = vshll.u32 %v693_v29, 16  ;;  %v801_v30 = vshll.u32 %v694_v34, 16  ;;  %v789_v49 = vrot.slane %v787_v43, 5  ;;  %v982_v1 = vld [vmem:[#allocation2 + $0x4] sm:$0x1] }
  0x58   : > { %3405 = vmatprep.subr.bf16.mxu0 %v3980_v54  ;;  %3314 = vmatpush3.bf16.msra.mxu1 %v3604_v38  ;;  %v1521_v25 = vrot.slane %v1519_v14, 4  ;;  %v1524_v26 = vrot.slane %v1522_v15, 5  ;;  %v1530_v27 = vrot.slane %v1528_v17, 5  ;;  %v768_v41 = vsel %vm3846_vm8, %v763_v28, %v767_v9  ;;  %v983_v2 = vld [vmem:[#allocation2 + $0x8] sm:$0xe]  ;;  %v3614_v35 = vld [vmem:[%s4260_s3 + $0xb8] sm:$0xff]  }
  0x59   : > { %3315 = vmatprep.subr.bf16.mxu1 %v3606_v62  ;;  %v782_v13 = vsel %vm3846_vm8, %v777_v33, %v781_v22  ;;  %v795_v53 = vrot.slane %v793_v44, 5  ;;  %v800_v55 = vrot.slane %v798_v46, 4  ;;  %v803_v56 = vrot.slane %v801_v30, 5  ;;  %v984_v10 = vld [vmem:[#allocation2 + $0xc] sm:$0x1] }
  0x5a   : > { %v1525_v39 = vor.u32 %v1524_v26, %v1521_v25  ;;  %v2869_v47 = vcombine.low %v768_v41, %v782_v13  ;;  %v807_v57 = vshll.u32 %v695_v36, 16  ;;  %v790_v0 = vor.u32 %v789_v49, %v786_v23  ;;  %v1710_v11 = vld [vmem:[#allocation2 + $0x28] sm:$0xe]  ;;  %v1711_v17 = vld [vmem:[#allocation2 + $0x2c] sm:$0x1] }
  0x5b   : > { %v804_v6 = vor.u32 %v803_v56, %v800_v55  ;;  %v2879_v7 = vrot.slane %v981_v58, 9  ;;  %v1018_v9 = vrot.slane %v982_v1, 5  ;;  %v2880_v16 = vrot.slane %v983_v2, 9  ;;  %v1713_v52 = vld [vmem:[#allocation2 + $0x34] sm:$0x1]  ;;  %v3607_v33 = vld [vmem:[%s4260_s3 + $0x188] sm:$0xff]  }
  0x5c   : > { %3316 = vmatpush3.bf16.msra.mxu1 %v3606_v62  ;;  %v1526_v38 = vrot.slane %v1525_v39, 4  ;;  %3305 = vmatprep.mubr.bf16.mxu1 %v2869_v47  ;;  %v809_v42 = vrot.slane %v807_v57, 5  ;;  %v791_v8 = vrot.slane %v790_v0, 4  ;;  %v1022_v60 = vrot.slane %v984_v10, 5  ;;  %v985_v25 = vld [vmem:[#allocation2 + $0x10] sm:$0xe] }
  0x5d   : > { %3317 = vmatprep.subr.bf16.mxu1 %v3608_v19  ;;  %v1749_v14 = vsel %vm3993_vm11, %v2974_v3, %v1748_v20  ;;  %v805_v15 = vrot.slane %v804_v6, 4  ;;  %v2975_v4 = vrot.slane %v1710_v11, 9  ;;  %v1019_v45 = vsel %vm3993_vm11, %v2879_v7, %v1018_v9  ;;  %v986_v29 = vld [vmem:[#allocation2 + $0x14] sm:$0x1]  ;;  %v987_v31 = vld [vmem:[#allocation2 + $0x18] sm:$0xe] }
  0x5e   : > { %v1531_v62 = vsel %vm3846_vm8, %v1526_v38, %v1530_v27  ;;  %v796_v21 = vsel %vm3846_vm8, %v791_v8, %v795_v53  ;;  %v1023_v48 = vsel %vm3993_vm11, %v2880_v16, %v1022_v60  ;;  %v1752_v59 = vrot.slane %v1711_v17, 5  ;;  %v988_v32 = vld [vmem:[#allocation2 + $0x1c] sm:$0x1]  ;;  %v1714_v41 = vld [vmem:[#allocation2 + $0x38] sm:$0xe]  ;;  %v3616_v47 = vld [vmem:[%s4260_s3 + $0xc0] sm:$0xff]  }
  0x5f   : > { %v2962_v5 = vcombine.low %v1517_v40, %v1531_v62  ;;  %v810_v3 = vsel %vm3846_vm8, %v805_v15, %v809_v42  ;;  %v2903_v20 = vcombine.low %v1019_v45, %v1023_v48  ;;  %v1756_v24 = vrot.slane %v1713_v52, 5  ;;  %v1715_v13 = vld [vmem:[#allocation2 + $0x3c] sm:$0x1]  ;;  %v1716_v23 = vld [vmem:[#allocation2 + $0x40] sm:$0xe]  ;;  %v3609_v55 = vld [vmem:[%s4260_s3 + $0x190] sm:$0xff]  }
  0x60   : > { %3318 = vmatpush3.bf16.msra.mxu1 %v3608_v19  ;;  %v1712_v19 = vld [vmem:[#allocation2 + $0x30] sm:$0xe]  ;;  %v2996_v26 = vcombine.low %v1745_v12, %v1749_v14  ;;  %v2870_v27 = vcombine.low %v796_v21, %v810_v3  ;;  %v1753_v28 = vsel %vm3993_vm11, %v2975_v4, %v1752_v59  ;;  %v2881_v36 = vrot.slane %v985_v25, 9  ;;  %v1717_v40 = vld [vmem:[#allocation2 + $0x44] sm:$0x1]  ;;  %v3618_v62 = vld [vmem:[%s4260_s3 + $0xc8] sm:$0xff]  }
  0x61   : > { %3319 = vmatprep.subr.bf16.mxu1 %v3610_v50  ;;  %3378 = vmatmul.mubr.bf16.gmra.mrb[4].mxu0 %v2962_v5  ;;  %v2976_v22 = vrot.slane %v1712_v19, 9  ;;  %v1026_v37 = vrot.slane %v986_v29, 5  ;;  %v2882_v39 = vrot.slane %v987_v31, 9  ;;  %v1030_v44 = vrot.slane %v988_v32, 5  ;;  %v3620_v0 = vld [vmem:[%s4260_s3 + $0xd0] sm:$0xff]   ;;  %v3613_v5 = vld [vmem:[%s4260_s3 + $0x1a0] sm:$0xff]  }
  0x62   : > { %3397 = vmatprep.mubr.bf16.mxu0 %v2995_v63  ;;  %3306 = vmatmul.mubr.bf16.gmra.mrb[4].mxu1 %v2870_v27  ;;  %v2977_v46 = vrot.slane %v1714_v41, 9  ;;  %v1760_v38 = vrot.slane %v1715_v13, 5  ;;  %v1764_v53 = vrot.slane %v1717_v40, 5  ;;  %v3621_v63 = vld [vmem:[#allocation2 + $0x10] ss:$8 sps:$4 sm:$0xff]   ;;  %v3615_v12 = vld [vmem:[%s4260_s3 + $0x1a8] sm:$0xff]  }
  0x63   : > { %v1757_v34 = vsel %vm3993_vm11, %v2976_v22, %v1756_v24  ;;  %3325 = vmatprep.mubr.bf16.mxu1 %v2903_v20  ;;  %v1027_v30 = vsel %vm3993_vm11, %v2881_v36, %v1026_v37  ;;  %v1031_v49 = vsel %vm3993_vm11, %v2882_v39, %v1030_v44  ;;  %v989_v1 = vld [vmem:[#allocation2 + $0x20] sm:$0xe]  ;;  %v990_v2 = vld [vmem:[#allocation2 + $0x24] sm:$0x1]  ;;  %v991_v10 = vld [vmem:[#allocation2 + $0x28] sm:$0xe] }
  0x64   : > { %3320 = vmatpush3.bf16.msra.mxu1 %v3610_v50  ;;  %v2997_v43 = vcombine.low %v1753_v28, %v1757_v34  ;;  %v2978_v50 = vrot.slane %v1716_v23, 9  ;;  %v2904_v56 = vcombine.low %v1027_v30, %v1031_v49  ;;  %v1761_v57 = vsel %vm3993_vm11, %v2977_v46, %v1760_v38  ;;  %v992_v6 = vld [vmem:[#allocation2 + $0x2c] sm:$0x1]  ;;  %v3624_v9 = vld [vmem:[%s4260_s3 + $0xd8] sm:$0xff]   ;;  %v993_v60 = vld [vmem:[#allocation2 + $0x30] sm:$0xe] }
  0x65   : > { %3321 = vmatprep.subr.bf16.mxu1 %v3612_v51  ;;  %v2883_v42 = vrot.slane %v989_v1, 9  ;;  %v1034_v7 = vrot.slane %v990_v2, 5  ;;  %v2884_v8 = vrot.slane %v991_v10, 9  ;;  %v1038_v16 = vrot.slane %v992_v6, 5  ;;  %v994_v11 = vld [vmem:[#allocation2 + $0x34] sm:$0x1] }
  0x66   : > { %v1765_v58 = vsel %vm3993_vm11, %v2978_v50, %v1764_v53  ;;  %v995_v15 = vld [vmem:[#allocation2 + $0x38] sm:$0xe]  ;;  %v996_v17 = vld [vmem:[#allocation2 + $0x3c] sm:$0x1]  ;;  %v2885_v19 = vrot.slane %v993_v60, 9  ;;  %v1042_v4 = vrot.slane %v994_v11, 5 }
  0x67   : > { %v1035_v14 = vsel %vm3993_vm11, %v2883_v42, %v1034_v7  ;;  %v1039_v21 = vsel %vm3993_vm11, %v2884_v8, %v1038_v16  ;;  %v1046_v45 = vrot.slane %v996_v17, 5  ;;  %v3626_v59 = vld [vmem:[%s4260_s3 + $0xe0] sm:$0xff]   ;;  %v3634_v22 = vld [vmem:[#allocation2 + $0x8] ss:$8 sps:$4 sm:$0xff]   ;;  %v3632_v29 = vld [vmem:[%s4260_s3 + $0xf8] sm:$0xff]  }
  0x68   : > { %3322 = vmatpush3.bf16.msra.mxu1 %v3612_v51  ;;  %v3611_v51 = vld [vmem:[%s4260_s3 + $0x198] sm:$0xff]   ;;  %v2905_v48 = vcombine.low %v1035_v14, %v1039_v21  ;;  %v1043_v52 = vsel %vm3993_vm11, %v2885_v19, %v1042_v4  ;;  %v3617_v24 = vld [vmem:[%s4260_s3 + $0x1b0] sm:$0xff]   ;;  %v3628_v25 = vld [vmem:[%s4260_s3 + $0xe8] sm:$0xff]  }
  0x69   : > { %3323 = vmatprep.subr.bf16.mxu1 %v3614_v35  ;;  %3398 = vmatmul.mubr.bf16.vlgmr.msra.gmra.mrb[0].mxu0 %v2996_v26  ;;  %v3619_v26 = vld [vmem:[%s4260_s3 + $0x1b8] sm:$0xff]   ;;  %v3630_v27 = vld [vmem:[%s4260_s3 + $0xf0] sm:$0xff]   ;;  %v3622_v28 = vld [vmem:[%s4260_s3 + $0x1c0] sm:$0xff]  }
  0x6a   : > { %3406 = vmatpush3.bf16.msra.mxu0 %v3980_v54  ;;  %3401 = vmatprep.mubr.bf16.mxu0 %v2997_v43  ;;  %v2998_v54 = vcombine.low %v1761_v57, %v1765_v58  ;;  %v2123_v31 = vld [vmem:[#allocation2 + $0x10] sm:$0xf]  ;;  %v2124_v32 = vld [vmem:[#allocation2 + $0x14] sm:$0x1]  ;;  %v2126_v34 = vld [vmem:[#allocation2 + $0x1c] sm:$0x1] }
  0x6b   : > { %3407 = vmatprep.subr.bf16.mxu0 %v3607_v33  ;;  %v2140_v36 = vshrl.u32 %v2123_v31, 16  ;;  %v2143_v37 = vshll.u32 %v2123_v31, 16  ;;  %v2149_v39 = vshll.u32 %v2124_v32, 16  ;;  %v3623_v43 = vld [vmem:[#allocation2 + $0x20] ss:$8 sps:$4 sm:$0xff]   ;;  %v2163_v13 = vshll.u32 %v2126_v34, 16 }
  0x6c   : > { %3324 = vmatpush3.bf16.msra.mxu1 %v3614_v35  ;;  %v2886_v35 = vrot.slane %v995_v15, 9  ;;  %v3635_v23 = vld [vmem:[#allocation2 + $0x30] ss:$8 sps:$4 sm:$0xff]   ;;  %v3625_v38 = vld [vmem:[%s4260_s3 + $0x1c8] sm:$0xff]   ;;  %v4137_v7 = vld [vmem:[#allocation2 + $0x24] sm:$0x1] }
  0x6d   : > { %3333 = vmatprep.subr.bf16.mxu1 %v3616_v47  ;;  %v2142_v46 = vrot.slane %v2140_v36, 4  ;;  %v2145_v30 = vrot.slane %v2143_v37, 5  ;;  %v2151_v53 = vrot.slane %v2149_v39, 5  ;;  %v3627_v57 = vld [vmem:[%s4260_s3 + $0x1d0] sm:$0xff]   ;;  %v3636_v58 = vld [vmem:[#allocation2 + $0x18] ss:$8 sps:$4 sm:$0xff]  }
  0x6e   : > { %3408 = vmatpush3.bf16.msra.mxu0 %v3607_v33  ;;  %v1047_v3 = vsel %vm3993_vm11, %v2886_v35, %v1046_v45  ;;  %v2125_v33 = vld [vmem:[#allocation2 + $0x18] sm:$0xf]  ;;  %v2129_v2 = vld [vmem:[#allocation2 + $0x28] sm:$0xf]  ;;  %v2131_v6 = vld [vmem:[#allocation2 + $0x30] sm:$0xf] }
  0x6f   : > { %3326 = vmatmul.mubr.bf16.vlgmr.msra.gmra.mrb[0].mxu1 %v2904_v56  ;;  %3409 = vmatprep.subr.bf16.mxu0 %v3609_v55  ;;  %v2906_v20 = vcombine.low %v1043_v52, %v1047_v3  ;;  %v2154_v41 = vshrl.u32 %v2125_v33, 16  ;;  %v2157_v44 = vshll.u32 %v2125_v33, 16  ;;  %v2146_v49 = vor.u32 %v2145_v30, %v2142_v46  ;;  %v3637_v10 = vld [vmem:[#allocation2 + $0x40] ss:$8 sps:$4 sm:$0xff]   ;;  %v4139_v8 = vld [vmem:[#allocation2 + $0x2c] sm:$0x1] }
  0x70   : > { %3334 = vmatpush3.bf16.msra.mxu1 %v3616_v47  ;;  %3329 = vmatprep.mubr.bf16.mxu1 %v2905_v48  ;;  %v4122_v47 = vld [vmem:[%s4260_s3 + $0x200] sm:$0xff]   ;;  %v2165_v56 = vrot.slane %v2163_v13, 5  ;;  %v3629_v60 = vld [vmem:[%s4260_s3 + $0x1d8] sm:$0xff]   ;;  %v2182_v11 = vshrl.u32 %v2129_v2, 16  ;;  %v4149_v15 = vld [vmem:[%s4260_s3 + $0x210] sm:$0xff]   ;;  %v2196_v17 = vshrl.u32 %v2131_v6, 16 }
  0x71   : > { %3335 = vmatprep.subr.bf16.mxu1 %v3618_v62  ;;  %3402 = vmatmul.mubr.bf16.gmra.mrb[4].mxu0 %v2998_v54  ;;  %v2156_v40 = vrot.slane %v2154_v41, 4  ;;  %v2159_v50 = vrot.slane %v2157_v44, 5  ;;  %v4130_v54 = vld [vmem:[%s4260_s3 + $0x208] sm:$0xff]   ;;  %v2133_v14 = vld [vmem:[#allocation2 + $0x38] sm:$0xf]  ;;  %v2199_v19 = vshll.u32 %v2131_v6, 16 }
  0x72   : > { %3410 = vmatpush3.bf16.msra.mxu0 %v3609_v55  ;;  %3421 = vmatprep.mubr.bf16.mxu0 %v3621_v63  ;;  %v3631_v4 = vld [vmem:[%s4260_s3 + $0x1e0] sm:$0xff]   ;;  %v2177_v35 = vshll.u32 %v4137_v7, 16  ;;  %v2191_v45 = vshll.u32 %v4139_v8, 16  ;;  %v2210_v3 = vshrl.u32 %v2133_v14, 16  ;;  %v2134_v31 = vld [vmem:[#allocation2 + $0x3c] sm:$0x1] }
  0x73   : > { %3411 = vmatprep.subr.bf16.mxu0 %v3611_v51  ;;  %v2160_v55 = vor.u32 %v2159_v50, %v2156_v40  ;;  %v3643_v21 = vld [vmem:[#allocation2 + $0x38] ss:$8 sps:$4 sm:$0xff]   ;;  %v2137_v32 = vld [vmem:[#allocation2 + $0x48] sm:$0xf]  ;;  %v2429_v39 = vld [vmem:[#allocation2 + $0x30] sm:$0xe] }
  0x74   : > { %3336 = vmatpush3.bf16.msra.mxu1 %v3618_v62  ;;  %v2147_v62 = vrot.slane %v2146_v49, 4  ;;  %v2212_v33 = vrot.slane %v2210_v3, 4  ;;  %v2430_v41 = vld [vmem:[#allocation2 + $0x34] sm:$0x1]  ;;  %v4171_v46 = vld [vmem:[%s4260_s3 + $0x220] sm:$0xff]   ;;  %v3067_v40 = vrot.slane %v2429_v39, 9 }
  0x75   : > { %3337 = vmatprep.subr.bf16.mxu1 %v3620_v0  ;;  %v2161_v63 = vrot.slane %v2160_v55, 4  ;;  %v2432_v30 = vld [vmem:[#allocation2 + $0x3c] sm:$0x1]  ;;  %v2471_v50 = vrot.slane %v2430_v41, 5  ;;  %v2136_v8 = vld [vmem:[#allocation2 + $0x44] sm:$0x1] }
  0x76   : > { %3412 = vmatpush3.bf16.msra.mxu0 %v3611_v51  ;;  %v2127_v51 = vld [vmem:[#allocation2 + $0x20] sm:$0xf]  ;;  %v2152_v1 = vsel %vm3846_vm8, %v2147_v62, %v2151_v53  ;;  %v2475_v53 = vrot.slane %v2432_v30, 5  ;;  %v3638_v62 = vld [vmem:[%s4260_s3 + $0x1f0] sm:$0xff]   ;;  %v2436_v3 = vld [vmem:[#allocation2 + $0x4c] sm:$0x1] }
  0x77   : > { %3413 = vmatprep.subr.bf16.mxu0 %v3613_v5  ;;  %3330 = vmatmul.mubr.bf16.gmra.mrb[4].mxu1 %v2906_v20  ;;  %v2171_v16 = vshll.u32 %v2127_v51, 16  ;;  %v2213_v20 = vshll.u32 %v2133_v14, 16  ;;  %v2424_v39 = vld [vmem:[#allocation2 + $0x1c] sm:$0x1] }
  0x78   : > { %3338 = vmatpush3.bf16.msra.mxu1 %v3620_v0  ;;  %3349 = vmatprep.mubr.bf16.mxu1 %v3634_v22  ;;  %v3642_v0 = vld [vmem:[#allocation2 + $0x28] ss:$8 sps:$4 sm:$0xff]   ;;  %v2184_v22 = vrot.slane %v2182_v11, 4 }
  0x79   : > { %3339 = vmatprep.subr.bf16.mxu1 %v3624_v9  ;;  %v2173_v52 = vrot.slane %v2171_v16, 5  ;;  %v2215_v34 = vrot.slane %v2213_v20, 5 }
  0x7a   : > { %3414 = vmatpush3.bf16.msra.mxu0 %v3613_v5  ;;  %v2166_v5 = vsel %vm3846_vm8, %v2161_v63, %v2165_v56  ;;  %v2219_v56 = vshll.u32 %v2134_v31, 16  ;;  %v2179_v63 = vrot.slane %v2177_v35, 5  ;;  %v3649_v31 = vld [vmem:[%s4260_s3 + $0x238] sm:$0xff]  }
  0x7b   : > { %3415 = vmatprep.subr.bf16.mxu0 %v3615_v12  ;;  %v3051_v42 = vcombine.low %v2152_v1, %v2166_v5  ;;  %v2216_v55 = vor.u32 %v2215_v34, %v2212_v33  ;;  %v4185_v5 = vld [vmem:[%s4260_s3 + $0x228] sm:$0xff]   ;;  %v2483_v33 = vrot.slane %v2436_v3, 5  ;;  %v2421_v34 = vld [vmem:[#allocation2 + $0x10] sm:$0xe] }
  0x7c   : > { %3340 = vmatpush3.bf16.msra.mxu1 %v3624_v9  ;;  %v2168_v9 = vshrl.u32 %v2127_v51, 16  ;;  %v2472_v51 = vsel %vm3993_vm11, %v3067_v40, %v2471_v50  ;;  %v2221_v11 = vrot.slane %v2219_v56, 5 }
  0x7d   : > { %3341 = vmatprep.subr.bf16.mxu1 %v3626_v59 }
  0x7e   : > { %3416 = vmatpush3.bf16.msra.mxu0 %v3615_v12  ;;  %v2185_v12 = vshll.u32 %v2129_v2, 16  ;;  %v2170_v48 = vrot.slane %v2168_v9, 4 }
  0x7f   : > { %3417 = vmatprep.subr.bf16.mxu0 %v3617_v24 }
  0x80   : > { %3342 = vmatpush3.bf16.msra.mxu1 %v3626_v59  ;;  %v4159_v59 = vld [vmem:[%s4260_s3 + $0x218] sm:$0xff]   ;;  %v2174_v36 = vor.u32 %v2173_v52, %v2170_v48  ;;  %v4199_v48 = vld [vmem:[%s4260_s3 + $0x230] sm:$0xff]   ;;  %v2435_v52 = vld [vmem:[#allocation2 + $0x48] sm:$0xe] }
  0x81   : > { %3343 = vmatprep.subr.bf16.mxu1 %v3628_v25 }
  0x82   : > { %3418 = vmatpush3.bf16.msra.mxu0 %v3617_v24  ;;  %v2187_v24 = vrot.slane %v2185_v12, 5  ;;  %v2175_v1 = vrot.slane %v2174_v36, 4  ;;  %v2138_v12 = vld [vmem:[#allocation2 + $0x4c] sm:$0x1]  ;;  %v2422_v36 = vld [vmem:[#allocation2 + $0x14] sm:$0x1] }
  0x83   : > { %3419 = vmatprep.subr.bf16.mxu0 %v3619_v26 }
  0x84   : > { %3344 = vmatpush3.bf16.msra.mxu1 %v3628_v25  ;;  %v2132_v25 = vld [vmem:[#allocation2 + $0x34] sm:$0x1]  ;;  %v2188_v37 = vor.u32 %v2187_v24, %v2184_v22  ;;  %v2180_v35 = vsel %vm3846_vm8, %v2175_v1, %v2179_v63  ;;  %v2233_v24 = vshll.u32 %v2136_v8, 16  ;;  %v2428_v1 = vld [vmem:[#allocation2 + $0x2c] sm:$0x1] }
  0x85   : > { %3345 = vmatprep.subr.bf16.mxu1 %v3630_v27  ;;  %v2205_v13 = vshll.u32 %v2132_v25, 16  ;;  %v2247_v25 = vshll.u32 %v2138_v12, 16 }
  0x86   : > { %3420 = vmatpush3.bf16.msra.mxu0 %v3619_v26  ;;  %v2198_v26 = vrot.slane %v2196_v17, 4  ;;  %v2189_v2 = vrot.slane %v2188_v37, 4  ;;  %v2423_v37 = vld [vmem:[#allocation2 + $0x18] sm:$0xe] }
  0x87   : > { %3429 = vmatprep.subr.bf16.mxu0 %v3622_v28  ;;  %v2207_v7 = vrot.slane %v2205_v13, 5  ;;  %v2249_v13 = vrot.slane %v2247_v25, 5 }
  0x88   : > { %3346 = vmatpush3.bf16.msra.mxu1 %v3630_v27  ;;  %v2201_v27 = vrot.slane %v2199_v19, 5  ;;  %v3640_v19 = vld [vmem:[%s4260_s3 + $0x1f8] sm:$0xff]  }
  0x89   : > { %3347 = vmatprep.subr.bf16.mxu1 %v3632_v29  ;;  %3422 = vmatmul.mubr.bf16.vlgmr.msra.gmra.mrb[0].mxu0 %v3623_v43  ;;  %v2431_v43 = vld [vmem:[#allocation2 + $0x38] sm:$0xe] }
  0x8a   : > { %3430 = vmatpush3.bf16.msra.mxu0 %v3622_v28  ;;  %3425 = vmatprep.mubr.bf16.mxu0 %v3635_v23  ;;  %v2135_v28 = vld [vmem:[#allocation2 + $0x40] sm:$0xf]  ;;  %v2202_v44 = vor.u32 %v2201_v27, %v2198_v26  ;;  %v3068_v49 = vrot.slane %v2431_v43, 9 }
  0x8b   : > { %3431 = vmatprep.subr.bf16.mxu0 %v3625_v38  ;;  %v2224_v23 = vshrl.u32 %v2135_v28, 16 }
  0x8c   : > { %3348 = vmatpush3.bf16.msra.mxu1 %v3632_v29  ;;  %v3633_v29 = vld [vmem:[%s4260_s3 + $0x1e8] sm:$0xff]  }
  0x8d   : > { %3477 = vmatprep.subr.bf16.mxu1 %v4122_v47  ;;  %v2226_v9 = vrot.slane %v2224_v23, 4 }
  0x8e   : > { %3432 = vmatpush3.bf16.msra.mxu0 %v3625_v38  ;;  %v2227_v38 = vshll.u32 %v2135_v28, 16 }
  0x8f   : > { %3350 = vmatmul.mubr.bf16.vlgmr.msra.gmra.mrb[0].mxu1 %v3636_v58  ;;  %3433 = vmatprep.subr.bf16.mxu0 %v3627_v57  ;;  %v2241_v58 = vshll.u32 %v2137_v32, 16 }
  0x90   : > { %3485 = vmatpush3.bf16.msra.mxu1 %v4122_v47  ;;  %3353 = vmatprep.mubr.bf16.mxu1 %v3642_v0  ;;  %v2476_v0 = vsel %vm3993_vm11, %v3068_v49, %v2475_v53  ;;  %v2229_v16 = vrot.slane %v2227_v38, 5  ;;  %v3063_v38 = vrot.slane %v2421_v34, 9  ;;  %v2455_v49 = vrot.slane %v2422_v36, 5 }
  0x91   : > { %3478 = vmatprep.subr.bf16.mxu1 %v4130_v54  ;;  %3426 = vmatmul.mubr.bf16.gmra.mrb[4].mxu0 %v3637_v10  ;;  %v2193_v10 = vrot.slane %v2191_v45, 5  ;;  %v3089_v6 = vcombine.low %v2472_v51, %v2476_v0  ;;  %v2243_v17 = vrot.slane %v2241_v58, 5  ;;  %v3064_v53 = vrot.slane %v2423_v37, 9  ;;  %v2427_v0 = vld [vmem:[#allocation2 + $0x28] sm:$0xe] }
  0x92   : > { %3434 = vmatpush3.bf16.msra.mxu0 %v3627_v57  ;;  %3445 = vmatprep.mubr.bf16.mxu0 %v3051_v42  ;;  %v2238_v57 = vshrl.u32 %v2137_v32, 16  ;;  %v2203_v42 = vrot.slane %v2202_v44, 4  ;;  %v2230_v22 = vor.u32 %v2229_v16, %v2226_v9  ;;  %v3070_v32 = vrot.slane %v2435_v52, 9 }
  0x93   : > { %3435 = vmatprep.subr.bf16.mxu0 %v3629_v60  ;;  %v2194_v45 = vsel %vm3846_vm8, %v2189_v2, %v2193_v10  ;;  %v2235_v44 = vrot.slane %v2233_v24, 5  ;;  %v3065_v2 = vrot.slane %v2425_v61, 9 }
  0x94   : > { %3486 = vmatpush3.bf16.msra.mxu1 %v4130_v54  ;;  %v2240_v14 = vrot.slane %v2238_v57, 4  ;;  %v2208_v20 = vsel %vm3846_vm8, %v2203_v42, %v2207_v7  ;;  %v3052_v41 = vcombine.low %v2180_v35, %v2194_v45  ;;  %v2231_v23 = vrot.slane %v2230_v22, 4 }
  0x95   : > { %3479 = vmatprep.subr.bf16.mxu1 %v4149_v15  ;;  %v2484_v50 = vsel %vm3993_vm11, %v3070_v32, %v2483_v33 }
  0x96   : > { %3436 = vmatpush3.bf16.msra.mxu0 %v3629_v60  ;;  %v2217_v60 = vrot.slane %v2216_v55, 4  ;;  %v2244_v27 = vor.u32 %v2243_v17, %v2240_v14  ;;  %v2459_v55 = vrot.slane %v2424_v39, 5  ;;  %v2236_v56 = vsel %vm3846_vm8, %v2231_v23, %v2235_v44 }
  0x97   : > { %3354 = vmatmul.mubr.bf16.gmra.mrb[4].mxu1 %v3643_v21  ;;  %3437 = vmatprep.subr.bf16.mxu0 %v3631_v4  ;;  %v2434_v21 = vld [vmem:[#allocation2 + $0x44] sm:$0x1] }
  0x98   : > { %3487 = vmatpush3.bf16.msra.mxu1 %v4149_v15  ;;  %3473 = vmatprep.mubr.bf16.mxu1 %v3089_v6  ;;  %v2222_v26 = vsel %vm3846_vm8, %v2217_v60, %v2221_v11  ;;  %v2245_v30 = vrot.slane %v2244_v27, 4  ;;  %v2460_v63 = vsel %vm3993_vm11, %v3064_v53, %v2459_v55  ;;  %v2467_v6 = vrot.slane %v2428_v1, 5 }
  0x99   : > { %3480 = vmatprep.subr.bf16.mxu1 %v4159_v59  ;;  %v3053_v43 = vcombine.low %v2208_v20, %v2222_v26 }
  0x9a   : > { %3438 = vmatpush3.bf16.msra.mxu0 %v3631_v4  ;;  %v2433_v4 = vld [vmem:[#allocation2 + $0x40] sm:$0xe]  ;;  %v2250_v57 = vsel %vm3846_vm8, %v2245_v30, %v2249_v13 }
  0x9b   : > { %3439 = vmatprep.subr.bf16.mxu0 %v3633_v29  ;;  %v3069_v28 = vrot.slane %v2433_v4, 9  ;;  %v3054_v51 = vcombine.low %v2236_v56, %v2250_v57 }
  0x9c   : > { %3488 = vmatpush3.bf16.msra.mxu1 %v4159_v59 }
  0x9d   : > { %3481 = vmatprep.subr.bf16.mxu1 %v4171_v46 }
  0x9e   : > { %3440 = vmatpush3.bf16.msra.mxu0 %v3633_v29  ;;  %v2479_v29 = vrot.slane %v2434_v21, 5 }
  0x9f   : > { %3441 = vmatprep.subr.bf16.mxu0 %v3638_v62 }
  0xa0   : > { %3489 = vmatpush3.bf16.msra.mxu1 %v4171_v46  ;;  %v2480_v40 = vsel %vm3993_vm11, %v3069_v28, %v2479_v29 }
  0xa1   : > { %3482 = vmatprep.subr.bf16.mxu1 %v4185_v5  ;;  %v3090_v58 = vcombine.low %v2480_v40, %v2484_v50 }
  0xa2   : > { %3442 = vmatpush3.bf16.msra.mxu0 %v3638_v62  ;;  %v2456_v62 = vsel %vm3993_vm11, %v3063_v38, %v2455_v49 }
  0xa3   : > { %3443 = vmatprep.subr.bf16.mxu0 %v3640_v19 }
  0xa4   : > { %3490 = vmatpush3.bf16.msra.mxu1 %v4185_v5 }
  0xa5   : > { %3483 = vmatprep.subr.bf16.mxu1 %v4199_v48 }
  0xa6   : > { %3444 = vmatpush3.bf16.msra.mxu0 %v3640_v19 }
  0xa7   : > { %3453 = vmatprep.subr.bf16.mxu0 %v4122_v47 }
  0xa8   : > { %3491 = vmatpush3.bf16.msra.mxu1 %v4199_v48 }
  0xa9   : > { %3484 = vmatprep.subr.bf16.mxu1 %v3649_v31  ;;  %3446 = vmatmul.mubr.bf16.vlgmr.msra.gmra.mrb[0].mxu0 %v3052_v41 }
  0xaa   : > { %3454 = vmatpush3.bf16.msra.mxu0 %v4122_v47  ;;  %3449 = vmatprep.mubr.bf16.mxu0 %v3053_v43  ;;  %v3087_v47 = vcombine.low %v2456_v62, %v2460_v63 }
  0xab   : > { %3455 = vmatprep.subr.bf16.mxu0 %v4130_v54 }
  0xac   : > { %3492 = vmatpush3.bf16.msra.mxu1 %v3649_v31 }
  0xae   : > { %3456 = vmatpush3.bf16.msra.mxu0 %v4130_v54  ;;  %v2426_v54 = vld [vmem:[#allocation2 + $0x24] sm:$0x1] }
  0xaf   : > { %3474 = vmatmul.mubr.bf16.vlgmr.msra.gmra.mrb[8].mxu1 %v3090_v58  ;;  %3457 = vmatprep.subr.bf16.mxu0 %v4149_v15  ;;  %v2463_v10 = vrot.slane %v2426_v54, 5 }
  0xb1   : > { %3450 = vmatmul.mubr.bf16.gmra.mrb[4].mxu0 %v3054_v51 }
  0xb2   : > { %3458 = vmatpush3.bf16.msra.mxu0 %v4149_v15  ;;  %3469 = vmatprep.mubr.bf16.mxu0 %v3087_v47  ;;  %v3066_v15 = vrot.slane %v2427_v0, 9 }
  0xb3   : > { %3459 = vmatprep.subr.bf16.mxu0 %v4159_v59 }
  0xb6   : > { %3460 = vmatpush3.bf16.msra.mxu0 %v4159_v59  ;;  %v2464_v59 = vsel %vm3993_vm11, %v3065_v2, %v2463_v10 }
  0xb7   : > { %3461 = vmatprep.subr.bf16.mxu0 %v4171_v46 }
  0xba   : > { %3462 = vmatpush3.bf16.msra.mxu0 %v4171_v46  ;;  %v2468_v46 = vsel %vm3993_vm11, %v3066_v15, %v2467_v6 }
  0xbb   : > { %3463 = vmatprep.subr.bf16.mxu0 %v4185_v5  ;;  %v3088_v42 = vcombine.low %v2464_v59, %v2468_v46 }
  0xbe   : > { %3464 = vmatpush3.bf16.msra.mxu0 %v4185_v5 }
  0xbf   : > { %3465 = vmatprep.subr.bf16.mxu0 %v4199_v48 }
  0xc2   : > { %3466 = vmatpush3.bf16.msra.mxu0 %v4199_v48 }
  0xc3   : > { %3467 = vmatprep.subr.bf16.mxu0 %v3649_v31 }
  0xc6   : > { %3468 = vmatpush3.bf16.msra.mxu0 %v3649_v31 }
  0xc9   : > { %3470 = vmatmul.mubr.bf16.vlgmr.msra.gmra.mrb[0].mxu0 %v3088_v42 }
 0x162   : > { %v3351_v7 = vpop.f32.mrb[0].mxu1 }
 0x163   : > { %v1349_v5 = vpop.f32.mrb[1].mxu1 }
 0x164   : > { %v3352_v8 = vpop.f32.mrb[2].mxu1 }
 0x165   : > { %v1352_v9 = vpop.f32.mrb[3].mxu1 }
 0x16a   : > { %v3355_v16 = vpop.f32.mrb[4].mxu1 }
 0x16b   : > { %v1365_v60 = vpop.f32.mrb[5].mxu1 }
 0x16c   : > { %v3356_v11 = vpop.f32.mrb[6].mxu1 }
 0x16d   : > { %v1368_v12 = vpop.f32.mrb[7].mxu1 }
 0x182   : > { %v3475_v14 = vpop.f32.mrb[8].mxu1 }
 0x183   : > { %v2616_v17 = vpop.f32.mrb[9].mxu1 }
 0x184   : > { %v3476_v19 = vpop.f32.mrb[10].mxu1  ;;  %v3451_v4 = vpop.f32.mrb[4].mxu0 }
 0x185   : > { %v2619_v21 = vpop.f32.mrb[11].mxu1  ;;  %v3497_v18 = vadd.f32 %v3451_v4, %v3355_v16  ;;  %v2382_v35 = vpop.f32.mrb[5].mxu0 }
 0x186   : > { %v3499_v45 = vadd.f32 %v2382_v35, %v1365_v60  ;;  %v3452_v48 = vpop.f32.mrb[6].mxu0 }
 0x187   : > { %v3501_v52 = vadd.f32 %v3452_v48, %v3356_v11  ;;  %v2385_v3 = vpop.f32.mrb[7].mxu0  ;;  %v3498_v20 = vadd.f32 %v3497_v18, %v3475_v14 }
 0x188   : > { %v3503_v22 = vadd.f32 %v2385_v3, %v1368_v12  ;;  %v3500_v24 = vadd.f32 %v3499_v45, %v2616_v17 }
 0x189   : > { %v3502_v25 = vadd.f32 %v3501_v52, %v3476_v19  ;;  %v2699_v51 = vmul.f32 %v3498_v20, %v3498_v20 }
 0x18a   : > { %v3504_v26 = vadd.f32 %v3503_v22, %v2619_v21  ;;  %v2697_v55 = vmul.f32 %v3500_v24, %v3500_v24 }
 0x18b   : > { %v3145_v27 = vpack.c.bf16 %v3502_v25, %v3498_v20  ;;  %v2700_v54 = vmul.f32 %v3502_v25, %v3502_v25 }
 0x18c   : > { %v3140_v28 = vpack.c.bf16 %v3504_v26, %v3500_v24  ;;  %v2698_v58 = vmul.f32 %v3504_v26, %v3504_v26 }
 0x18d   : > { %3152 = vst [vmem:[%s262_s30 + $0x18] sm:$0xff] %v3145_v27  }
 0x18e   : > { %3151 = vst [vmem:[%s262_s30 + $0x10] sm:$0xff] %v3140_v28  }
 0x19c   : > { %v3471_v29 = vpop.f32.mrb[0].mxu0 }
 0x19d   : > { %v3493_v31 = vadd.f32 %v3471_v29, %v3351_v7  ;;  %v2600_v32 = vpop.f32.mrb[1].mxu0 }
 0x19e   : > { %v3494_v33 = vadd.f32 %v2600_v32, %v1349_v5  ;;  %v3472_v34 = vpop.f32.mrb[2].mxu0 }
 0x19f   : > { %v3495_v36 = vadd.f32 %v3472_v34, %v3352_v8  ;;  %v2603_v37 = vpop.f32.mrb[3].mxu0  ;;  %v2695_v30 = vmul.f32 %v3493_v31, %v3493_v31 }
 0x1a0   : > { %v3496_v39 = vadd.f32 %v2603_v37, %v1352_v9  ;;  %v2693_v43 = vmul.f32 %v3494_v33, %v3494_v33 }
 0x1a1   : > { %v3135_v41 = vpack.c.bf16 %v3495_v36, %v3493_v31  ;;  %v2696_v50 = vmul.f32 %v3495_v36, %v3495_v36 }
 0x1a2   : > { %v3130_v44 = vpack.c.bf16 %v3496_v39, %v3494_v33  ;;  %v2679_v13 = vadd.f32 %v3496_v39, %v3494_v33  ;;  %v2694_v23 = vmul.f32 %v3496_v39, %v3496_v39 }
 0x1a3   : > { %3150 = vst [vmem:[%s262_s30 + $0x8] sm:$0xff] %v3135_v41  }
 0x1a4   : > { %3131 = vst [vmem:[%s262_s30] sm:$0xff] %v3130_v44   ;;  %v2680_v40 = vadd.f32 %v3493_v31, %v2679_v13  ;;  %v2701_v38 = vadd.f32 %v2694_v23, %v2693_v43 }
 0x1a6   : > { %v2681_v49 = vadd.f32 %v3495_v36, %v2680_v40  ;;  %v2702_v53 = vadd.f32 %v2701_v38, %v2695_v30 }
 0x1a8   : > { %v2682_v56 = vadd.f32 %v3500_v24, %v2681_v49  ;;  %v2703_v57 = vadd.f32 %v2702_v53, %v2696_v50 }
 0x1aa   : > { %v2683_v62 = vadd.f32 %v3504_v26, %v2682_v56  ;;  %v2704_v63 = vadd.f32 %v2703_v57, %v2697_v55 }
 0x1ac   : > { %v2684_v47 = vadd.f32 %v3498_v20, %v2683_v62  ;;  %v2705_v61 = vadd.f32 %v2704_v63, %v2698_v58 }
 0x1ae   : > { %v2685_v0 = vadd.f32 %v3502_v25, %v2684_v47  ;;  %v2706_v1 = vadd.f32 %v2705_v61, %v2699_v51 }
 0x1b0   : > { %v2686_v2 = vrot.slane %v2685_v0, 4  ;;  %v2707_v10 = vadd.f32 %v2706_v1, %v2700_v54 }
 0x1b2   : > { %v2687_v15 = vadd.f32 %v2686_v2, %v2685_v0  ;;  %v2708_v6 = vrot.slane %v2707_v10, 4 }
 0x1b4   : > { %v2688_v59 = vrot.slane %v2687_v15, 2  ;;  %v2709_v46 = vadd.f32 %v2708_v6, %v2707_v10 }
 0x1b6   : > { %v2689_v42 = vadd.f32 %v2688_v59, %v2687_v15  ;;  %v2710_v7 = vrot.slane %v2709_v46, 2 }
 0x1b8   : > { %v2690_v5 = vrot.slane %v2689_v42, 1  ;;  %v2711_v8 = vadd.f32 %v2710_v7, %v2709_v46 }
 0x1ba   : > { %v2691_v9 = vadd.f32 %v2690_v5, %v2689_v42  ;;  %v2712_v16 = vrot.slane %v2711_v8, 1 }
 0x1bc   : > { %2692 = vst [vmem:[%s265_s8] sm:$0x1] %v2691_v9  ;;  %v2713_v60 = vadd.f32 %v2712_v16, %v2711_v8 }
 0x1be   : > { %2714 = vst [vmem:[%s268_s11] sm:$0x1] %v2713_v60 }
 0x1bf PF: > { %s17_s21 = sadd.s32 1, %s3656_s21  }
 0x1c0   : > { %p14_p4 = scmp.ge.s32.totalorder %s17_s21, 4  }
 0x1c2   :  { %16 = sbr.rel (!%p14_p4) target bundleno = 1 (0x1), region = 100 }

</bundles_post_ra>
